<compile_context>
chip_gen: v6e
topology: v6e:2x2x1
jax: 0.10.0
libtpu: 0.0.40
codegen_flags: <defaults>
</compile_context>

<pallas_src>
import jax
import jax.numpy as jnp
from jax.experimental import pallas as pl
from jax.experimental.pallas import tpu as pltpu

EPS = 1e-5
LANE = 128


def _ceil_to(x, m):
    return ((x + m - 1) // m) * m


def _pad_channels(a, target):
    pad = target - a.shape[-1]
    if pad == 0:
        return a
    return jnp.pad(a, [(0, 0)] * (a.ndim - 1) + [(0, pad)])


# ----------------------------------------------------------------------------
# kernels
# ----------------------------------------------------------------------------
def conv1_stats_kernel(xt_ref, xm_ref, xb_ref, w_ref, y_ref, s_ref):
    """Stem conv (tiny Cin, per-tap K=Cin matmuls) + per-tile BN1 partial stats.

    xt/xm/xb: (1, W, Cin) / (TH, W, Cin) / (1, W, Cin) bf16 halo rows + row tile.
    w: (9, Cin, Cp) bf16.  y: (TH, W, Cp) bf16.  s: (2, Cp) f32 partial (sum, sumsq).
    """
    j = pl.program_id(1)
    nr = pl.num_programs(1)
    th, w, cin = xm_ref.shape
    m = th * w

    zrow = jnp.zeros_like(xt_ref[...])
    top = jnp.where(j > 0, xt_ref[...], zrow)            # image-top halo row is zero pad
    bot = jnp.where(j < nr - 1, xb_ref[...], zrow)       # image-bottom halo row is zero pad
    rows = jnp.concatenate([top, xm_ref[...], bot], axis=0)          # (TH+2, W, Cin)
    zcol = jnp.zeros((th + 2, 1, cin), rows.dtype)
    act = jnp.concatenate([zcol, rows, zcol], axis=1)                # (TH+2, W+2, Cin)

    c_out = w_ref.shape[-1]
    acc = jnp.zeros((m, c_out), jnp.float32)
    for k in range(9):                                   # static unroll: 9 small-K MXU taps
        ky, kx = divmod(k, 3)
        tap = act[ky:ky + th, kx:kx + w, :].reshape(m, cin)
        acc = acc + jnp.dot(tap, w_ref[k], preferred_element_type=jnp.float32)

    y_ref[...] = acc.reshape(th, w, c_out).astype(y_ref.dtype)
    s_ref[0:1, :] = jnp.sum(acc, axis=0, keepdims=True)              # direct stores, no concat
    s_ref[1:2, :] = jnp.sum(acc * acc, axis=0, keepdims=True)


def bn1_conv2_stats_kernel(yt_ref, ym_ref, yb_ref, sc_ref, sh_ref, w_ref, y_ref, s_ref):
    """BN1-apply + ReLU (f32) fused with conv2 (ky-grouped, K=3*C) + BN2 partial stats.

    yt/ym/yb: bf16 halo rows + row tile of y1.  sc/sh: (1, Cp) f32 BN1 scale/shift.
    w: (3, 3*Cp, Cp) bf16.  y: (TH, W, Cp) bf16.  s: (2, Cp) f32 partial (sum, sumsq).
    """
    j = pl.program_id(1)
    nr = pl.num_programs(1)
    th, w, c = ym_ref.shape
    m = th * w

    rows = jnp.concatenate([yt_ref[...], ym_ref[...], yb_ref[...]], axis=0)  # (TH+2, W, C)
    # BN1 apply + ReLU in f32 (halo rows are real pixels from neighbouring tiles).
    actf = jnp.maximum(rows.astype(jnp.float32) * sc_ref[...] + sh_ref[...], 0.0)
    # Spatial zero padding must be zero *after* BN+ReLU -> re-zero out-of-image halo rows.
    ridx = jax.lax.broadcasted_iota(jnp.int32, (th + 2, 1, 1), 0)
    valid = ((ridx >= 1) | (j > 0)) & ((ridx <= th) | (j < nr - 1))
    act = jnp.where(valid, actf, 0.0).astype(jnp.bfloat16)
    zcol = jnp.zeros((th + 2, 1, c), jnp.bfloat16)
    act = jnp.concatenate([zcol, act, zcol], axis=1)                         # (TH+2, W+2, C)

    acc = jnp.zeros((m, c), jnp.float32)
    for ky in range(3):                       # ky-grouped im2col: K = 3*C per matmul
        parts = [act[ky:ky + th, kx:kx + w, :].reshape(m, c) for kx in range(3)]
        slab = jnp.concatenate(parts, axis=1)                                # (M, 3C) bf16
        acc = acc + jnp.dot(slab, w_ref[ky], preferred_element_type=jnp.float32)

    y_ref[...] = acc.reshape(th, w, c).astype(y_ref.dtype)
    s_ref[0:1, :] = jnp.sum(acc, axis=0, keepdims=True)
    s_ref[1:2, :] = jnp.sum(acc * acc, axis=0, keepdims=True)


def bn2_relu_kernel(y_ref, sc_ref, sh_ref, o_ref):
    """BN2-apply + ReLU; the channel-padding slice is folded into the out_spec."""
    c_out = o_ref.shape[-1]
    y = y_ref[...][:, :, :c_out].astype(jnp.float32)
    o_ref[...] = jnp.maximum(y * sc_ref[...] + sh_ref[...], 0.0)


# ----------------------------------------------------------------------------
# wrapper-side glue
# ----------------------------------------------------------------------------
def _prep_w1(w1, c_p):
    """(3,3,Cin,Cout) f32 -> (9, Cin, Cp) bf16 (Cout zero-padded, Cin NOT padded)."""
    kh, kw, cin, cout = w1.shape
    wp = jnp.zeros((kh, kw, cin, c_p), jnp.float32).at[..., :cout].set(w1.astype(jnp.float32))
    return wp.reshape(kh * kw, cin, c_p).astype(jnp.bfloat16)


def _prep_w2(w2, c_p):
    """(3,3,C,C) f32 -> (3, 3*Cp, Cp) bf16 (both channel dims zero-padded, ky-grouped)."""
    kh, kw, ci, co = w2.shape
    wp = jnp.zeros((kh, kw, c_p, c_p), jnp.float32).at[:, :, :ci, :co].set(w2.astype(jnp.float32))
    return wp.reshape(kh, kw * c_p, c_p).astype(jnp.bfloat16)


def _bn_scale_shift(partial_stats, gamma_p, beta_p, m_total):
    """Reduce per-tile (sum, sumsq) partials -> training-mode BN scale/shift (1, Cp)."""
    s = jnp.sum(partial_stats.astype(jnp.float32), axis=(0, 1))       # (2, Cp)
    mean = s[0] / m_total
    var = jnp.maximum(s[1] / m_total - mean * mean, 0.0)               # biased variance
    rstd = jax.lax.rsqrt(var + EPS)
    scale = gamma_p * rstd
    shift = beta_p - mean * scale
    return scale.reshape(1, -1), shift.reshape(1, -1)


def double_conv(x_nchw, w1, w2, g1, b1, g2, b2, *, row_tile=None):
    """x_nchw: (N, Cin, H, W) f32.  w1: (3,3,Cin,Cout), w2: (3,3,Cout,Cout) (HWIO)."""
    x = jnp.transpose(x_nchw, (0, 2, 3, 1)).astype(jnp.bfloat16)       # NHWC bf16
    n, h, w, cin = x.shape
    cout = w1.shape[-1]
    c_p = _ceil_to(cout, LANE)

    th = row_tile if row_tile is not None else (8 if h % 8 == 0 else h)
    assert h % th == 0, (h, th)
    r = h // th
    m_total = n * h * w

    w1p = _prep_w1(w1, c_p)                                            # (9, cin, c_p) bf16
    w2p = _prep_w2(w2, c_p)                                            # (3, 3*c_p, c_p) bf16
    g1p = _pad_channels(g1.astype(jnp.float32), c_p)
    b1p = _pad_channels(b1.astype(jnp.float32), c_p)
    g2p = _pad_channels(g2.astype(jnp.float32), c_p)
    b2p = _pad_channels(b2.astype(jnp.float32), c_p)

    grid = (n, r)
    cparams = pltpu.CompilerParams(
        dimension_semantics=("parallel", "parallel"),
        vmem_limit_bytes=48 * 1024 * 1024)   # fits v7x's 64 MiB VMEM with headroom

    halo_rows = h + 2 * r                    # rows DMA'd per image per pass (incl. halos)
    BF16, F32 = 2, 4
    ce1 = pl.CostEstimate(
        flops=2 * n * h * w * 9 * cin * c_p, transcendentals=0,
        bytes_accessed=(n * halo_rows * w * cin * BF16 + 9 * cin * c_p * BF16
                        + n * h * w * c_p * BF16 + n * r * 2 * c_p * F32))
    ce2 = pl.CostEstimate(
        flops=2 * n * h * w * 9 * c_p * c_p + 4 * n * h * w * c_p, transcendentals=0,
        bytes_accessed=(n * halo_rows * w * c_p * BF16 + 9 * c_p * c_p * BF16
                        + n * h * w * c_p * BF16 + n * r * 2 * c_p * F32))
    ce3 = pl.CostEstimate(
        flops=3 * n * h * w * cout, transcendentals=0,
        bytes_accessed=n * h * w * c_p * BF16 + n * h * w * cout * F32)

    # halo BlockSpecs: overlapping (th+2)-row window expressed inside the pallas_call,
    # no wrapper-side padded/stacked slabs.
    def _halo_specs(chan):
        top = pl.BlockSpec((None, 1, w, chan),
                           lambda i, j: (i, jnp.maximum(j * th - 1, 0), 0, 0))
        mid = pl.BlockSpec((None, th, w, chan), lambda i, j: (i, j, 0, 0))
        bot = pl.BlockSpec((None, 1, w, chan),
                           lambda i, j: (i, jnp.minimum((j + 1) * th, h - 1), 0, 0))
        return [top, mid, bot]

    # ---- pass 1: conv1 + per-tile BN1 partial stats -------------------------
    y1, s1 = pl.pallas_call(
        conv1_stats_kernel,
        grid=grid,
        in_specs=_halo_specs(cin) + [pl.BlockSpec((9, cin, c_p), lambda i, j: (0, 0, 0))],
        out_specs=(
            pl.BlockSpec((None, th, w, c_p), lambda i, j: (i, j, 0, 0)),
            pl.BlockSpec((None, None, 2, c_p), lambda i, j: (i, j, 0, 0)),
        ),
        out_shape=(
            jax.ShapeDtypeStruct((n, h, w, c_p), jnp.bfloat16),        # bf16 intermediate
            jax.ShapeDtypeStruct((n, r, 2, c_p), jnp.float32),
        ),
        compiler_params=cparams,
        cost_estimate=ce1,
    )(x, x, x, w1p)

    scale1, shift1 = _bn_scale_shift(s1, g1p, b1p, m_total)

    # ---- pass 2: BN1-apply + ReLU + conv2 + per-tile BN2 partial stats ------
    y2, s2 = pl.pallas_call(
        bn1_conv2_stats_kernel,
        grid=grid,
        in_specs=_halo_specs(c_p) + [
            pl.BlockSpec((1, c_p), lambda i, j: (0, 0)),
            pl.BlockSpec((1, c_p), lambda i, j: (0, 0)),
            pl.BlockSpec((3, 3 * c_p, c_p), lambda i, j: (0, 0, 0)),   # weight-stationary
        ],
        out_specs=(
            pl.BlockSpec((None, th, w, c_p), lambda i, j: (i, j, 0, 0)),
            pl.BlockSpec((None, None, 2, c_p), lambda i, j: (i, j, 0, 0)),
        ),
        out_shape=(
            jax.ShapeDtypeStruct((n, h, w, c_p), jnp.bfloat16),        # bf16 intermediate
            jax.ShapeDtypeStruct((n, r, 2, c_p), jnp.float32),
        ),
        compiler_params=cparams,
        cost_estimate=ce2,
    )(y1, y1, y1, scale1, shift1, w2p)

    scale2, shift2 = _bn_scale_shift(s2, g2p, b2p, m_total)
    scale2c = scale2[:, :cout]
    shift2c = shift2[:, :cout]

    # ---- pass 3: BN2-apply + ReLU (channel-padding slice folded into out_spec) ---
    out = pl.pallas_call(
        bn2_relu_kernel,
        grid=grid,
        in_specs=[
            pl.BlockSpec((None, th, w, c_p), lambda i, j: (i, j, 0, 0)),
            pl.BlockSpec((1, cout), lambda i, j: (0, 0)),
            pl.BlockSpec((1, cout), lambda i, j: (0, 0)),
        ],
        out_specs=pl.BlockSpec((None, th, w, cout), lambda i, j: (i, j, 0, 0)),
        out_shape=jax.ShapeDtypeStruct((n, h, w, cout), jnp.float32),
        compiler_params=cparams,
        cost_estimate=ce3,
    )(y2, scale2c, shift2c)

    return jnp.transpose(out, (0, 3, 1, 2))     # back to NCHW


# ----------------------------------------------------------------------------
# reference (same bf16-matmul-input / f32-accumulate numerics) + test
# ----------------------------------------------------------------------------
def double_conv_reference(x_nchw, w1, w2, g1, b1, g2, b2):
    x = jnp.transpose(x_nchw, (0, 2, 3, 1)).astype(jnp.float32)

    def conv(y, wgt):
        return jax.lax.conv_general_dilated(
            y.astype(jnp.bfloat16), wgt.astype(jnp.bfloat16),
            window_strides=(1, 1), padding=((1, 1), (1, 1)),
            dimension_numbers=('NHWC', 'HWIO', 'NHWC'),
            preferred_element_type=jnp.float32)

    def bn_relu(y, g, b):
        mu = jnp.mean(y, axis=(0, 1, 2), keepdims=True)
        var = jnp.mean(jnp.square(y - mu), axis=(0, 1, 2), keepdims=True)
        return jnp.maximum((y - mu) * jax.lax.rsqrt(var + EPS) * g + b, 0.0)

    y = bn_relu(conv(x, w1), g1, b1)
    y = bn_relu(conv(y, w2), g2, b2)
    return jnp.transpose(y, (0, 3, 1, 2))


if __name__ == "__main__":
    # Shapes consistent with DoubleConv(in_channels=4, out_channels=8)
    N, CIN, COUT, H, W = 2, 4, 8, 16, 16

    key = jax.random.PRNGKey(0)
    kx, kw1, kw2, kg1, kb1, kg2, kb2 = jax.random.split(key, 7)

    x = jax.random.normal(kx, (N, CIN, H, W), dtype=jnp.float32)        # NCHW input
    w1 = 0.3 * jax.random.normal(kw1, (3, 3, CIN, COUT), jnp.float32)    # conv1 (HWIO)
    w2 = 0.2 * jax.random.normal(kw2, (3, 3, COUT, COUT), jnp.float32)   # conv2 (HWIO)
    g1 = 1.0 + 0.1 * jax.random.normal(kg1, (COUT,), jnp.float32)        # BN1 gamma
    b1 = 0.1 * jax.random.normal(kb1, (COUT,), jnp.float32)              # BN1 beta
    g2 = 1.0 + 0.1 * jax.random.normal(kg2, (COUT,), jnp.float32)        # BN2 gamma
    b2 = 0.1 * jax.random.normal(kb2, (COUT,), jnp.float32)              # BN2 beta

    fwd = jax.jit(double_conv)
    out = jax.block_until_ready(fwd(x, w1, w2, g1, b1, g2, b2))
    ref = jax.block_until_ready(double_conv_reference(x, w1, w2, g1, b1, g2, b2))

    assert out.shape == (N, COUT, H, W), out.shape
    max_err = float(jnp.max(jnp.abs(out - ref)))
    # Both paths use bf16 MXU inputs with f32 accumulation; the kernel additionally
    # stores the inter-pass activations in bf16, so tolerance is slightly looser.
    assert jnp.allclose(out, ref, atol=3e-2, rtol=3e-2), max_err

    print("KERNEL_OK")
</pallas_src>

<mosaic_0001>
module attributes {stable_mosaic.version = 11 : i64} {
  func.func @conv1_stats_kernel(%arg0: i32, %arg1: i32, %arg2: memref<1x1x16x4xbf16, #tpu.memory_space<vmem>>, %arg3: memref<1x8x16x4xbf16, #tpu.memory_space<vmem>>, %arg4: memref<1x1x16x4xbf16, #tpu.memory_space<vmem>>, %arg5: memref<9x4x128xbf16, #tpu.memory_space<vmem>>, %arg6: memref<1x8x16x128xbf16, #tpu.memory_space<vmem>>, %arg7: memref<1x1x2x128xf32, #tpu.memory_space<vmem>>) attributes {dimension_semantics = [#tpu.dimension_semantics<parallel>, #tpu.dimension_semantics<parallel>], iteration_bounds = array<i64: 2, 2>, scalar_prefetch = 0 : i64, scratch_operands = 0 : i64, tpu.core_type = #tpu.core_type<tc>, window_params = [{transform_indices = @transform_0, window_bounds = array<i64: 1, 1, 16, 4>}, {transform_indices = @transform_1, window_bounds = array<i64: 1, 8, 16, 4>}, {transform_indices = @transform_2, window_bounds = array<i64: 1, 1, 16, 4>}, {pipeline_mode = #tpu.pipeline_mode<synchronous>, transform_indices = @transform_3, window_bounds = array<i64: 9, 4, 128>}, {transform_indices = @transform_4, window_bounds = array<i64: 1, 8, 16, 128>}, {transform_indices = @transform_5, window_bounds = array<i64: 1, 1, 2, 128>}]} {
    %cst = arith.constant 0.000000e+00 : bf16
    %0 = vector.broadcast %cst : bf16 to vector<1x16x4xbf16>
    %c0_i32 = arith.constant 0 : i32
    %1 = arith.cmpi sgt, %arg1, %c0_i32 : i32
    %c0 = arith.constant 0 : index
    %c0_0 = arith.constant 0 : index
    %c0_1 = arith.constant 0 : index
    %c0_2 = arith.constant 0 : index
    %2 = vector.load %arg2[%c0, %c0_0, %c0_1, %c0_2] : memref<1x1x16x4xbf16, #tpu.memory_space<vmem>>, vector<1x1x16x4xbf16>
    %3 = vector.shape_cast %2 : vector<1x1x16x4xbf16> to vector<1x16x4xbf16>
    %4 = arith.select %1, %3, %0 : vector<1x16x4xbf16>
    %c1_i32 = arith.constant 1 : i32
    %5 = arith.cmpi slt, %arg1, %c1_i32 : i32
    %c0_3 = arith.constant 0 : index
    %c0_4 = arith.constant 0 : index
    %c0_5 = arith.constant 0 : index
    %c0_6 = arith.constant 0 : index
    %6 = vector.load %arg4[%c0_3, %c0_4, %c0_5, %c0_6] : memref<1x1x16x4xbf16, #tpu.memory_space<vmem>>, vector<1x1x16x4xbf16>
    %7 = vector.shape_cast %6 : vector<1x1x16x4xbf16> to vector<1x16x4xbf16>
    %8 = arith.select %5, %7, %0 : vector<1x16x4xbf16>
    %c0_7 = arith.constant 0 : index
    %c0_8 = arith.constant 0 : index
    %c0_9 = arith.constant 0 : index
    %c0_10 = arith.constant 0 : index
    %9 = vector.load %arg3[%c0_7, %c0_8, %c0_9, %c0_10] : memref<1x8x16x4xbf16, #tpu.memory_space<vmem>>, vector<1x8x16x4xbf16>
    %10 = vector.shape_cast %9 : vector<1x8x16x4xbf16> to vector<8x16x4xbf16>
    %11 = tpu.concatenate %4, %10, %8 in 0 : vector<1x16x4xbf16>, vector<8x16x4xbf16>, vector<1x16x4xbf16> -> vector<10x16x4xbf16>
    %cst_11 = arith.constant 0.000000e+00 : bf16
    %12 = vector.broadcast %cst_11 : bf16 to vector<10x1x4xbf16>
    %13 = tpu.concatenate %12, %11, %12 in 1 : vector<10x1x4xbf16>, vector<10x16x4xbf16>, vector<10x1x4xbf16> -> vector<10x18x4xbf16>
    %cst_12 = arith.constant 0.000000e+00 : f32
    %14 = vector.broadcast %cst_12 : f32 to vector<128x128xf32>
    %15 = vector.extract_strided_slice %13 {offsets = [0, 0, 0], sizes = [8, 16, 4], strides = [1, 1, 1]} : vector<10x18x4xbf16> to vector<8x16x4xbf16>
    %16 = vector.shape_cast %15 : vector<8x16x4xbf16> to vector<128x4xbf16>
    %c0_13 = arith.constant 0 : index
    %c0_14 = arith.constant 0 : index
    %c0_15 = arith.constant 0 : index
    %17 = vector.load %arg5[%c0_13, %c0_14, %c0_15] : memref<9x4x128xbf16, #tpu.memory_space<vmem>>, vector<1x4x128xbf16>
    %18 = vector.shape_cast %17 : vector<1x4x128xbf16> to vector<4x128xbf16>
    %cst_16 = arith.constant dense<0.000000e+00> : vector<128x128xf32>
    %19 = tpu.matmul %16, %18, %cst_16 {dimension_numbers = #tpu.dot_dimension_numbers<[1], [0], [0], [1], [0, 0, 1, 1], [], []>} : vector<128x4xbf16>, vector<4x128xbf16>, vector<128x128xf32> -> vector<128x128xf32>
    %20 = arith.addf %14, %19 : vector<128x128xf32>
    %21 = vector.extract_strided_slice %13 {offsets = [0, 1, 0], sizes = [8, 16, 4], strides = [1, 1, 1]} : vector<10x18x4xbf16> to vector<8x16x4xbf16>
    %22 = vector.shape_cast %21 : vector<8x16x4xbf16> to vector<128x4xbf16>
    %c1 = arith.constant 1 : index
    %c0_17 = arith.constant 0 : index
    %c0_18 = arith.constant 0 : index
    %23 = vector.load %arg5[%c1, %c0_17, %c0_18] : memref<9x4x128xbf16, #tpu.memory_space<vmem>>, vector<1x4x128xbf16>
    %24 = vector.shape_cast %23 : vector<1x4x128xbf16> to vector<4x128xbf16>
    %cst_19 = arith.constant dense<0.000000e+00> : vector<128x128xf32>
    %25 = tpu.matmul %22, %24, %cst_19 {dimension_numbers = #tpu.dot_dimension_numbers<[1], [0], [0], [1], [0, 0, 1, 1], [], []>} : vector<128x4xbf16>, vector<4x128xbf16>, vector<128x128xf32> -> vector<128x128xf32>
    %26 = arith.addf %20, %25 : vector<128x128xf32>
    %27 = vector.extract_strided_slice %13 {offsets = [0, 2, 0], sizes = [8, 16, 4], strides = [1, 1, 1]} : vector<10x18x4xbf16> to vector<8x16x4xbf16>
    %28 = vector.shape_cast %27 : vector<8x16x4xbf16> to vector<128x4xbf16>
    %c2 = arith.constant 2 : index
    %c0_20 = arith.constant 0 : index
    %c0_21 = arith.constant 0 : index
    %29 = vector.load %arg5[%c2, %c0_20, %c0_21] : memref<9x4x128xbf16, #tpu.memory_space<vmem>>, vector<1x4x128xbf16>
    %30 = vector.shape_cast %29 : vector<1x4x128xbf16> to vector<4x128xbf16>
    %cst_22 = arith.constant dense<0.000000e+00> : vector<128x128xf32>
    %31 = tpu.matmul %28, %30, %cst_22 {dimension_numbers = #tpu.dot_dimension_numbers<[1], [0], [0], [1], [0, 0, 1, 1], [], []>} : vector<128x4xbf16>, vector<4x128xbf16>, vector<128x128xf32> -> vector<128x128xf32>
    %32 = arith.addf %26, %31 : vector<128x128xf32>
    %33 = vector.extract_strided_slice %13 {offsets = [1, 0, 0], sizes = [8, 16, 4], strides = [1, 1, 1]} : vector<10x18x4xbf16> to vector<8x16x4xbf16>
    %34 = vector.shape_cast %33 : vector<8x16x4xbf16> to vector<128x4xbf16>
    %c3 = arith.constant 3 : index
    %c0_23 = arith.constant 0 : index
    %c0_24 = arith.constant 0 : index
    %35 = vector.load %arg5[%c3, %c0_23, %c0_24] : memref<9x4x128xbf16, #tpu.memory_space<vmem>>, vector<1x4x128xbf16>
    %36 = vector.shape_cast %35 : vector<1x4x128xbf16> to vector<4x128xbf16>
    %cst_25 = arith.constant dense<0.000000e+00> : vector<128x128xf32>
    %37 = tpu.matmul %34, %36, %cst_25 {dimension_numbers = #tpu.dot_dimension_numbers<[1], [0], [0], [1], [0, 0, 1, 1], [], []>} : vector<128x4xbf16>, vector<4x128xbf16>, vector<128x128xf32> -> vector<128x128xf32>
    %38 = arith.addf %32, %37 : vector<128x128xf32>
    %39 = vector.extract_strided_slice %13 {offsets = [1, 1, 0], sizes = [8, 16, 4], strides = [1, 1, 1]} : vector<10x18x4xbf16> to vector<8x16x4xbf16>
    %40 = vector.shape_cast %39 : vector<8x16x4xbf16> to vector<128x4xbf16>
    %c4 = arith.constant 4 : index
    %c0_26 = arith.constant 0 : index
    %c0_27 = arith.constant 0 : index
    %41 = vector.load %arg5[%c4, %c0_26, %c0_27] : memref<9x4x128xbf16, #tpu.memory_space<vmem>>, vector<1x4x128xbf16>
    %42 = vector.shape_cast %41 : vector<1x4x128xbf16> to vector<4x128xbf16>
    %cst_28 = arith.constant dense<0.000000e+00> : vector<128x128xf32>
    %43 = tpu.matmul %40, %42, %cst_28 {dimension_numbers = #tpu.dot_dimension_numbers<[1], [0], [0], [1], [0, 0, 1, 1], [], []>} : vector<128x4xbf16>, vector<4x128xbf16>, vector<128x128xf32> -> vector<128x128xf32>
    %44 = arith.addf %38, %43 : vector<128x128xf32>
    %45 = vector.extract_strided_slice %13 {offsets = [1, 2, 0], sizes = [8, 16, 4], strides = [1, 1, 1]} : vector<10x18x4xbf16> to vector<8x16x4xbf16>
    %46 = vector.shape_cast %45 : vector<8x16x4xbf16> to vector<128x4xbf16>
    %c5 = arith.constant 5 : index
    %c0_29 = arith.constant 0 : index
    %c0_30 = arith.constant 0 : index
    %47 = vector.load %arg5[%c5, %c0_29, %c0_30] : memref<9x4x128xbf16, #tpu.memory_space<vmem>>, vector<1x4x128xbf16>
    %48 = vector.shape_cast %47 : vector<1x4x128xbf16> to vector<4x128xbf16>
    %cst_31 = arith.constant dense<0.000000e+00> : vector<128x128xf32>
    %49 = tpu.matmul %46, %48, %cst_31 {dimension_numbers = #tpu.dot_dimension_numbers<[1], [0], [0], [1], [0, 0, 1, 1], [], []>} : vector<128x4xbf16>, vector<4x128xbf16>, vector<128x128xf32> -> vector<128x128xf32>
    %50 = arith.addf %44, %49 : vector<128x128xf32>
    %51 = vector.extract_strided_slice %13 {offsets = [2, 0, 0], sizes = [8, 16, 4], strides = [1, 1, 1]} : vector<10x18x4xbf16> to vector<8x16x4xbf16>
    %52 = vector.shape_cast %51 : vector<8x16x4xbf16> to vector<128x4xbf16>
    %c6 = arith.constant 6 : index
    %c0_32 = arith.constant 0 : index
    %c0_33 = arith.constant 0 : index
    %53 = vector.load %arg5[%c6, %c0_32, %c0_33] : memref<9x4x128xbf16, #tpu.memory_space<vmem>>, vector<1x4x128xbf16>
    %54 = vector.shape_cast %53 : vector<1x4x128xbf16> to vector<4x128xbf16>
    %cst_34 = arith.constant dense<0.000000e+00> : vector<128x128xf32>
    %55 = tpu.matmul %52, %54, %cst_34 {dimension_numbers = #tpu.dot_dimension_numbers<[1], [0], [0], [1], [0, 0, 1, 1], [], []>} : vector<128x4xbf16>, vector<4x128xbf16>, vector<128x128xf32> -> vector<128x128xf32>
    %56 = arith.addf %50, %55 : vector<128x128xf32>
    %57 = vector.extract_strided_slice %13 {offsets = [2, 1, 0], sizes = [8, 16, 4], strides = [1, 1, 1]} : vector<10x18x4xbf16> to vector<8x16x4xbf16>
    %58 = vector.shape_cast %57 : vector<8x16x4xbf16> to vector<128x4xbf16>
    %c7 = arith.constant 7 : index
    %c0_35 = arith.constant 0 : index
    %c0_36 = arith.constant 0 : index
    %59 = vector.load %arg5[%c7, %c0_35, %c0_36] : memref<9x4x128xbf16, #tpu.memory_space<vmem>>, vector<1x4x128xbf16>
    %60 = vector.shape_cast %59 : vector<1x4x128xbf16> to vector<4x128xbf16>
    %cst_37 = arith.constant dense<0.000000e+00> : vector<128x128xf32>
    %61 = tpu.matmul %58, %60, %cst_37 {dimension_numbers = #tpu.dot_dimension_numbers<[1], [0], [0], [1], [0, 0, 1, 1], [], []>} : vector<128x4xbf16>, vector<4x128xbf16>, vector<128x128xf32> -> vector<128x128xf32>
    %62 = arith.addf %56, %61 : vector<128x128xf32>
    %63 = vector.extract_strided_slice %13 {offsets = [2, 2, 0], sizes = [8, 16, 4], strides = [1, 1, 1]} : vector<10x18x4xbf16> to vector<8x16x4xbf16>
    %64 = vector.shape_cast %63 : vector<8x16x4xbf16> to vector<128x4xbf16>
    %c8 = arith.constant 8 : index
    %c0_38 = arith.constant 0 : index
    %c0_39 = arith.constant 0 : index
    %65 = vector.load %arg5[%c8, %c0_38, %c0_39] : memref<9x4x128xbf16, #tpu.memory_space<vmem>>, vector<1x4x128xbf16>
    %66 = vector.shape_cast %65 : vector<1x4x128xbf16> to vector<4x128xbf16>
    %cst_40 = arith.constant dense<0.000000e+00> : vector<128x128xf32>
    %67 = tpu.matmul %64, %66, %cst_40 {dimension_numbers = #tpu.dot_dimension_numbers<[1], [0], [0], [1], [0, 0, 1, 1], [], []>} : vector<128x4xbf16>, vector<4x128xbf16>, vector<128x128xf32> -> vector<128x128xf32>
    %68 = arith.addf %62, %67 : vector<128x128xf32>
    %69 = vector.shape_cast %68 : vector<128x128xf32> to vector<8x16x128xf32>
    %70 = arith.truncf %69 : vector<8x16x128xf32> to vector<8x16x128xbf16>
    %c0_41 = arith.constant 0 : index
    %c0_42 = arith.constant 0 : index
    %c0_43 = arith.constant 0 : index
    %c0_44 = arith.constant 0 : index
    %71 = vector.load %arg6[%c0_41, %c0_42, %c0_43, %c0_44] : memref<1x8x16x128xbf16, #tpu.memory_space<vmem>>, vector<1x8x16x128xbf16>
    %72 = vector.shape_cast %71 : vector<1x8x16x128xbf16> to vector<8x16x128xbf16>
    %73 = vector.shape_cast %70 : vector<8x16x128xbf16> to vector<1x8x16x128xbf16>
    tpu.vector_store %arg6[%c0_41, %c0_42, %c0_43, %c0_44], %73 {strides = array<i32>} : memref<1x8x16x128xbf16, #tpu.memory_space<vmem>>, vector<1x8x16x128xbf16>,
    %cst_45 = arith.constant dense<0.000000e+00> : vector<128xf32>
    %74 = vector.multi_reduction <add>, %68, %cst_45 [0] : vector<128x128xf32> to vector<128xf32>
    %75 = vector.shape_cast %74 : vector<128xf32> to vector<1x128xf32>
    %c0_46 = arith.constant 0 : index
    %c0_47 = arith.constant 0 : index
    %c0_48 = arith.constant 0 : index
    %c0_49 = arith.constant 0 : index
    %76 = vector.load %arg7[%c0_46, %c0_47, %c0_48, %c0_49] : memref<1x1x2x128xf32, #tpu.memory_space<vmem>>, vector<1x1x1x128xf32>
    %77 = vector.shape_cast %76 : vector<1x1x1x128xf32> to vector<1x128xf32>
    %78 = vector.shape_cast %75 : vector<1x128xf32> to vector<1x1x1x128xf32>
    tpu.vector_store %arg7[%c0_46, %c0_47, %c0_48, %c0_49], %78 {strides = array<i32>} : memref<1x1x2x128xf32, #tpu.memory_space<vmem>>, vector<1x1x1x128xf32>,
    %79 = arith.mulf %68, %68 : vector<128x128xf32>
    %cst_50 = arith.constant dense<0.000000e+00> : vector<128xf32>
    %80 = vector.multi_reduction <add>, %79, %cst_50 [0] : vector<128x128xf32> to vector<128xf32>
    %81 = vector.shape_cast %80 : vector<128xf32> to vector<1x128xf32>
    %c0_51 = arith.constant 0 : index
    %c0_52 = arith.constant 0 : index
    %c1_53 = arith.constant 1 : index
    %c0_54 = arith.constant 0 : index
    %82 = vector.load %arg7[%c0_51, %c0_52, %c1_53, %c0_54] : memref<1x1x2x128xf32, #tpu.memory_space<vmem>>, vector<1x1x1x128xf32>
    %83 = vector.shape_cast %82 : vector<1x1x1x128xf32> to vector<1x128xf32>
    %84 = vector.shape_cast %81 : vector<1x128xf32> to vector<1x1x1x128xf32>
    tpu.vector_store %arg7[%c0_51, %c0_52, %c1_53, %c0_54], %84 {strides = array<i32>} : memref<1x1x2x128xf32, #tpu.memory_space<vmem>>, vector<1x1x1x128xf32>,
    return
  }
  func.func @transform_0(%arg0: i32, %arg1: i32) -> (i32, i32, i32, i32) {
    %c8_i32 = arith.constant 8 : i32
    %0 = arith.muli %arg1, %c8_i32 : i32
    %c1_i32 = arith.constant 1 : i32
    %1 = arith.subi %0, %c1_i32 : i32
    %c0_i32 = arith.constant 0 : i32
    %2 = arith.maxsi %1, %c0_i32 : i32
    %c0_i32_0 = arith.constant 0 : i32
    %c0_i32_1 = arith.constant 0 : i32
    %c0_i32_2 = arith.constant 0 : i32
    return %arg0, %2, %c0_i32_0, %c0_i32_1 : i32, i32, i32, i32
  }
  func.func @transform_1(%arg0: i32, %arg1: i32) -> (i32, i32, i32, i32) {
    %c0_i32 = arith.constant 0 : i32
    %c0_i32_0 = arith.constant 0 : i32
    %c0_i32_1 = arith.constant 0 : i32
    return %arg0, %arg1, %c0_i32, %c0_i32_0 : i32, i32, i32, i32
  }
  func.func @transform_2(%arg0: i32, %arg1: i32) -> (i32, i32, i32, i32) {
    %c1_i32 = arith.constant 1 : i32
    %0 = arith.addi %arg1, %c1_i32 : i32
    %c8_i32 = arith.constant 8 : i32
    %1 = arith.muli %0, %c8_i32 : i32
    %c15_i32 = arith.constant 15 : i32
    %2 = arith.minsi %1, %c15_i32 : i32
    %c0_i32 = arith.constant 0 : i32
    %c0_i32_0 = arith.constant 0 : i32
    %c0_i32_1 = arith.constant 0 : i32
    return %arg0, %2, %c0_i32, %c0_i32_0 : i32, i32, i32, i32
  }
  func.func @transform_3(%arg0: i32, %arg1: i32) -> (i32, i32, i32) {
    %c0_i32 = arith.constant 0 : i32
    %c0_i32_0 = arith.constant 0 : i32
    %c0_i32_1 = arith.constant 0 : i32
    %c0_i32_2 = arith.constant 0 : i32
    return %c0_i32, %c0_i32_0, %c0_i32_1 : i32, i32, i32
  }
  func.func @transform_4(%arg0: i32, %arg1: i32) -> (i32, i32, i32, i32) {
    %c0_i32 = arith.constant 0 : i32
    %c0_i32_0 = arith.constant 0 : i32
    %c0_i32_1 = arith.constant 0 : i32
    return %arg0, %arg1, %c0_i32, %c0_i32_0 : i32, i32, i32, i32
  }
  func.func @transform_5(%arg0: i32, %arg1: i32) -> (i32, i32, i32, i32) {
    %c0_i32 = arith.constant 0 : i32
    %c0_i32_0 = arith.constant 0 : i32
    %c0_i32_1 = arith.constant 0 : i32
    return %arg0, %arg1, %c0_i32, %c0_i32_0 : i32, i32, i32, i32
  }
}

module attributes {stable_mosaic.version = 11 : i64} {
  func.func @bn1_conv2_stats_kernel(%arg0: i32, %arg1: i32, %arg2: memref<1x1x16x128xbf16, #tpu.memory_space<vmem>>, %arg3: memref<1x8x16x128xbf16, #tpu.memory_space<vmem>>, %arg4: memref<1x1x16x128xbf16, #tpu.memory_space<vmem>>, %arg5: memref<1x128xf32, #tpu.memory_space<vmem>>, %arg6: memref<1x128xf32, #tpu.memory_space<vmem>>, %arg7: memref<3x384x128xbf16, #tpu.memory_space<vmem>>, %arg8: memref<1x8x16x128xbf16, #tpu.memory_space<vmem>>, %arg9: memref<1x1x2x128xf32, #tpu.memory_space<vmem>>) attributes {dimension_semantics = [#tpu.dimension_semantics<parallel>, #tpu.dimension_semantics<parallel>], iteration_bounds = array<i64: 2, 2>, scalar_prefetch = 0 : i64, scratch_operands = 0 : i64, tpu.core_type = #tpu.core_type<tc>, window_params = [{transform_indices = @transform_0, window_bounds = array<i64: 1, 1, 16, 128>}, {transform_indices = @transform_1, window_bounds = array<i64: 1, 8, 16, 128>}, {transform_indices = @transform_2, window_bounds = array<i64: 1, 1, 16, 128>}, {pipeline_mode = #tpu.pipeline_mode<synchronous>, transform_indices = @transform_3, window_bounds = array<i64: 1, 128>}, {pipeline_mode = #tpu.pipeline_mode<synchronous>, transform_indices = @transform_4, window_bounds = array<i64: 1, 128>}, {pipeline_mode = #tpu.pipeline_mode<synchronous>, transform_indices = @transform_5, window_bounds = array<i64: 3, 384, 128>}, {transform_indices = @transform_6, window_bounds = array<i64: 1, 8, 16, 128>}, {transform_indices = @transform_7, window_bounds = array<i64: 1, 1, 2, 128>}]} {
    %c0 = arith.constant 0 : index
    %c0_0 = arith.constant 0 : index
    %c0_1 = arith.constant 0 : index
    %c0_2 = arith.constant 0 : index
    %0 = vector.load %arg2[%c0, %c0_0, %c0_1, %c0_2] : memref<1x1x16x128xbf16, #tpu.memory_space<vmem>>, vector<1x1x16x128xbf16>
    %1 = vector.shape_cast %0 : vector<1x1x16x128xbf16> to vector<1x16x128xbf16>
    %c0_3 = arith.constant 0 : index
    %c0_4 = arith.constant 0 : index
    %c0_5 = arith.constant 0 : index
    %c0_6 = arith.constant 0 : index
    %2 = vector.load %arg3[%c0_3, %c0_4, %c0_5, %c0_6] : memref<1x8x16x128xbf16, #tpu.memory_space<vmem>>, vector<1x8x16x128xbf16>
    %3 = vector.shape_cast %2 : vector<1x8x16x128xbf16> to vector<8x16x128xbf16>
    %c0_7 = arith.constant 0 : index
    %c0_8 = arith.constant 0 : index
    %c0_9 = arith.constant 0 : index
    %c0_10 = arith.constant 0 : index
    %4 = vector.load %arg4[%c0_7, %c0_8, %c0_9, %c0_10] : memref<1x1x16x128xbf16, #tpu.memory_space<vmem>>, vector<1x1x16x128xbf16>
    %5 = vector.shape_cast %4 : vector<1x1x16x128xbf16> to vector<1x16x128xbf16>
    %6 = tpu.concatenate %1, %3, %5 in 0 : vector<1x16x128xbf16>, vector<8x16x128xbf16>, vector<1x16x128xbf16> -> vector<10x16x128xbf16>
    %7 = arith.extf %6 : vector<10x16x128xbf16> to vector<10x16x128xf32>
    %c0_11 = arith.constant 0 : index
    %c0_12 = arith.constant 0 : index
    %8 = vector.load %arg5[%c0_11, %c0_12] : memref<1x128xf32, #tpu.memory_space<vmem>>, vector<1x128xf32>
    %9 = vector.shape_cast %8 : vector<1x128xf32> to vector<1x1x128xf32>
    %10 = vector.broadcast %9 : vector<1x1x128xf32> to vector<10x16x128xf32>
    %11 = arith.mulf %7, %10 : vector<10x16x128xf32>
    %c0_13 = arith.constant 0 : index
    %c0_14 = arith.constant 0 : index
    %12 = vector.load %arg6[%c0_13, %c0_14] : memref<1x128xf32, #tpu.memory_space<vmem>>, vector<1x128xf32>
    %13 = vector.shape_cast %12 : vector<1x128xf32> to vector<1x1x128xf32>
    %14 = vector.broadcast %13 : vector<1x1x128xf32> to vector<10x16x128xf32>
    %15 = arith.addf %11, %14 : vector<10x16x128xf32>
    %cst = arith.constant 0.000000e+00 : f32
    %16 = vector.broadcast %cst : f32 to vector<10x16x128xf32>
    %17 = arith.maximumf %15, %16 : vector<10x16x128xf32>
    %18 = tpu.iota {dimensions = array<i32: 0>} : vector<10x1x1xi32>
    %c1_i32 = arith.constant 1 : i32
    %19 = vector.broadcast %c1_i32 : i32 to vector<10x1x1xi32>
    %20 = arith.cmpi sge, %18, %19 : vector<10x1x1xi32>
    %c0_i32 = arith.constant 0 : i32
    %21 = arith.cmpi sgt, %arg1, %c0_i32 : i32
    %22 = vector.broadcast %21 : i1 to vector<10x1x1xi1>
    %23 = arith.ori %20, %22 : vector<10x1x1xi1>
    %c8_i32 = arith.constant 8 : i32
    %24 = vector.broadcast %c8_i32 : i32 to vector<10x1x1xi32>
    %25 = arith.cmpi sle, %18, %24 : vector<10x1x1xi32>
    %c1_i32_15 = arith.constant 1 : i32
    %26 = arith.cmpi slt, %arg1, %c1_i32_15 : i32
    %27 = vector.broadcast %26 : i1 to vector<10x1x1xi1>
    %28 = arith.ori %25, %27 : vector<10x1x1xi1>
    %29 = arith.andi %23, %28 : vector<10x1x1xi1>
    %cst_16 = arith.constant 0.000000e+00 : f32
    %30 = vector.shape_cast %29 : vector<10x1x1xi1> to vector<10x1x1xi1>
    %31 = vector.broadcast %30 : vector<10x1x1xi1> to vector<10x16x128xi1>
    %32 = vector.broadcast %cst_16 : f32 to vector<10x16x128xf32>
    %33 = arith.select %31, %17, %32 : vector<10x16x128xi1>, vector<10x16x128xf32>
    %34 = arith.truncf %33 : vector<10x16x128xf32> to vector<10x16x128xbf16>
    %cst_17 = arith.constant 0.000000e+00 : bf16
    %35 = vector.broadcast %cst_17 : bf16 to vector<10x1x128xbf16>
    %36 = tpu.concatenate %35, %34, %35 in 1 : vector<10x1x128xbf16>, vector<10x16x128xbf16>, vector<10x1x128xbf16> -> vector<10x18x128xbf16>
    %cst_18 = arith.constant 0.000000e+00 : f32
    %37 = vector.broadcast %cst_18 : f32 to vector<128x128xf32>
    %38 = vector.extract_strided_slice %36 {offsets = [0, 0, 0], sizes = [8, 16, 128], strides = [1, 1, 1]} : vector<10x18x128xbf16> to vector<8x16x128xbf16>
    %39 = vector.shape_cast %38 : vector<8x16x128xbf16> to vector<128x128xbf16>
    %40 = vector.extract_strided_slice %36 {offsets = [0, 1, 0], sizes = [8, 16, 128], strides = [1, 1, 1]} : vector<10x18x128xbf16> to vector<8x16x128xbf16>
    %41 = vector.shape_cast %40 : vector<8x16x128xbf16> to vector<128x128xbf16>
    %42 = vector.extract_strided_slice %36 {offsets = [0, 2, 0], sizes = [8, 16, 128], strides = [1, 1, 1]} : vector<10x18x128xbf16> to vector<8x16x128xbf16>
    %43 = vector.shape_cast %42 : vector<8x16x128xbf16> to vector<128x128xbf16>
    %44 = tpu.concatenate %39, %41, %43 in 1 : vector<128x128xbf16>, vector<128x128xbf16>, vector<128x128xbf16> -> vector<128x384xbf16>
    %c0_19 = arith.constant 0 : index
    %c0_20 = arith.constant 0 : index
    %c0_21 = arith.constant 0 : index
    %45 = vector.load %arg7[%c0_19, %c0_20, %c0_21] : memref<3x384x128xbf16, #tpu.memory_space<vmem>>, vector<1x384x128xbf16>
    %46 = vector.shape_cast %45 : vector<1x384x128xbf16> to vector<384x128xbf16>
    %cst_22 = arith.constant dense<0.000000e+00> : vector<128x128xf32>
    %47 = tpu.matmul %44, %46, %cst_22 {dimension_numbers = #tpu.dot_dimension_numbers<[1], [0], [0], [1], [0, 0, 1, 1], [], []>} : vector<128x384xbf16>, vector<384x128xbf16>, vector<128x128xf32> -> vector<128x128xf32>
    %48 = arith.addf %37, %47 : vector<128x128xf32>
    %49 = vector.extract_strided_slice %36 {offsets = [1, 0, 0], sizes = [8, 16, 128], strides = [1, 1, 1]} : vector<10x18x128xbf16> to vector<8x16x128xbf16>
    %50 = vector.shape_cast %49 : vector<8x16x128xbf16> to vector<128x128xbf16>
    %51 = vector.extract_strided_slice %36 {offsets = [1, 1, 0], sizes = [8, 16, 128], strides = [1, 1, 1]} : vector<10x18x128xbf16> to vector<8x16x128xbf16>
    %52 = vector.shape_cast %51 : vector<8x16x128xbf16> to vector<128x128xbf16>
    %53 = vector.extract_strided_slice %36 {offsets = [1, 2, 0], sizes = [8, 16, 128], strides = [1, 1, 1]} : vector<10x18x128xbf16> to vector<8x16x128xbf16>
    %54 = vector.shape_cast %53 : vector<8x16x128xbf16> to vector<128x128xbf16>
    %55 = tpu.concatenate %50, %52, %54 in 1 : vector<128x128xbf16>, vector<128x128xbf16>, vector<128x128xbf16> -> vector<128x384xbf16>
    %c1 = arith.constant 1 : index
    %c0_23 = arith.constant 0 : index
    %c0_24 = arith.constant 0 : index
    %56 = vector.load %arg7[%c1, %c0_23, %c0_24] : memref<3x384x128xbf16, #tpu.memory_space<vmem>>, vector<1x384x128xbf16>
    %57 = vector.shape_cast %56 : vector<1x384x128xbf16> to vector<384x128xbf16>
    %cst_25 = arith.constant dense<0.000000e+00> : vector<128x128xf32>
    %58 = tpu.matmul %55, %57, %cst_25 {dimension_numbers = #tpu.dot_dimension_numbers<[1], [0], [0], [1], [0, 0, 1, 1], [], []>} : vector<128x384xbf16>, vector<384x128xbf16>, vector<128x128xf32> -> vector<128x128xf32>
    %59 = arith.addf %48, %58 : vector<128x128xf32>
    %60 = vector.extract_strided_slice %36 {offsets = [2, 0, 0], sizes = [8, 16, 128], strides = [1, 1, 1]} : vector<10x18x128xbf16> to vector<8x16x128xbf16>
    %61 = vector.shape_cast %60 : vector<8x16x128xbf16> to vector<128x128xbf16>
    %62 = vector.extract_strided_slice %36 {offsets = [2, 1, 0], sizes = [8, 16, 128], strides = [1, 1, 1]} : vector<10x18x128xbf16> to vector<8x16x128xbf16>
    %63 = vector.shape_cast %62 : vector<8x16x128xbf16> to vector<128x128xbf16>
    %64 = vector.extract_strided_slice %36 {offsets = [2, 2, 0], sizes = [8, 16, 128], strides = [1, 1, 1]} : vector<10x18x128xbf16> to vector<8x16x128xbf16>
    %65 = vector.shape_cast %64 : vector<8x16x128xbf16> to vector<128x128xbf16>
    %66 = tpu.concatenate %61, %63, %65 in 1 : vector<128x128xbf16>, vector<128x128xbf16>, vector<128x128xbf16> -> vector<128x384xbf16>
    %c2 = arith.constant 2 : index
    %c0_26 = arith.constant 0 : index
    %c0_27 = arith.constant 0 : index
    %67 = vector.load %arg7[%c2, %c0_26, %c0_27] : memref<3x384x128xbf16, #tpu.memory_space<vmem>>, vector<1x384x128xbf16>
    %68 = vector.shape_cast %67 : vector<1x384x128xbf16> to vector<384x128xbf16>
    %cst_28 = arith.constant dense<0.000000e+00> : vector<128x128xf32>
    %69 = tpu.matmul %66, %68, %cst_28 {dimension_numbers = #tpu.dot_dimension_numbers<[1], [0], [0], [1], [0, 0, 1, 1], [], []>} : vector<128x384xbf16>, vector<384x128xbf16>, vector<128x128xf32> -> vector<128x128xf32>
    %70 = arith.addf %59, %69 : vector<128x128xf32>
    %71 = vector.shape_cast %70 : vector<128x128xf32> to vector<8x16x128xf32>
    %72 = arith.truncf %71 : vector<8x16x128xf32> to vector<8x16x128xbf16>
    %c0_29 = arith.constant 0 : index
    %c0_30 = arith.constant 0 : index
    %c0_31 = arith.constant 0 : index
    %c0_32 = arith.constant 0 : index
    %73 = vector.load %arg8[%c0_29, %c0_30, %c0_31, %c0_32] : memref<1x8x16x128xbf16, #tpu.memory_space<vmem>>, vector<1x8x16x128xbf16>
    %74 = vector.shape_cast %73 : vector<1x8x16x128xbf16> to vector<8x16x128xbf16>
    %75 = vector.shape_cast %72 : vector<8x16x128xbf16> to vector<1x8x16x128xbf16>
    tpu.vector_store %arg8[%c0_29, %c0_30, %c0_31, %c0_32], %75 {strides = array<i32>} : memref<1x8x16x128xbf16, #tpu.memory_space<vmem>>, vector<1x8x16x128xbf16>,
    %cst_33 = arith.constant dense<0.000000e+00> : vector<128xf32>
    %76 = vector.multi_reduction <add>, %70, %cst_33 [0] : vector<128x128xf32> to vector<128xf32>
    %77 = vector.shape_cast %76 : vector<128xf32> to vector<1x128xf32>
    %c0_34 = arith.constant 0 : index
    %c0_35 = arith.constant 0 : index
    %c0_36 = arith.constant 0 : index
    %c0_37 = arith.constant 0 : index
    %78 = vector.load %arg9[%c0_34, %c0_35, %c0_36, %c0_37] : memref<1x1x2x128xf32, #tpu.memory_space<vmem>>, vector<1x1x1x128xf32>
    %79 = vector.shape_cast %78 : vector<1x1x1x128xf32> to vector<1x128xf32>
    %80 = vector.shape_cast %77 : vector<1x128xf32> to vector<1x1x1x128xf32>
    tpu.vector_store %arg9[%c0_34, %c0_35, %c0_36, %c0_37], %80 {strides = array<i32>} : memref<1x1x2x128xf32, #tpu.memory_space<vmem>>, vector<1x1x1x128xf32>,
    %81 = arith.mulf %70, %70 : vector<128x128xf32>
    %cst_38 = arith.constant dense<0.000000e+00> : vector<128xf32>
    %82 = vector.multi_reduction <add>, %81, %cst_38 [0] : vector<128x128xf32> to vector<128xf32>
    %83 = vector.shape_cast %82 : vector<128xf32> to vector<1x128xf32>
    %c0_39 = arith.constant 0 : index
    %c0_40 = arith.constant 0 : index
    %c1_41 = arith.constant 1 : index
    %c0_42 = arith.constant 0 : index
    %84 = vector.load %arg9[%c0_39, %c0_40, %c1_41, %c0_42] : memref<1x1x2x128xf32, #tpu.memory_space<vmem>>, vector<1x1x1x128xf32>
    %85 = vector.shape_cast %84 : vector<1x1x1x128xf32> to vector<1x128xf32>
    %86 = vector.shape_cast %83 : vector<1x128xf32> to vector<1x1x1x128xf32>
    tpu.vector_store %arg9[%c0_39, %c0_40, %c1_41, %c0_42], %86 {strides = array<i32>} : memref<1x1x2x128xf32, #tpu.memory_space<vmem>>, vector<1x1x1x128xf32>,
    return
  }
  func.func @transform_0(%arg0: i32, %arg1: i32) -> (i32, i32, i32, i32) {
    %c8_i32 = arith.constant 8 : i32
    %0 = arith.muli %arg1, %c8_i32 : i32
    %c1_i32 = arith.constant 1 : i32
    %1 = arith.subi %0, %c1_i32 : i32
    %c0_i32 = arith.constant 0 : i32
    %2 = arith.maxsi %1, %c0_i32 : i32
    %c0_i32_0 = arith.constant 0 : i32
    %c0_i32_1 = arith.constant 0 : i32
    %c0_i32_2 = arith.constant 0 : i32
    return %arg0, %2, %c0_i32_0, %c0_i32_1 : i32, i32, i32, i32
  }
  func.func @transform_1(%arg0: i32, %arg1: i32) -> (i32, i32, i32, i32) {
    %c0_i32 = arith.constant 0 : i32
    %c0_i32_0 = arith.constant 0 : i32
    %c0_i32_1 = arith.constant 0 : i32
    return %arg0, %arg1, %c0_i32, %c0_i32_0 : i32, i32, i32, i32
  }
  func.func @transform_2(%arg0: i32, %arg1: i32) -> (i32, i32, i32, i32) {
    %c1_i32 = arith.constant 1 : i32
    %0 = arith.addi %arg1, %c1_i32 : i32
    %c8_i32 = arith.constant 8 : i32
    %1 = arith.muli %0, %c8_i32 : i32
    %c15_i32 = arith.constant 15 : i32
    %2 = arith.minsi %1, %c15_i32 : i32
    %c0_i32 = arith.constant 0 : i32
    %c0_i32_0 = arith.constant 0 : i32
    %c0_i32_1 = arith.constant 0 : i32
    return %arg0, %2, %c0_i32, %c0_i32_0 : i32, i32, i32, i32
  }
  func.func @transform_3(%arg0: i32, %arg1: i32) -> (i32, i32) {
    %c0_i32 = arith.constant 0 : i32
    %c0_i32_0 = arith.constant 0 : i32
    %c0_i32_1 = arith.constant 0 : i32
    return %c0_i32, %c0_i32_0 : i32, i32
  }
  func.func @transform_4(%arg0: i32, %arg1: i32) -> (i32, i32) {
    %c0_i32 = arith.constant 0 : i32
    %c0_i32_0 = arith.constant 0 : i32
    %c0_i32_1 = arith.constant 0 : i32
    return %c0_i32, %c0_i32_0 : i32, i32
  }
  func.func @transform_5(%arg0: i32, %arg1: i32) -> (i32, i32, i32) {
    %c0_i32 = arith.constant 0 : i32
    %c0_i32_0 = arith.constant 0 : i32
    %c0_i32_1 = arith.constant 0 : i32
    %c0_i32_2 = arith.constant 0 : i32
    return %c0_i32, %c0_i32_0, %c0_i32_1 : i32, i32, i32
  }
  func.func @transform_6(%arg0: i32, %arg1: i32) -> (i32, i32, i32, i32) {
    %c0_i32 = arith.constant 0 : i32
    %c0_i32_0 = arith.constant 0 : i32
    %c0_i32_1 = arith.constant 0 : i32
    return %arg0, %arg1, %c0_i32, %c0_i32_0 : i32, i32, i32, i32
  }
  func.func @transform_7(%arg0: i32, %arg1: i32) -> (i32, i32, i32, i32) {
    %c0_i32 = arith.constant 0 : i32
    %c0_i32_0 = arith.constant 0 : i32
    %c0_i32_1 = arith.constant 0 : i32
    return %arg0, %arg1, %c0_i32, %c0_i32_0 : i32, i32, i32, i32
  }
}

module attributes {stable_mosaic.version = 11 : i64} {
  func.func @bn2_relu_kernel(%arg0: i32, %arg1: i32, %arg2: memref<1x8x16x128xbf16, #tpu.memory_space<vmem>>, %arg3: memref<1x8xf32, #tpu.memory_space<vmem>>, %arg4: memref<1x8xf32, #tpu.memory_space<vmem>>, %arg5: memref<1x8x16x8xf32, #tpu.memory_space<vmem>>) attributes {dimension_semantics = [#tpu.dimension_semantics<parallel>, #tpu.dimension_semantics<parallel>], iteration_bounds = array<i64: 2, 2>, scalar_prefetch = 0 : i64, scratch_operands = 0 : i64, tpu.core_type = #tpu.core_type<tc>, window_params = [{transform_indices = @transform_0, window_bounds = array<i64: 1, 8, 16, 128>}, {pipeline_mode = #tpu.pipeline_mode<synchronous>, transform_indices = @transform_1, window_bounds = array<i64: 1, 8>}, {pipeline_mode = #tpu.pipeline_mode<synchronous>, transform_indices = @transform_2, window_bounds = array<i64: 1, 8>}, {transform_indices = @transform_3, window_bounds = array<i64: 1, 8, 16, 8>}]} {
    %c0 = arith.constant 0 : index
    %c0_0 = arith.constant 0 : index
    %c0_1 = arith.constant 0 : index
    %c0_2 = arith.constant 0 : index
    %0 = vector.load %arg2[%c0, %c0_0, %c0_1, %c0_2] : memref<1x8x16x128xbf16, #tpu.memory_space<vmem>>, vector<1x8x16x128xbf16>
    %1 = vector.shape_cast %0 : vector<1x8x16x128xbf16> to vector<8x16x128xbf16>
    %2 = vector.extract_strided_slice %1 {offsets = [0, 0, 0], sizes = [8, 16, 8], strides = [1, 1, 1]} : vector<8x16x128xbf16> to vector<8x16x8xbf16>
    %3 = arith.extf %2 : vector<8x16x8xbf16> to vector<8x16x8xf32>
    %c0_3 = arith.constant 0 : index
    %c0_4 = arith.constant 0 : index
    %4 = vector.load %arg3[%c0_3, %c0_4] : memref<1x8xf32, #tpu.memory_space<vmem>>, vector<1x8xf32>
    %5 = vector.shape_cast %4 : vector<1x8xf32> to vector<1x1x8xf32>
    %6 = vector.broadcast %5 : vector<1x1x8xf32> to vector<8x16x8xf32>
    %7 = arith.mulf %3, %6 : vector<8x16x8xf32>
    %c0_5 = arith.constant 0 : index
    %c0_6 = arith.constant 0 : index
    %8 = vector.load %arg4[%c0_5, %c0_6] : memref<1x8xf32, #tpu.memory_space<vmem>>, vector<1x8xf32>
    %9 = vector.shape_cast %8 : vector<1x8xf32> to vector<1x1x8xf32>
    %10 = vector.broadcast %9 : vector<1x1x8xf32> to vector<8x16x8xf32>
    %11 = arith.addf %7, %10 : vector<8x16x8xf32>
    %cst = arith.constant 0.000000e+00 : f32
    %12 = vector.broadcast %cst : f32 to vector<8x16x8xf32>
    %13 = arith.maximumf %11, %12 : vector<8x16x8xf32>
    %c0_7 = arith.constant 0 : index
    %c0_8 = arith.constant 0 : index
    %c0_9 = arith.constant 0 : index
    %c0_10 = arith.constant 0 : index
    %14 = vector.load %arg5[%c0_7, %c0_8, %c0_9, %c0_10] : memref<1x8x16x8xf32, #tpu.memory_space<vmem>>, vector<1x8x16x8xf32>
    %15 = vector.shape_cast %14 : vector<1x8x16x8xf32> to vector<8x16x8xf32>
    %16 = vector.shape_cast %13 : vector<8x16x8xf32> to vector<1x8x16x8xf32>
    tpu.vector_store %arg5[%c0_7, %c0_8, %c0_9, %c0_10], %16 {strides = array<i32>} : memref<1x8x16x8xf32, #tpu.memory_space<vmem>>, vector<1x8x16x8xf32>,
    return
  }
  func.func @transform_0(%arg0: i32, %arg1: i32) -> (i32, i32, i32, i32) {
    %c0_i32 = arith.constant 0 : i32
    %c0_i32_0 = arith.constant 0 : i32
    %c0_i32_1 = arith.constant 0 : i32
    return %arg0, %arg1, %c0_i32, %c0_i32_0 : i32, i32, i32, i32
  }
  func.func @transform_1(%arg0: i32, %arg1: i32) -> (i32, i32) {
    %c0_i32 = arith.constant 0 : i32
    %c0_i32_0 = arith.constant 0 : i32
    %c0_i32_1 = arith.constant 0 : i32
    return %c0_i32, %c0_i32_0 : i32, i32
  }
  func.func @transform_2(%arg0: i32, %arg1: i32) -> (i32, i32) {
    %c0_i32 = arith.constant 0 : i32
    %c0_i32_0 = arith.constant 0 : i32
    %c0_i32_1 = arith.constant 0 : i32
    return %c0_i32, %c0_i32_0 : i32, i32
  }
  func.func @transform_3(%arg0: i32, %arg1: i32) -> (i32, i32, i32, i32) {
    %c0_i32 = arith.constant 0 : i32
    %c0_i32_0 = arith.constant 0 : i32
    %c0_i32_1 = arith.constant 0 : i32
    return %arg0, %arg1, %c0_i32, %c0_i32_0 : i32, i32, i32, i32
  }
}

</mosaic_0001>

<bundles_post_ra>
// kernel: double_conv.5
= control target key start
LH: loop header
LB: loop body
LE: loop exit
PB: predicated region body
PF: predicated region fallthrough
CT: control target
= control target key end

     0   :  { %s581_s12 = smov 0   ;;  %s583_s13 = smov 0   ;;  %s722_s0 = inlined_call_operand.vmem [shape: bf16[2,16,16,128], index: 0, kind: input, shape index: {}]   ;;  %s723_s1 = inlined_call_operand.vmem [shape: f32[1,8], index: 1, kind: input, shape index: {}]   ;;  %s724_s2 = inlined_call_operand.vmem [shape: f32[1,8], index: 2, kind: input, shape index: {}]   ;;  %s725_s3 = inlined_call_operand.vmem [shape: f32[2,16,16,8], index: 3, kind: output, shape index: {}]  }
   0x1   :  { %s585_s14 = smov 0   ;;  %s587_s15 = smov 0  }
   0x2   :  { %s589_s16 = smov 0  }
   0x3 LB: > { %s22_s17 = sadd.s32 1, %s551_s14  ;;  %s25_s18 = sadd.s32 1, %s555_s15  ;;  %s559_s16 = sphi %s589_s16, %s13_s16   ;;  %s555_s15 = sphi %s587_s15, %s729_s15   ;;  %s551_s14 = sphi %s585_s14, %s728_s14   ;;  %s547_s13 = sphi %s583_s13, %s727_s13   ;;  %s543_s12 = sphi %s581_s12, %s726_s12  }
   0x4   : > { %p23_p0 = scmp.ge.s32.totalorder %s22_s17, 2  ;;  %p429_p1 = scmp.ge.s32.totalorder %s559_s16, 1 }
   0x5   : > { %p159_p2 = scmp.lt.s32.totalorder %s559_s16, 5 }
   0x6   : > { %s731_s17 = smov (%p23_p0, %s22_s17), 0  ;;  %s733_s18 = smov (!%p23_p0, %s25_s18), %s555_s15 }
   0x7   : > { %p160_p3 = pnand %p429_p1, %p159_p2  ;;  %p27_p4 = scmp.ge.s32.totalorder %s733_s18, 2 }
   0x8   : > { %s430_s19 = sshll.u32 (!%p160_p3), %s543_s12, 3  ;;  %p194_p5 = scmp.lt.s32.totalorder (!%p160_p3), %s547_s13, 1 }
   0x9   : > { %s735_s18 = smov (%p27_p4, %s733_s18), 0  ;;  %163 = sbr.rel (%p160_p3) target bundleno = 40 (0x28), region = 32 }
   0xa   : > { %p196_p6 = scmp.lt.s32.totalorder (!%p160_p3), %s430_s19, 15 }
   0xe   : > { %s737_s13 = smov (!%p194_p5, %s547_s13), 1  ;;  %s739_s19 = smov (!%p196_p6, %s430_s19), 15  ;;  %v622_v0 = vld [vmem:[%s723_s1] ss:$0 sm:$0xff]  ;;  %vm309_vm0 = vcmask 64512  }
   0xf   : > { %s432_s20 = sshll.u32 %s737_s13, 5  ;;  %s431_s21 = sshll.u32 %s739_s19, 1  ;;  %v631_v9 = vld [vmem:[%s724_s2] ss:$0 sm:$0xff] }
  0x10   : > { %s611_s22 = sadd.s32 %s432_s20, %s431_s21 }
  0x11   : > { %s433_s23 = sshll.u32 %s611_s22, 2  ;;  %s437_s4 = sshll.u32 %s611_s22, 3 }
  0x12   : > { %s617_s26 = scalar_lea.vmem %s722_s0, %s433_s23  ;;  %s649_s7 = scalar_lea.vmem %s725_s3, %s437_s4 }
  0x13   : > { %v443_v1 = vld [vmem:[%s617_s26] sm:$0xff]   ;;  %v474_v2 = vld [vmem:[%s617_s26 + $0x8] sm:$0xff]   ;;  %v475_v3 = vld [vmem:[%s617_s26 + $0x10] sm:$0xff]  }
  0x14   : > { %v444_v4 = vunpack.c.l.bf16 %v443_v1  ;;  %v445_v5 = vunpack.c.h.bf16 %v443_v1  ;;  %v448_v6 = vunpack.c.l.bf16 %v474_v2  ;;  %v449_v7 = vunpack.c.h.bf16 %v474_v2  ;;  %v476_v8 = vld [vmem:[%s617_s26 + $0x18] sm:$0xff]   ;;  %v477_v30 = vld [vmem:[%s617_s26 + $0x20] sm:$0xff]   ;;  %v478_v31 = vld [vmem:[%s617_s26 + $0x28] sm:$0xff]  }
  0x15   : > { %v452_v10 = vunpack.c.l.bf16 %v475_v3  ;;  %v453_v11 = vunpack.c.h.bf16 %v475_v3  ;;  %v456_v12 = vunpack.c.l.bf16 %v476_v8  ;;  %v457_v13 = vunpack.c.h.bf16 %v476_v8  ;;  %v479_v36 = vld [vmem:[%s617_s26 + $0x30] sm:$0xff]   ;;  %v480_v37 = vld [vmem:[%s617_s26 + $0x38] sm:$0xff]  }
  0x16   : > { %v254_v14 = vmul.f32 %v444_v4, %v622_v0  ;;  %v255_v15 = vmul.f32 %v445_v5, %v622_v0  ;;  %v256_v16 = vmul.f32 %v448_v6, %v622_v0  ;;  %v257_v17 = vmul.f32 %v449_v7, %v622_v0 }
  0x17   : > { %v258_v18 = vmul.f32 %v452_v10, %v622_v0  ;;  %v259_v19 = vmul.f32 %v453_v11, %v622_v0  ;;  %v260_v20 = vmul.f32 %v456_v12, %v622_v0  ;;  %v261_v21 = vmul.f32 %v457_v13, %v622_v0 }
  0x18   : > { %v277_v22 = vadd.f32 %v631_v9, %v254_v14  ;;  %v278_v23 = vadd.f32 %v631_v9, %v255_v15  ;;  %v279_v24 = vadd.f32 %v631_v9, %v256_v16  ;;  %v280_v25 = vadd.f32 %v631_v9, %v257_v17 }
  0x19   : > { %v281_v26 = vadd.f32 %v631_v9, %v258_v18  ;;  %v282_v27 = vadd.f32 %v631_v9, %v259_v19  ;;  %v283_v28 = vadd.f32 %v631_v9, %v260_v20  ;;  %v284_v29 = vadd.f32 %v631_v9, %v261_v21 }
  0x1a   : > { %v293_v32 = vmax.f32 %v277_v22, 0.0  ;;  %v294_v33 = vmax.f32 %v278_v23, 0.0  ;;  %v295_v34 = vmax.f32 %v279_v24, 0.0  ;;  %v296_v35 = vmax.f32 %v280_v25, 0.0 }
  0x1b   : > { %v297_v38 = vmax.f32 %v281_v26, 0.0  ;;  %v298_v39 = vmax.f32 %v282_v27, 0.0  ;;  %v299_v40 = vmax.f32 %v283_v28, 0.0  ;;  %v300_v41 = vmax.f32 %v284_v29, 0.0 }
  0x1c   : > { %310 = vst.msk [vmem:[%s649_s7] sm:$0xff] %vm309_vm0, %v293_v32  ;;  %311 = vst.msk [vmem:[%s649_s7 + $0x8] sm:$0xff] %vm309_vm0, %v294_v33  ;;  %v460_v42 = vunpack.c.l.bf16 %v477_v30  ;;  %v461_v43 = vunpack.c.h.bf16 %v477_v30  ;;  %v464_v44 = vunpack.c.l.bf16 %v478_v31  ;;  %v465_v45 = vunpack.c.h.bf16 %v478_v31 }
  0x1d   : > { %312 = vst.msk [vmem:[%s649_s7 + $0x10] sm:$0xff] %vm309_vm0, %v295_v34  ;;  %313 = vst.msk [vmem:[%s649_s7 + $0x18] sm:$0xff] %vm309_vm0, %v296_v35  ;;  %v468_v46 = vunpack.c.l.bf16 %v479_v36  ;;  %v469_v47 = vunpack.c.h.bf16 %v479_v36  ;;  %v472_v48 = vunpack.c.l.bf16 %v480_v37  ;;  %v473_v49 = vunpack.c.h.bf16 %v480_v37 }
  0x1e   : > { %314 = vst.msk [vmem:[%s649_s7 + $0x20] sm:$0xff] %vm309_vm0, %v297_v38  ;;  %315 = vst.msk [vmem:[%s649_s7 + $0x28] sm:$0xff] %vm309_vm0, %v298_v39  ;;  %v262_v50 = vmul.f32 %v460_v42, %v622_v0  ;;  %v263_v51 = vmul.f32 %v461_v43, %v622_v0  ;;  %v264_v52 = vmul.f32 %v464_v44, %v622_v0 }
  0x1f   : > { %316 = vst.msk [vmem:[%s649_s7 + $0x30] sm:$0xff] %vm309_vm0, %v299_v40  ;;  %317 = vst.msk [vmem:[%s649_s7 + $0x38] sm:$0xff] %vm309_vm0, %v300_v41  ;;  %v265_v53 = vmul.f32 %v465_v45, %v622_v0  ;;  %v266_v54 = vmul.f32 %v468_v46, %v622_v0  ;;  %v267_v55 = vmul.f32 %v469_v47, %v622_v0 }
  0x20   : > { %v268_v56 = vmul.f32 %v472_v48, %v622_v0  ;;  %v269_v57 = vmul.f32 %v473_v49, %v622_v0  ;;  %v285_v58 = vadd.f32 %v631_v9, %v262_v50  ;;  %v286_v59 = vadd.f32 %v631_v9, %v263_v51 }
  0x21   : > { %v287_v60 = vadd.f32 %v631_v9, %v264_v52  ;;  %v288_v61 = vadd.f32 %v631_v9, %v265_v53  ;;  %v289_v62 = vadd.f32 %v631_v9, %v266_v54  ;;  %v290_v63 = vadd.f32 %v631_v9, %v267_v55 }
  0x22   : > { %v291_v0 = vadd.f32 %v631_v9, %v268_v56  ;;  %v292_v1 = vadd.f32 %v631_v9, %v269_v57  ;;  %v301_v2 = vmax.f32 %v285_v58, 0.0  ;;  %v302_v3 = vmax.f32 %v286_v59, 0.0 }
  0x23   : > { %v303_v4 = vmax.f32 %v287_v60, 0.0  ;;  %v304_v5 = vmax.f32 %v288_v61, 0.0  ;;  %v305_v6 = vmax.f32 %v289_v62, 0.0  ;;  %v306_v7 = vmax.f32 %v290_v63, 0.0 }
  0x24   : > { %v307_v8 = vmax.f32 %v291_v0, 0.0  ;;  %v308_v10 = vmax.f32 %v292_v1, 0.0  ;;  %318 = vst.msk [vmem:[%s649_s7 + $0x40] sm:$0xff] %vm309_vm0, %v301_v2  ;;  %319 = vst.msk [vmem:[%s649_s7 + $0x48] sm:$0xff] %vm309_vm0, %v302_v3 }
  0x25   : > { %320 = vst.msk [vmem:[%s649_s7 + $0x50] sm:$0xff] %vm309_vm0, %v303_v4  ;;  %321 = vst.msk [vmem:[%s649_s7 + $0x58] sm:$0xff] %vm309_vm0, %v304_v5 }
  0x26   : > { %322 = vst.msk [vmem:[%s649_s7 + $0x60] sm:$0xff] %vm309_vm0, %v305_v6  ;;  %323 = vst.msk [vmem:[%s649_s7 + $0x68] sm:$0xff] %vm309_vm0, %v306_v7 }
  0x27   : > { %324 = vst.msk [vmem:[%s649_s7 + $0x70] sm:$0xff] %vm309_vm0, %v307_v8  ;;  %325 = vst.msk [vmem:[%s649_s7 + $0x78] sm:$0xff] %vm309_vm0, %v308_v10 }
  0x28 PF: > { %s13_s16 = sadd.s32 1, %s559_s16   ;;  %s726_s12 = smov %s551_s14 }
  0x29   : > { %p10_p7 = scmp.ge.s32.totalorder %s13_s16, 6   ;;  %s727_s13 = smov %s555_s15 }
  0x2a   : > { %s728_s14 = smov %s731_s17  ;;  %s729_s15 = smov %s735_s18 }
  0x2b   :  { %12 = sbr.rel (!%p10_p7) target bundleno = 3 (0x3), region = 62 }

// kernel: double_conv.4
= control target key start
LH: loop header
LB: loop body
LE: loop exit
PB: predicated region body
PF: predicated region fallthrough
CT: control target
= control target key end

     0   :  { %s3308_s24 = smov 0   ;;  %s3310_s25 = smov 0   ;;  %s4116_s0 = inlined_call_operand.vmem [shape: bf16[2,16,16,128], index: 0, kind: input, shape index: {}, may-alias: {0,1,2}]   ;;  %s4117_s1 = inlined_call_operand.vmem [shape: bf16[2,16,16,128], index: 1, kind: input, shape index: {}, may-alias: {0,1,2}]   ;;  %s4118_s2 = inlined_call_operand.vmem [shape: bf16[2,16,16,128], index: 2, kind: input, shape index: {}, may-alias: {0,1,2}]   ;;  %s4119_s3 = inlined_call_operand.vmem [shape: f32[1,128], index: 3, kind: input, shape index: {}]   ;;  %s4120_s4 = inlined_call_operand.vmem [shape: f32[1,128], index: 4, kind: input, shape index: {}]   ;;  %s4121_s5 = inlined_call_operand.vmem [shape: bf16[3,384,128], index: 5, kind: input, shape index: {}]   ;;  %s4122_s6 = inlined_call_operand.vmem [shape: bf16[2,16,16,128], index: 6, kind: output, shape index: {0}]   ;;  %s4123_s7 = inlined_call_operand.vmem [shape: f32[2,2,2,128], index: 7, kind: output, shape index: {1}]  }
   0x1   :  { %s3312_s26 = smov 0   ;;  %s3314_s27 = smov 0  }
   0x2   :  { %s3316_s28 = smov 0  }
   0x3 LB: > { %s27_s29 = sadd.s32 1, %s3258_s26  ;;  %s30_s30 = sadd.s32 1, %s3262_s27  ;;  %s3266_s28 = sphi %s3316_s28, %s18_s28   ;;  %s3262_s27 = sphi %s3314_s27, %s4156_s27   ;;  %s3258_s26 = sphi %s3312_s26, %s4155_s26   ;;  %s3254_s25 = sphi %s3310_s25, %s4154_s25   ;;  %s3250_s24 = sphi %s3308_s24, %s4153_s24  }
   0x4   : > { %p28_p0 = scmp.ge.s32.totalorder %s27_s29, 2  ;;  %p2444_p1 = scmp.ge.s32.totalorder %s3266_s28, 1 }
   0x5   : > { %p328_p2 = scmp.lt.s32.totalorder %s3266_s28, 5 }
   0x6   : > { %s4158_s29 = smov (%p28_p0, %s27_s29), 0  ;;  %s4160_s30 = smov (!%p28_p0, %s30_s30), %s3262_s27 }
   0x7   : > { %p329_p3 = pnand %p2444_p1, %p328_p2  ;;  %p32_p4 = scmp.ge.s32.totalorder %s4160_s30, 2 }
   0x9   : > { %s4162_s30 = smov (%p32_p4, %s4160_s30), 0  ;;  %332 = sbr.rel (%p329_p3) target bundleno = 425 (0x1a9), region = 44 }
   0xe   : > { %v3154_v0 = vld [vmem:[%s4121_s5 + $0x138] sm:$0xff]   ;;  %s3349_s12 = sshll.u32 %s3250_s24, 3  ;;  %v3157_v3 = vld [vmem:[%s4121_s5 + $0x130] sm:$0xff]   ;;  %p408_p5 = scmp.lt.s32.totalorder %s3254_s25, 1  ;;  %v3160_v6 = vld [vmem:[%s4121_s5 + $0x128] sm:$0xff]   ;;  %vm715_vm0 = vcmask 1040384  }
   0xf   : > { %v3155_v1 = vld [vmem:[%s4121_s5 + $0x178] sm:$0xff]   ;;  %2778 = vmatprep.subr.bf16.mxu0 %v3154_v0  ;;  %v3158_v4 = vld [vmem:[%s4121_s5 + $0x170] sm:$0xff]   ;;  %p424_p6 = scmp.lt.s32.totalorder %s3349_s12, 15  ;;  %v3161_v7 = vld [vmem:[%s4121_s5 + $0x168] sm:$0xff]   ;;  %s3426_s15 = sadd.s32 4294967295, %s3349_s12  ;;  %vm859_vm1 = vcmask 1046528  }
  0x10   : > { %v3156_v2 = vld [vmem:[%s4121_s5 + $0xf8] sm:$0xff]   ;;  %3018 = vmatprep.subr.bf16.mxu1 %v3155_v1  ;;  %v3159_v5 = vld [vmem:[%s4121_s5 + $0xf0] sm:$0xff]   ;;  %s4164_s25 = smov (!%p408_p5, %s3254_s25), 1  ;;  %v3162_v8 = vld [vmem:[%s4121_s5 + $0xe8] sm:$0xff]   ;;  %p406_p7 = scmp.gt.s32.totalorder %s3426_s15, 0 }
  0x11   : > { %2779 = vmatpush3.bf16.msra.mxu0 %v3156_v2  ;;  %3019 = vmatpush3.bf16.msra.mxu1 %v3155_v1  ;;  %s425_s11 = scalar_select %p424_p6, %s3349_s12, 15  ;;  %v3163_v9 = vld [vmem:[%s4121_s5 + $0x120] sm:$0xff]   ;;  %v3166_v12 = vld [vmem:[%s4121_s5 + $0x118] sm:$0xff]   ;;  %v3169_v15 = vld [vmem:[%s4121_s5 + $0x110] sm:$0xff]   ;;  %vm716_vm2 = vsmask.f32 256 }
  0x12   : > { %2780 = vmatprep.subr.bf16.mxu0 %v3157_v3  ;;  %3020 = vmatprep.subr.bf16.mxu1 %v3158_v4  ;;  %v3164_v10 = vld [vmem:[%s4121_s5 + $0x160] sm:$0xff]   ;;  %s3388_s19 = sshll.u32 %s4164_s25, 5  ;;  %v3167_v13 = vld [vmem:[%s4121_s5 + $0x158] sm:$0xff]   ;;  %v3170_v16 = vld [vmem:[%s4121_s5 + $0x150] sm:$0xff]   ;;  %p583_p8 = scmp.gt.s32.totalorder %s3250_s24, 0 }
  0x13   : > { %v3165_v11 = vld [vmem:[%s4121_s5 + $0xe0] sm:$0xff]   ;;  %s2456_s22 = sshll.u32 %s425_s11, 1  ;;  %v3168_v14 = vld [vmem:[%s4121_s5 + $0xd8] sm:$0xff]   ;;  %v3171_v17 = vld [vmem:[%s4121_s5 + $0xd0] sm:$0xff]   ;;  %p2447_p9 = scmp.lt.s32.totalorder %s3426_s15, 15 }
  0x14   : > { %s3400_s13 = sadd.s32 %s2456_s22, %s3388_s19  ;;  %v3172_v18 = vld [vmem:[%s4121_s5 + $0x108] sm:$0xff]   ;;  %v3435_v22 = vld [vmem:[%s4119_s3] ss:$0 sm:$0xff]  ;;  %v3178_v36 = vld [vmem:[%s4121_s5 + $0x78] sm:$0xff]   ;;  %vm738_vm3 = vsmask.f32 7424 }
  0x15   : > { %2781 = vmatpush3.bf16.msra.mxu0 %v3159_v5  ;;  %3021 = vmatpush3.bf16.msra.mxu1 %v3158_v4  ;;  %s2458_s17 = sshll.u32 %s3400_s13, 2  ;;  %v3173_v19 = vld [vmem:[%s4121_s5 + $0x148] sm:$0xff]   ;;  %v3175_v23 = vld [vmem:[%s4121_s5 + $0x100] sm:$0xff]   ;;  %v3466_v39 = vld [vmem:[%s4121_s5 + $0xb8] sm:$0xff]   ;;  %s2667_s22 = sadd.s32 8, %s3349_s12 }
  0x16   : > { %2782 = vmatprep.subr.bf16.mxu0 %v3160_v6  ;;  %3022 = vmatprep.subr.bf16.mxu1 %v3161_v7  ;;  %s3423_s14 = scalar_lea.vmem %s4117_s1, %s2458_s17  ;;  %v3174_v20 = vld [vmem:[%s4121_s5 + $0xc8] sm:$0xff]   ;;  %v3176_v24 = vld [vmem:[%s4121_s5 + $0x140] sm:$0xff]   ;;  %vm3499_vm4 = vmand %vm715_vm0, %vm716_vm2  ;;  %p3807_p10 = scmp.lt.s32.totalorder %s2667_s22, 15 }
  0x17   : > { %v2689_v21 = vld [vmem:[%s3423_s14] sm:$0xff]   ;;  %v2764_v27 = vld [vmem:[%s3423_s14 + $0x8] sm:$0xff]   ;;  %s407_s23 = scalar_select %p406_p7, %s3426_s15, 0  ;;  %v2765_v44 = vld [vmem:[%s3423_s14 + $0x10] sm:$0xff]  }
  0x18   : > { %v2690_v25 = vunpack.c.l.bf16 %v2689_v21  ;;  %v2691_v26 = vunpack.c.h.bf16 %v2689_v21  ;;  %v3448_v28 = vld [vmem:[%s4120_s4] ss:$0 sm:$0xff]  ;;  %v2694_v29 = vunpack.c.l.bf16 %v2764_v27  ;;  %v2695_v30 = vunpack.c.h.bf16 %v2764_v27  ;;  %v2766_v45 = vld [vmem:[%s3423_s14 + $0x18] sm:$0xff]   ;;  %s3478_s8 = scalar_select %p583_p8, 1, 0 }
  0x19   : > { %2783 = vmatpush3.bf16.msra.mxu0 %v3162_v8  ;;  %3023 = vmatpush3.bf16.msra.mxu1 %v3161_v7  ;;  %v3177_v31 = vld [vmem:[%s4121_s5 + $0xc0] sm:$0xff]   ;;  %v2698_v48 = vunpack.c.l.bf16 %v2765_v44  ;;  %v2699_v49 = vunpack.c.h.bf16 %v2765_v44  ;;  %v2702_v51 = vunpack.c.l.bf16 %v2766_v45  ;;  %v2703_v52 = vunpack.c.h.bf16 %v2766_v45  ;;  %s4166_s23 = smov (!%p2447_p9, %s407_s23), 15  ;;  %s4168_s22 = smov (!%p3807_p10, %s2667_s22), 15 }
  0x1a   : > { %2784 = vmatprep.subr.bf16.mxu0 %v3163_v9  ;;  %3024 = vmatprep.subr.bf16.mxu1 %v3164_v10  ;;  %v518_v32 = vmul.f32 %v2690_v25, %v3435_v22  ;;  %v519_v33 = vmul.f32 %v2691_v26, %v3435_v22  ;;  %v520_v34 = vmul.f32 %v2694_v29, %v3435_v22  ;;  %v3494_v3 = vld [vmem:[%s3423_s14 + $0x20] sm:$0xff]   ;;  %v585_v4 = vstv %s3478_s8  ;;  %s2452_s15 = sshll.u32 %s4166_s23, 1  ;;  %v3180_v29 = vld [vmem:[%s4121_s5 + $0x38] sm:$0xff]   ;;  %s4170_s22 = smov (!%p3807_p10, %s4168_s22), 15 }
  0x1b   : > { %v521_v35 = vmul.f32 %v2695_v30, %v3435_v22  ;;  %v522_v54 = vmul.f32 %v2698_v48, %v3435_v22  ;;  %v523_v55 = vmul.f32 %v2699_v49, %v3435_v22  ;;  %v524_v58 = vmul.f32 %v2702_v51, %v3435_v22  ;;  %s3560_s11 = sadd.s32 %s3388_s19, %s2452_s15  ;;  %s2463_s16 = sshll.u32 %s4170_s22, 1 }
  0x1c   : > { %v545_v37 = vadd.f32 %v3448_v28, %v518_v32  ;;  %v546_v38 = vadd.f32 %v3448_v28, %v519_v33  ;;  %v547_v40 = vadd.f32 %v3448_v28, %v520_v34  ;;  %v525_v59 = vmul.f32 %v2703_v52, %v3435_v22  ;;  %s2454_s23 = sshll.u32 %s3560_s11, 2  ;;  %p462_p11 = scmp.lt.s32.totalorder %s3250_s24, 1 }
  0x1d   : > { %2785 = vmatpush3.bf16.msra.mxu0 %v3165_v11  ;;  %3025 = vmatpush3.bf16.msra.mxu1 %v3164_v10  ;;  %v548_v41 = vadd.f32 %v3448_v28, %v521_v35  ;;  %v549_v62 = vadd.f32 %v3448_v28, %v522_v54  ;;  %v550_v63 = vadd.f32 %v3448_v28, %v523_v55  ;;  %v2706_v9 = vunpack.c.l.bf16 %v3494_v3  ;;  %s416_s20 = scalar_lea.vmem %s4116_s0, %s2454_s23  ;;  %s2470_s13 = sshll.u32 %s4164_s25, 1 }
  0x1e   : > { %2786 = vmatprep.subr.bf16.mxu0 %v3166_v12  ;;  %3026 = vmatprep.subr.bf16.mxu1 %v3167_v13  ;;  %v565_v42 = vmax.f32 %v545_v37, 0.0  ;;  %v566_v43 = vmax.f32 %v546_v38, 0.0  ;;  %v567_v46 = vmax.f32 %v547_v40, 0.0  ;;  %v551_v1 = vadd.f32 %v3448_v28, %v524_v58  ;;  %v3181_v37 = vld [vmem:[%s4121_s5 + $0x70] sm:$0xff]   ;;  %s588_s15 = scalar_select %p462_p11, 1, 0 }
  0x1f   : > { %v568_v47 = vmax.f32 %v548_v41, 0.0  ;;  %v552_v2 = vadd.f32 %v3448_v28, %v525_v59  ;;  %v569_v7 = vmax.f32 %v549_v62, 0.0  ;;  %v570_v8 = vmax.f32 %v550_v63, 0.0  ;;  %s4172_s24 = smov (!%p462_p11, %s3250_s24), 1 }
  0x20   : > { %v616_v50 = vpack.c.bf16 %v566_v43, %v565_v42  ;;  %v571_v12 = vmax.f32 %v551_v1, 0.0  ;;  %v2707_v43 = vunpack.c.h.bf16 %v3494_v3  ;;  %vm3667_vm5 = vcmp.eq.s32.totalorder %v585_v4, 1  ;;  %v3195_v4 = vld [vmem:[%s4121_s5 + $0x8] sm:$0xff]  }
  0x21   : > { %2787 = vmatpush3.bf16.msra.mxu0 %v3168_v14  ;;  %3027 = vmatpush3.bf16.msra.mxu1 %v3167_v13  ;;  %v617_v53 = vpack.c.bf16 %v568_v47, %v567_v46  ;;  %v572_v13 = vmax.f32 %v552_v2, 0.0  ;;  %v618_v21 = vpack.c.bf16 %v570_v8, %v569_v7  ;;  %v3182_v46 = vld [vmem:[%s4121_s5 + $0x30] sm:$0xff]   ;;  %v526_v47 = vmul.f32 %v2706_v9, %v3435_v22 }
  0x22   : > { %2788 = vmatprep.subr.bf16.mxu0 %v3169_v15  ;;  %3028 = vmatprep.subr.bf16.mxu1 %v3170_v16  ;;  %v633_v56 = vshrl.u32 %v616_v50, 16  ;;  %v636_v57 = vshll.u32 %v616_v50, 16  ;;  %v527_v62 = vmul.f32 %v2707_v43, %v3435_v22 }
  0x23   : > { %v640_v60 = vshrl.u32 %v617_v53, 16  ;;  %v643_v61 = vshll.u32 %v617_v53, 16  ;;  %v647_v32 = vshrl.u32 %v618_v21, 16  ;;  %v650_v33 = vshll.u32 %v618_v21, 16  ;;  %v3183_v53 = vld [vmem:[%s4121_s5 + $0x68] sm:$0xff]  }
  0x24   : > { %v635_v0 = vrot.slane %v633_v56, 7  ;;  %v619_v42 = vpack.c.bf16 %v572_v13, %v571_v12  ;;  %v553_v8 = vadd.f32 %v3448_v28, %v526_v47  ;;  %v554_v12 = vadd.f32 %v3448_v28, %v527_v62  ;;  %v3189_v13 = vld [vmem:[%s4121_s5 + $0xa8] sm:$0xff]   ;;  %v3628_v47 = vld [vmem:[%s416_s20] sm:$0xff]   ;;  %s4051_s20 = scalar_lea.vmem %s4122_s6, %s2458_s17  ;;  %s465_s17 = sadd.s32 %s2470_s13, %s4172_s24 }
  0x25   : > { %2789 = vmatpush3.bf16.msra.mxu0 %v3171_v17  ;;  %3029 = vmatpush3.bf16.msra.mxu1 %v3170_v16  ;;  %v642_v6 = vrot.slane %v640_v60, 7  ;;  %v649_v41 = vrot.slane %v647_v32, 7  ;;  %s2471_s21 = sshll.u32 %s465_s17, 1 }
  0x26   : > { %2790 = vmatprep.subr.bf16.mxu0 %v3172_v18  ;;  %3030 = vmatprep.subr.bf16.mxu1 %v3173_v19  ;;  %v638_v10 = vor.u32 %v636_v57, %v635_v0  ;;  %v729_v11 = vsel %vm3499_vm4, %v635_v0, 0  ;;  %v654_v52 = vshrl.u32 %v619_v42, 16  ;;  %v657_v56 = vshll.u32 %v619_v42, 16  ;;  %v3184_v57 = vld [vmem:[%s4121_s5 + $0xb0] sm:$0xff]   ;;  %s467_s8 = scalar_lea.vmem %s4123_s7, %s2471_s21 }
  0x27   : > { %v759_v14 = vshll.u32 %v729_v11, 16  ;;  %v864_v15 = vrot.slane %v729_v11, 1  ;;  %v645_v16 = vor.u32 %v643_v61, %v642_v6  ;;  %v730_v17 = vsel %vm3499_vm4, %v642_v6, 0 }
  0x28   : > { %v3511_v18 = vsel %vm3499_vm4, 0, %v638_v10  ;;  %v652_v50 = vor.u32 %v650_v33, %v649_v41  ;;  %v731_v51 = vsel %vm3499_vm4, %v649_v41, 0  ;;  %v656_v61 = vrot.slane %v654_v52, 7  ;;  %v3188_v33 = vld [vmem:[%s4121_s5 + $0x58] sm:$0xff]  }
  0x29   : > { %2791 = vmatpush3.bf16.msra.mxu0 %v3174_v20  ;;  %3031 = vmatpush3.bf16.msra.mxu1 %v3173_v19  ;;  %v867_v19 = vrot.slane %v730_v17, 1  ;;  %v771_v20 = vshll.u32 %v730_v17, 16  ;;  %v754_v25 = vshll.u32 %v3511_v18, 16  ;;  %v761_v26 = vrot.slane %v759_v14, 1 }
  0x2a   : > { %2792 = vmatprep.subr.bf16.mxu0 %v3175_v23  ;;  %3032 = vmatprep.subr.bf16.mxu1 %v3176_v24  ;;  %v3514_v23 = vld [vmem:[%s3423_s14 + $0x28] sm:$0xff]   ;;  %v863_v27 = vrot.slane %v3511_v18, 1  ;;  %v3524_v30 = vsel %vm3499_vm4, 0, %v645_v16  ;;  %v870_v55 = vrot.slane %v731_v51, 1  ;;  %v783_v58 = vshll.u32 %v731_v51, 16 }
  0x2b   : > { %v756_v34 = vrot.slane %v754_v25, 1  ;;  %v764_v38 = vshrl.u32 %v3524_v30, 16  ;;  %v766_v40 = vshll.u32 %v3524_v30, 16  ;;  %v2710_v48 = vunpack.c.l.bf16 %v3514_v23 }
  0x2c   : > { %v3527_v35 = vsel %vm859_vm1, %v863_v27, %v864_v15  ;;  %v3565_v60 = vsel %vm3499_vm4, 0, %v652_v50  ;;  %v785_v2 = vrot.slane %v783_v58, 1  ;;  %v659_v6 = vor.u32 %v657_v56, %v656_v61  ;;  %v3186_v15 = vld [vmem:[%s4121_s5 + $0x60] sm:$0xff]   ;;  %v3190_v50 = vld [vmem:[%s4121_s5 + $0x18] sm:$0xff]  }
  0x2d   : > { %2793 = vmatpush3.bf16.msra.mxu0 %v3177_v31  ;;  %3033 = vmatpush3.bf16.msra.mxu1 %v3176_v24  ;;  %v752_v24 = vshrl.u32 %v3511_v18, 16  ;;  %v773_v31 = vrot.slane %v771_v20, 1  ;;  %v768_v49 = vrot.slane %v766_v40, 1  ;;  %v869_v63 = vrot.slane %v3565_v60, 1  ;;  %v2769_v20 = vld [vmem:[%s3423_s14 + $0x30] sm:$0xff]  }
  0x2e   : > { %2858 = vmatprep.subr.bf16.mxu1 %v3178_v36  ;;  %3050 = vmatprep.subr.bf16.mxu0 %v3466_v39  ;;  %v866_v36 = vrot.slane %v3524_v30, 1  ;;  %v776_v0 = vshrl.u32 %v3565_v60, 16  ;;  %v778_v1 = vshll.u32 %v3565_v60, 16  ;;  %v732_v7 = vsel %vm3499_vm4, %v656_v61, 0 }
  0x2f   : > { %3034 = vmatprep.mubr.bf16.mxu1 %v3527_v35  ;;  %v757_v44 = vor.u32 %v756_v34, %v752_v24  ;;  %v769_v59 = vor.u32 %v768_v49, %v764_v38  ;;  %v3582_v9 = vsel %vm859_vm1, %v869_v63, %v870_v55  ;;  %v873_v10 = vrot.slane %v732_v7, 1  ;;  %v3187_v24 = vld [vmem:[%s4121_s5 + $0x20] sm:$0xff]   ;;  %v3191_v55 = vld [vmem:[%s4121_s5 + $0x50] sm:$0xff]  }
  0x30   : > { %v3538_v45 = vsel %vm859_vm1, %v866_v36, %v867_v19  ;;  %v780_v11 = vrot.slane %v778_v1, 1  ;;  %v3594_v14 = vsel %vm3499_vm4, 0, %v659_v6  ;;  %v573_v16 = vmax.f32 %v553_v8, 0.0 }
  0x31   : > { %3035 = vmatmul.mubr.bf16.vlgmr.msra.gmra.mxu1 %v3538_v45  ;;  %v3552_v54 = vsel %vm738_vm3, %v757_v44, %v761_v26  ;;  %v3574_v3 = vsel %vm738_vm3, %v769_v59, %v773_v31  ;;  %v2711_v17 = vunpack.c.h.bf16 %v3514_v23  ;;  %v528_v19 = vmul.f32 %v2710_v48, %v3435_v22  ;;  %v3194_v31 = vld [vmem:[%s4121_s5 + $0xa0] sm:$0xff]  }
  0x32   : > { %2859 = vmatpush3.bf16.msra.mxu1 %v3180_v29  ;;  %1184 = vmatprep.mubr.bf16.mxu0 %v3552_v54  ;;  %v872_v21 = vrot.slane %v3594_v14, 1  ;;  %v781_v25 = vor.u32 %v780_v11, %v776_v0  ;;  %v574_v26 = vmax.f32 %v554_v12, 0.0  ;;  %v788_v27 = vshrl.u32 %v3594_v14, 16  ;;  %v2770_v29 = vld [vmem:[%s3423_s14 + $0x38] sm:$0xff]   ;;  %s442_s14 = sadd.s32 %s2463_s16, %s3388_s19 }
  0x33   : > { %2860 = vmatprep.subr.bf16.mxu1 %v3181_v37  ;;  %1185 = vmatmul.mubr.bf16.vlgmr.msra.gmra.mxu0 %v3511_v18  ;;  %v529_v23 = vmul.f32 %v2711_v17, %v3435_v22  ;;  %v555_v32 = vadd.f32 %v3448_v28, %v528_v19  ;;  %v790_v34 = vshll.u32 %v3594_v14, 16  ;;  %v795_v36 = vshll.u32 %v732_v7, 16  ;;  %v3198_v0 = vld [vmem:[%s4121_s5 + $0x98] sm:$0xff]   ;;  %v3193_v19 = vld [vmem:[%s4121_s5 + $0x48] sm:$0xff]   ;;  %s2465_s9 = sshll.u32 %s442_s14, 2 }
  0x34   : > { %3051 = vmatpush3.bf16.msra.mxu0 %v3466_v39  ;;  %1192 = vmatprep.mubr.bf16.mxu0 %v3574_v3  ;;  %v3185_v39 = vld [vmem:[%s4121_s5 + $0x28] sm:$0xff]   ;;  %v3621_v37 = vsel %vm859_vm1, %v872_v21, %v873_v10  ;;  %v3624_v38 = vsel %vm738_vm3, %v781_v25, %v785_v2  ;;  %v620_v40 = vpack.c.bf16 %v574_v26, %v573_v16  ;;  %v2714_v41 = vunpack.c.l.bf16 %v2769_v20  ;;  %s444_s19 = scalar_lea.vmem %s4118_s2, %s2465_s9 }
  0x35   : > { %3038 = vmatprep.mubr.bf16.mxu1 %v3582_v9  ;;  %3052 = vmatprep.subr.bf16.mxu0 %v3184_v57  ;;  %v556_v42 = vadd.f32 %v3448_v28, %v529_v23  ;;  %v575_v43 = vmax.f32 %v555_v32, 0.0  ;;  %v792_v44 = vrot.slane %v790_v34, 1  ;;  %v2715_v51 = vunpack.c.h.bf16 %v2769_v20 }
  0x36   : > { %2861 = vmatpush3.bf16.msra.mxu1 %v3182_v46  ;;  %v797_v46 = vrot.slane %v795_v36, 1  ;;  %v661_v48 = vshrl.u32 %v620_v40, 16  ;;  %v664_v49 = vshll.u32 %v620_v40, 16  ;;  %v530_v52 = vmul.f32 %v2714_v41, %v3435_v22 }
  0x37   : > { %2862 = vmatprep.subr.bf16.mxu1 %v3183_v53  ;;  %v576_v53 = vmax.f32 %v556_v42, 0.0  ;;  %v793_v56 = vor.u32 %v792_v44, %v788_v27  ;;  %v2719_v58 = vunpack.c.h.bf16 %v2770_v29  ;;  %v531_v61 = vmul.f32 %v2715_v51, %v3435_v22  ;;  %v3199_v27 = vld [vmem:[%s4121_s5 + $0x90] sm:$0xff]   ;;  %v3196_v44 = vld [vmem:[%s4121_s5 + $0x40] sm:$0xff]  }
  0x38   : > { %3053 = vmatpush3.bf16.msra.mxu0 %v3184_v57  ;;  %v2718_v57 = vunpack.c.l.bf16 %v2770_v29  ;;  %v663_v59 = vrot.slane %v661_v48, 7  ;;  %v557_v62 = vadd.f32 %v3448_v28, %v530_v52  ;;  %v2686_v63 = vunpack.c.l.bf16 %v3628_v47  ;;  %v3200_v52 = vld [vmem:[%s4121_s5 + $0x88] sm:$0xff]  }
  0x39   : > { %3054 = vmatprep.subr.bf16.mxu0 %v3189_v13  ;;  %3039 = vmatmul.mubr.bf16.gmra.mxu1 %v3621_v37  ;;  %v621_v1 = vpack.c.bf16 %v576_v53, %v575_v43  ;;  %v3646_v2 = vsel %vm738_vm3, %v793_v56, %v797_v46  ;;  %v533_v7 = vmul.f32 %v2719_v58, %v3435_v22  ;;  %v2687_v46 = vunpack.c.h.bf16 %v3628_v47 }
  0x3a   : > { %2863 = vmatpush3.bf16.msra.mxu1 %v3185_v39  ;;  %v532_v6 = vmul.f32 %v2718_v57, %v3435_v22  ;;  %v666_v8 = vor.u32 %v664_v49, %v663_v59  ;;  %v733_v10 = vsel %vm3499_vm4, %v663_v59, 0  ;;  %v3192_v39 = vld [vmem:[%s4121_s5 + $0x10] sm:$0xff]   ;;  %v558_v11 = vadd.f32 %v3448_v28, %v531_v61 }
  0x3b   : > { %2864 = vmatprep.subr.bf16.mxu1 %v3186_v15  ;;  %1193 = vmatmul.mubr.bf16.gmra.mxu0 %v3524_v30  ;;  %v577_v12 = vmax.f32 %v557_v62, 0.0  ;;  %v668_v15 = vshrl.u32 %v621_v1, 16  ;;  %v671_v16 = vshll.u32 %v621_v1, 16  ;;  %v807_v25 = vshll.u32 %v733_v10, 16  ;;  %v3197_v62 = vld [vmem:[%s4121_s5] sm:$0xff]  }
  0x3c   : > { %1200 = vmatprep.mubr.bf16.mxu0 %v3624_v38  ;;  %3055 = vmatpush3.bf16.msra.mxu0 %v3189_v13  ;;  %v876_v13 = vrot.slane %v733_v10, 1  ;;  %v559_v17 = vadd.f32 %v3448_v28, %v532_v6  ;;  %v3662_v20 = vsel %vm3499_vm4, 0, %v666_v8  ;;  %v578_v21 = vmax.f32 %v558_v11, 0.0 }
  0x3d   : > { %3056 = vmatprep.subr.bf16.mxu0 %v3194_v31  ;;  %v875_v29 = vrot.slane %v3662_v20, 1  ;;  %v800_v32 = vshrl.u32 %v3662_v20, 16  ;;  %v802_v36 = vshll.u32 %v3662_v20, 16  ;;  %v809_v40 = vrot.slane %v807_v25, 1 }
  0x3e   : > { %2865 = vmatpush3.bf16.msra.mxu1 %v3187_v24  ;;  %v560_v24 = vadd.f32 %v3448_v28, %v533_v7  ;;  %v579_v23 = vmax.f32 %v559_v17, 0.0  ;;  %v516_v47 = vmul.f32 %v2686_v63, %v3435_v22  ;;  %v517_v56 = vmul.f32 %v2687_v46, %v3435_v22  ;;  %v3201_v22 = vld [vmem:[%s4121_s5 + $0x80] sm:$0xff]  }
  0x3f   : > { %2866 = vmatprep.subr.bf16.mxu1 %v3188_v33  ;;  %v622_v33 = vpack.c.bf16 %v578_v21, %v577_v12  ;;  %v3682_v41 = vsel %vm859_vm1, %v875_v29, %v876_v13 }
  0x40   : > { %3057 = vmatpush3.bf16.msra.mxu0 %v3194_v31  ;;  %v670_v31 = vrot.slane %v668_v15, 7  ;;  %v580_v34 = vmax.f32 %v560_v24, 0.0  ;;  %3042 = vmatprep.mubr.bf16.mxu1 %v3682_v41  ;;  %v543_v1 = vadd.f32 %v3448_v28, %v516_v47  ;;  %v544_v6 = vadd.f32 %v3448_v28, %v517_v56  ;;  %v3726_v15 = vld [vmem:[%s4121_s5 + $0x238] sm:$0xff]  }
  0x41   : > { %3058 = vmatprep.subr.bf16.mxu0 %v3198_v0  ;;  %v675_v49 = vshrl.u32 %v622_v33, 16 }
  0x42   : > { %2867 = vmatpush3.bf16.msra.mxu1 %v3190_v50  ;;  %v673_v42 = vor.u32 %v671_v16, %v670_v31  ;;  %v3686_v43 = vsel %vm3499_vm4, %v670_v31, 0  ;;  %v678_v50 = vshll.u32 %v622_v33, 16  ;;  %v623_v51 = vpack.c.bf16 %v580_v34, %v579_v23  ;;  %v3203_v34 = vld [vmem:[%s4121_s5 + $0x1f8] sm:$0xff]  }
  0x43   : > { %2868 = vmatprep.subr.bf16.mxu1 %v3191_v55  ;;  %1201 = vmatmul.mubr.bf16.gmra.mxu0 %v3565_v60  ;;  %v879_v48 = vrot.slane %v3686_v43, 1  ;;  %v804_v55 = vrot.slane %v802_v36, 1  ;;  %v677_v58 = vrot.slane %v675_v49, 7  ;;  %v563_v12 = vmax.f32 %v543_v1, 0.0 }
  0x44   : > { %1208 = vmatprep.mubr.bf16.mxu0 %v3646_v2  ;;  %3059 = vmatpush3.bf16.msra.mxu0 %v3198_v0  ;;  %v3700_v53 = vsel %vm3499_vm4, 0, %v673_v42  ;;  %v682_v59 = vshrl.u32 %v623_v51, 16  ;;  %v685_v61 = vshll.u32 %v623_v51, 16  ;;  %v564_v13 = vmax.f32 %v544_v6, 0.0 }
  0x45   : > { %3060 = vmatprep.subr.bf16.mxu0 %v3199_v27  ;;  %v878_v57 = vrot.slane %v3700_v53, 1  ;;  %v805_v0 = vor.u32 %v804_v55, %v800_v32  ;;  %v812_v7 = vshrl.u32 %v3700_v53, 16  ;;  %v680_v8 = vor.u32 %v678_v50, %v677_v58 }
  0x46   : > { %2869 = vmatpush3.bf16.msra.mxu1 %v3192_v39  ;;  %v735_v10 = vsel %vm3499_vm4, %v677_v58, 0  ;;  %v684_v39 = vrot.slane %v682_v59, 7  ;;  %v814_v21 = vshll.u32 %v3700_v53, 16  ;;  %v596_v29 = vsel %vm3667_vm5, %v564_v13, 0.0 }
  0x47   : > { %2870 = vmatprep.subr.bf16.mxu1 %v3193_v19  ;;  %v3715_v63 = vsel %vm859_vm1, %v878_v57, %v879_v48  ;;  %v882_v28 = vrot.slane %v735_v10, 1  ;;  %v3721_v11 = vsel %vm738_vm3, %v805_v0, %v809_v40  ;;  %v3730_v16 = vsel %vm3499_vm4, 0, %v680_v8 }
  0x48   : > { %3061 = vmatpush3.bf16.msra.mxu0 %v3199_v27  ;;  %3043 = vmatmul.mubr.bf16.gmra.mxu1 %v3715_v63  ;;  %v687_v17 = vor.u32 %v685_v61, %v684_v39  ;;  %v736_v19 = vsel %vm3499_vm4, %v684_v39, 0  ;;  %v881_v24 = vrot.slane %v3730_v16, 1  ;;  %v595_v27 = vsel %vm3667_vm5, %v563_v12, 0.0  ;;  %v3207_v12 = vld [vmem:[%s4121_s5 + $0x230] sm:$0xff]  }
  0x49   : > { %3062 = vmatprep.subr.bf16.mxu0 %v3200_v52  ;;  %v956_v25 = vrot.slane %v736_v19, 1  ;;  %v615_v23 = vpack.c.bf16 %v596_v29, %v595_v27  ;;  %v816_v32 = vrot.slane %v814_v21, 1  ;;  %v819_v33 = vshll.u32 %v3686_v43, 16  ;;  %v3204_v29 = vld [vmem:[%s4121_s5 + $0x1b8] sm:$0xff]  }
  0x4a   : > { %2871 = vmatpush3.bf16.msra.mxu1 %v3195_v4  ;;  %v3744_v31 = vsel %vm3499_vm4, 0, %v687_v17  ;;  %v3751_v4 = vsel %vm859_vm1, %v881_v24, %v882_v28  ;;  %v826_v36 = vshll.u32 %v3730_v16, 16  ;;  %v824_v48 = vshrl.u32 %v3730_v16, 16 }
  0x4b   : > { %2872 = vmatprep.subr.bf16.mxu1 %v3196_v44  ;;  %1209 = vmatmul.mubr.bf16.gmra.mxu0 %v3594_v14  ;;  %v955_v26 = vrot.slane %v3744_v31, 1  ;;  %v626_v40 = vshrl.u32 %v615_v23, 16  ;;  %v629_v42 = vshll.u32 %v615_v23, 16  ;;  %v817_v44 = vor.u32 %v816_v32, %v812_v7  ;;  %v3205_v23 = vld [vmem:[%s4121_s5 + $0x1f0] sm:$0xff]   ;;  %v3222_v32 = vld [vmem:[%s4121_s5 + $0x208] sm:$0xff]  }
  0x4c   : > { %1216 = vmatprep.mubr.bf16.mxu0 %v3721_v11  ;;  %3063 = vmatpush3.bf16.msra.mxu0 %v3200_v52  ;;  %v821_v43 = vrot.slane %v819_v33, 1  ;;  %v828_v51 = vrot.slane %v826_v36, 1  ;;  %v831_v52 = vshll.u32 %v735_v10, 16  ;;  %v943_v55 = vshll.u32 %v3744_v31, 16  ;;  %v3206_v33 = vld [vmem:[%s4121_s5 + $0x1b0] sm:$0xff]   ;;  %v3211_v36 = vld [vmem:[%s4121_s5 + $0x1e0] sm:$0xff]  }
  0x4d   : > { %3064 = vmatprep.subr.bf16.mxu0 %v3201_v22  ;;  %3046 = vmatprep.mubr.bf16.mxu1 %v3751_v4  ;;  %v3758_v46 = vsel %vm859_vm1, %v955_v26, %v956_v25  ;;  %v628_v49 = vrot.slane %v626_v40, 7  ;;  %v941_v58 = vshrl.u32 %v3744_v31, 16  ;;  %v948_v7 = vshll.u32 %v736_v19, 16  ;;  %v3210_v19 = vld [vmem:[%s4121_s5 + $0x228] sm:$0xff]   ;;  %v3216_v25 = vld [vmem:[%s4121_s5 + $0x218] sm:$0xff]   ;;  %v3212_v40 = vld [vmem:[%s4121_s5 + $0x1a0] sm:$0xff]  }
  0x4e   : > { %2873 = vmatpush3.bf16.msra.mxu1 %v3197_v62  ;;  %v3762_v50 = vsel %vm738_vm3, %v817_v44, %v821_v43  ;;  %v829_v61 = vor.u32 %v828_v51, %v824_v48  ;;  %v833_v62 = vrot.slane %v831_v52, 1  ;;  %v945_v6 = vrot.slane %v943_v55, 1  ;;  %v3208_v26 = vld [vmem:[%s4121_s5 + $0x1e8] sm:$0xff]   ;;  %v3215_v44 = vld [vmem:[%s4121_s5 + $0x198] sm:$0xff]   ;;  %v3217_v43 = vld [vmem:[%s4121_s5 + $0x1d0] sm:$0xff]  }
  0x4f   : > { %3082 = vmatprep.subr.bf16.mxu1 %v3726_v15  ;;  %v631_v47 = vor.u32 %v629_v42, %v628_v49  ;;  %v728_v56 = vsel %vm3499_vm4, %v628_v49, 0  ;;  %v950_v17 = vrot.slane %v948_v7, 1  ;;  %v3214_v42 = vld [vmem:[%s4121_s5 + $0x1d8] sm:$0xff]   ;;  %v3218_v48 = vld [vmem:[%s4121_s5 + $0x190] sm:$0xff]   ;;  %v3220_v49 = vld [vmem:[%s4121_s5 + $0x1c8] sm:$0xff]  }
  0x50   : > { %3065 = vmatpush3.bf16.msra.mxu0 %v3201_v22  ;;  %3047 = vmatmul.mubr.bf16.gmra.mxu1 %v3758_v46  ;;  %v747_v57 = vshll.u32 %v728_v56, 16  ;;  %v3774_v10 = vsel %vm738_vm3, %v829_v61, %v833_v62  ;;  %v946_v13 = vor.u32 %v945_v6, %v941_v58  ;;  %v861_v24 = vrot.slane %v728_v56, 1  ;;  %v2721_v51 = vld [vmem:[%s444_s19] sm:$0xff]   ;;  %v3221_v52 = vld [vmem:[%s4121_s5 + $0x188] sm:$0xff]  }
  0x51   : > { %2938 = vmatprep.subr.bf16.mxu0 %v3203_v34  ;;  %v718_v59 = vsel %vm3499_vm4, 0, %v631_v47  ;;  %v3225_v34 = vld [vmem:[%s4121_s5 + $0x200] sm:$0xff]   ;;  %v2722_v47 = vunpack.c.l.bf16 %v2721_v51  ;;  %v2723_v56 = vunpack.c.h.bf16 %v2721_v51 }
  0x52   : > { %v740_v0 = vshrl.u32 %v718_v59, 16  ;;  %v742_v1 = vshll.u32 %v718_v59, 16  ;;  %v749_v8 = vrot.slane %v747_v57, 1  ;;  %v3788_v21 = vsel %vm738_vm3, %v946_v13, %v950_v17  ;;  %v3223_v55 = vld [vmem:[%s4121_s5 + $0x1c0] sm:$0xff]  }
  0x53   : > { %1217 = vmatmul.mubr.bf16.gmra.mxu0 %v3662_v20  ;;  %v3224_v57 = vld [vmem:[%s4121_s5 + $0x180] sm:$0xff]  }
  0x54   : > { %1224 = vmatprep.mubr.bf16.mxu0 %v3762_v50  ;;  %v744_v22 = vrot.slane %v742_v1, 1  ;;  %v3226_v58 = vld [vmem:[%s4119_s3] ss:$0 sm:$0xff]  ;;  %v589_v1 = vstv %s588_s15 }
  0x55   : > { %v535_v61 = vmul.f32 %v3226_v58, %v2723_v56  ;;  %v3227_v62 = vld [vmem:[%s4120_s4] ss:$0 sm:$0xff]  ;;  %vm590_vm6 = vcmp.eq.s32.totalorder %v589_v1, 1 }
  0x56   : > { %v745_v39 = vor.u32 %v744_v22, %v740_v0 }
  0x58   : > { %v750_v28 = vsel %vm738_vm3, %v745_v39, %v749_v8 }
  0x59   : > { %1522 = vmatprep.mubr.bf16.mxu1 %v750_v28 }
  0x5a   : > { %1523 = vmatmul.mubr.bf16.vlgmr.msra.gmra.mxu1 %v718_v59 }
  0x5b   : > { %1225 = vmatmul.mubr.bf16.gmra.mxu0 %v3700_v53  ;;  %1530 = vmatprep.mubr.bf16.mxu1 %v3552_v54  ;;  %v3213_v54 = vld [vmem:[%s4121_s5 + $0x220] sm:$0xff]  }
  0x5c   : > { %1232 = vmatprep.mubr.bf16.mxu0 %v3774_v10  ;;  %3083 = vmatpush3.bf16.msra.mxu1 %v3726_v15  ;;  %v860_v15 = vrot.slane %v718_v59, 1  ;;  %v534_v59 = vmul.f32 %v3226_v58, %v2722_v47 }
  0x5d   : > { %3084 = vmatprep.subr.bf16.mxu1 %v3207_v12 }
  0x5e   : > { %v862_v27 = vsel %vm859_vm1, %v860_v15, %v861_v24  ;;  %v561_v0 = vadd.f32 %v3227_v62, %v534_v59 }
  0x60   : > { %3085 = vmatpush3.bf16.msra.mxu1 %v3207_v12  ;;  %v581_v6 = vmax.f32 %v561_v0, 0.0 }
  0x61   : > { %3086 = vmatprep.subr.bf16.mxu1 %v3210_v19 }
  0x62   : > { %1531 = vmatmul.mubr.bf16.gmra.mxu1 %v3511_v18  ;;  %v3219_v18 = vld [vmem:[%s4121_s5 + $0x210] sm:$0xff]   ;;  %v613_v22 = vsel %vm590_vm6, %v581_v6, 0.0 }
  0x63   : > { %1233 = vmatmul.mubr.bf16.gmra.mxu0 %v3730_v16  ;;  %1538 = vmatprep.mubr.bf16.mxu1 %v3574_v3 }
  0x64   : > { %1240 = vmatprep.mubr.bf16.mxu0 %v3788_v21  ;;  %3087 = vmatpush3.bf16.msra.mxu1 %v3210_v19 }
  0x65   : > { %3088 = vmatprep.subr.bf16.mxu1 %v3213_v54 }
  0x68   : > { %3089 = vmatpush3.bf16.msra.mxu1 %v3213_v54 }
  0x69   : > { %3090 = vmatprep.subr.bf16.mxu1 %v3216_v25 }
  0x6a   : > { %1539 = vmatmul.mubr.bf16.gmra.mxu1 %v3524_v30 }
  0x6b   : > { %1241 = vmatmul.mubr.bf16.gmra.mxu0 %v3744_v31  ;;  %1546 = vmatprep.mubr.bf16.mxu1 %v3624_v38 }
  0x6c   : > { %3066 = vmatprep.mubr.bf16.mxu0 %v862_v27  ;;  %3091 = vmatpush3.bf16.msra.mxu1 %v3216_v25 }
  0x6d   : > { %3092 = vmatprep.subr.bf16.mxu1 %v3219_v18 }
  0x70   : > { %3093 = vmatpush3.bf16.msra.mxu1 %v3219_v18 }
  0x71   : > { %3094 = vmatprep.subr.bf16.mxu1 %v3222_v32 }
  0x72   : > { %1547 = vmatmul.mubr.bf16.gmra.mxu1 %v3565_v60 }
  0x73   : > { %3067 = vmatmul.mubr.bf16.vlgmr.msra.gmra.mxu0 %v3527_v35  ;;  %1554 = vmatprep.mubr.bf16.mxu1 %v3646_v2  ;;  %v3209_v35 = vld [vmem:[%s4121_s5 + $0x1a8] sm:$0xff]  }
  0x74   : > { %2939 = vmatpush3.bf16.msra.mxu0 %v3204_v29  ;;  %3070 = vmatprep.mubr.bf16.mxu0 %v3538_v45 }
  0x75   : > { %2940 = vmatprep.subr.bf16.mxu0 %v3205_v23  ;;  %3095 = vmatpush3.bf16.msra.mxu1 %v3222_v32 }
  0x76   : > { %3096 = vmatprep.subr.bf16.mxu1 %v3225_v34 }
  0x78   : > { %2941 = vmatpush3.bf16.msra.mxu0 %v3206_v33 }
  0x79   : > { %2942 = vmatprep.subr.bf16.mxu0 %v3208_v26  ;;  %3097 = vmatpush3.bf16.msra.mxu1 %v3225_v34 }
  0x7a   : > { %1555 = vmatmul.mubr.bf16.gmra.mxu1 %v3594_v14 }
  0x7b   : > { %3071 = vmatmul.mubr.bf16.gmra.mxu0 %v3582_v9  ;;  %1562 = vmatprep.mubr.bf16.mxu1 %v3721_v11 }
  0x7c   : > { %2943 = vmatpush3.bf16.msra.mxu0 %v3209_v35  ;;  %3074 = vmatprep.mubr.bf16.mxu0 %v3621_v37 }
  0x7d   : > { %2944 = vmatprep.subr.bf16.mxu0 %v3211_v36 }
  0x80   : > { %2945 = vmatpush3.bf16.msra.mxu0 %v3212_v40 }
  0x81   : > { %2946 = vmatprep.subr.bf16.mxu0 %v3214_v42 }
  0x82   : > { %1563 = vmatmul.mubr.bf16.gmra.mxu1 %v3662_v20 }
  0x83   : > { %3075 = vmatmul.mubr.bf16.gmra.mxu0 %v3682_v41  ;;  %1570 = vmatprep.mubr.bf16.mxu1 %v3762_v50 }
  0x84   : > { %2947 = vmatpush3.bf16.msra.mxu0 %v3215_v44  ;;  %3078 = vmatprep.mubr.bf16.mxu0 %v3715_v63 }
  0x85   : > { %2948 = vmatprep.subr.bf16.mxu0 %v3217_v43 }
  0x88   : > { %2949 = vmatpush3.bf16.msra.mxu0 %v3218_v48 }
  0x89   : > { %2950 = vmatprep.subr.bf16.mxu0 %v3220_v49 }
  0x8a   : > { %1571 = vmatmul.mubr.bf16.gmra.mxu1 %v3700_v53 }
  0x8b   : > { %3079 = vmatmul.mubr.bf16.gmra.mxu0 %v3751_v4  ;;  %1578 = vmatprep.mubr.bf16.mxu1 %v3774_v10 }
  0x8c   : > { %2951 = vmatpush3.bf16.msra.mxu0 %v3221_v52  ;;  %1928 = vmatprep.mubr.bf16.mxu0 %v3574_v3  ;;  %v562_v3 = vadd.f32 %v3227_v62, %v535_v61 }
  0x8d   : > { %2952 = vmatprep.subr.bf16.mxu0 %v3223_v55 }
  0x8e   : > { %v582_v7 = vmax.f32 %v562_v3, 0.0 }
  0x90   : > { %2953 = vmatpush3.bf16.msra.mxu0 %v3224_v57  ;;  %v614_v8 = vsel %vm590_vm6, %v582_v7, 0.0 }
  0x91   : > { %v624_v39 = vpack.c.bf16 %v614_v8, %v613_v22 }
  0x92   : > { %1579 = vmatmul.mubr.bf16.gmra.mxu1 %v3730_v16 }
  0x93   : > { %1929 = vmatmul.mubr.bf16.vlgmr.msra.gmra.mxu0 %v3524_v30  ;;  %3098 = vmatprep.mubr.bf16.mxu1 %v3538_v45  ;;  %v689_v30 = vshrl.u32 %v624_v39, 16  ;;  %v692_v28 = vshll.u32 %v624_v39, 16 }
  0x94   : > { %1936 = vmatprep.mubr.bf16.mxu0 %v3624_v38 }
  0x95   : > { %v691_v38 = vrot.slane %v689_v30, 7 }
  0x97   : > { %v694_v45 = vor.u32 %v692_v28, %v691_v38 }
  0x9a   : > { %3099 = vmatmul.mubr.bf16.vlgmr.msra.gmra.mxu1 %v3582_v9  ;;  %v737_v9 = vsel %vm3499_vm4, %v691_v38, 0 }
  0x9b   : > { %1937 = vmatmul.mubr.bf16.gmra.mxu0 %v3565_v60  ;;  %3102 = vmatprep.mubr.bf16.mxu1 %v3621_v37  ;;  %v727_v60 = vsel %vm3499_vm4, 0, %v694_v45  ;;  %v1700_v37 = vrot.slane %v737_v9, 1 }
  0x9c   : > { %1944 = vmatprep.mubr.bf16.mxu0 %v3646_v2 }
  0xa2   : > { %3103 = vmatmul.mubr.bf16.gmra.mxu1 %v3682_v41  ;;  %v1685_v41 = vshrl.u32 %v727_v60, 16 }
  0xa3   : > { %1945 = vmatmul.mubr.bf16.gmra.mxu0 %v3594_v14  ;;  %3106 = vmatprep.mubr.bf16.mxu1 %v3715_v63  ;;  %v1699_v14 = vrot.slane %v727_v60, 1 }
  0xa4   : > { %1952 = vmatprep.mubr.bf16.mxu0 %v3721_v11  ;;  %v1692_v11 = vshll.u32 %v737_v9, 16 }
  0xa5   : > { %v1701_v2 = vsel %vm859_vm1, %v1699_v14, %v1700_v37 }
  0xaa   : > { %3107 = vmatmul.mubr.bf16.gmra.mxu1 %v3751_v4  ;;  %v1694_v4 = vrot.slane %v1692_v11, 1 }
  0xab   : > { %1953 = vmatmul.mubr.bf16.gmra.mxu0 %v3662_v20  ;;  %3110 = vmatprep.mubr.bf16.mxu1 %v3758_v46  ;;  %v1687_v20 = vshll.u32 %v727_v60, 16 }
  0xac   : > { %1960 = vmatprep.mubr.bf16.mxu0 %v3762_v50 }
  0xad   : > { %v1689_v63 = vrot.slane %v1687_v20, 1 }
  0xaf   : > { %v1690_v5 = vor.u32 %v1689_v63, %v1685_v41 }
  0xb1   : > { %v1695_v46 = vsel %vm738_vm3, %v1690_v5, %v1694_v4 }
  0xb2   : > { %3111 = vmatmul.mubr.bf16.gmra.mxu1 %v1701_v2 }
  0xb3   : > { %1961 = vmatmul.mubr.bf16.gmra.mxu0 %v3700_v53 }
  0xb4   : > { %1968 = vmatprep.mubr.bf16.mxu0 %v3774_v10 }
  0xbb   : > { %1969 = vmatmul.mubr.bf16.gmra.mxu0 %v3730_v16 }
  0xbc   : > { %1976 = vmatprep.mubr.bf16.mxu0 %v3788_v21 }
  0xc3   : > { %1977 = vmatmul.mubr.bf16.gmra.mxu0 %v3744_v31 }
  0xc4   : > { %1984 = vmatprep.mubr.bf16.mxu0 %v1695_v46 }
  0xcb   : > { %1985 = vmatmul.mubr.bf16.gmra.mxu0 %v727_v60 }
  0xf1   : > { %v3036_v53 = vpop.f32.mrf.mxu1 }
  0xf3   : > { %v1283_v50 = vpop.f32.mrf.mxu1  ;;  %v2794_v10 = vpop.f32.mrf.mxu0 }
  0xf5   : > { %v3037_v12 = vpop.f32.mrf.mxu1  ;;  %v2795_v13 = vpop.f32.mrf.mxu0 }
  0xf6   : > { %v2796_v17 = vadd.f32 %v2795_v13, %v2794_v10 }
  0xf7   : > { %v1286_v19 = vpop.f32.mrf.mxu1  ;;  %v2797_v54 = vpop.f32.mrf.mxu0 }
  0xf8   : > { %v1284_v15 = vadd.f32 %v2796_v17, %v1283_v50 }
  0xf9   : > { %v2798_v16 = vpop.f32.mrf.mxu0  ;;  %v3040_v21 = vpop.f32.mrf.mxu1 }
  0xfa   : > { %v2799_v24 = vadd.f32 %v2798_v16, %v2797_v54 }
  0xfb   : > { %v2800_v25 = vpop.f32.mrf.mxu0  ;;  %v1299_v31 = vpop.f32.mrf.mxu1 }
  0xfc   : > { %v3923_v27 = vadd.f32 %v2799_v24, %v1286_v19 }
  0xfd   : > { %v2801_v18 = vpop.f32.mrf.mxu0  ;;  %v3041_v34 = vpop.f32.mrf.mxu1 }
  0xfe   : > { %v2802_v29 = vadd.f32 %v2801_v18, %v2800_v25 }
  0xff   : > { %v2803_v23 = vpop.f32.mrf.mxu0  ;;  %v1302_v42 = vpop.f32.mrf.mxu1 }
 0x100   : > { %v3925_v32 = vadd.f32 %v3036_v53, %v2802_v29 }
 0x101   : > { %v2804_v33 = vpop.f32.mrf.mxu0 }
 0x102   : > { %v2805_v26 = vadd.f32 %v2804_v33, %v2803_v23 }
 0x103   : > { %v2806_v35 = vpop.f32.mrf.mxu0 }
 0x104   : > { %v3927_v36 = vadd.f32 %v3037_v12, %v2805_v26 }
 0x105   : > { %v2807_v40 = vpop.f32.mrf.mxu0 }
 0x106   : > { %v2808_v44 = vadd.f32 %v2807_v40, %v2806_v35 }
 0x107   : > { %v2809_v43 = vpop.f32.mrf.mxu0 }
 0x108   : > { %v3929_v48 = vadd.f32 %v2808_v44, %v1299_v31  ;;  %v3044_v51 = vpop.f32.mrf.mxu1 }
 0x109   : > { %v2810_v49 = vpop.f32.mrf.mxu0 }
 0x10a   : > { %v2811_v52 = vadd.f32 %v2810_v49, %v2809_v43  ;;  %v1315_v47 = vpop.f32.mrf.mxu1 }
 0x10b   : > { %v2812_v55 = vpop.f32.mrf.mxu0 }
 0x10c   : > { %v3931_v56 = vadd.f32 %v2811_v52, %v1302_v42  ;;  %v3045_v58 = vpop.f32.mrf.mxu1 }
 0x10d   : > { %v2813_v57 = vpop.f32.mrf.mxu0 }
 0x10e   : > { %v2814_v59 = vadd.f32 %v2813_v57, %v2812_v55  ;;  %v1318_v62 = vpop.f32.mrf.mxu1 }
 0x10f   : > { %v2815_v61 = vpop.f32.mrf.mxu0 }
 0x110   : > { %v3933_v0 = vadd.f32 %v3040_v21, %v2814_v59  ;;  %v3048_v1 = vpop.f32.mrf.mxu1 }
 0x111   : > { %v2816_v3 = vpop.f32.mrf.mxu0 }
 0x112   : > { %v2817_v6 = vadd.f32 %v2816_v3, %v2815_v61  ;;  %v1331_v22 = vpop.f32.mrf.mxu1 }
 0x113   : > { %v2818_v7 = vpop.f32.mrf.mxu0 }
 0x114   : > { %v3935_v8 = vadd.f32 %v3041_v34, %v2817_v6  ;;  %v3049_v30 = vpop.f32.mrf.mxu1 }
 0x115   : > { %v2819_v39 = vpop.f32.mrf.mxu0 }
 0x116   : > { %v2820_v38 = vadd.f32 %v2819_v39, %v2818_v7  ;;  %v1334_v9 = vpop.f32.mrf.mxu1 }
 0x117   : > { %v2821_v28 = vpop.f32.mrf.mxu0 }
 0x118   : > { %v3937_v45 = vadd.f32 %v2820_v38, %v1315_v47 }
 0x119   : > { %v2822_v60 = vpop.f32.mrf.mxu0 }
 0x11a   : > { %v2823_v14 = vadd.f32 %v2822_v60, %v2821_v28  ;;  %v2874_v41 = vpop.f32.mrf.mxu1 }
 0x11b   : > { %v2824_v37 = vpop.f32.mrf.mxu0 }
 0x11c   : > { %v3939_v2 = vadd.f32 %v2823_v14, %v1318_v62  ;;  %v2875_v5 = vpop.f32.mrf.mxu1 }
 0x11d   : > { %v2825_v20 = vpop.f32.mrf.mxu0  ;;  %v2876_v46 = vadd.f32 %v2875_v5, %v2874_v41 }
 0x11e   : > { %v2826_v63 = vadd.f32 %v2825_v20, %v2824_v37  ;;  %v3941_v50 = vpop.f32.mrf.mxu1 }
 0x11f   : > { %v2827_v11 = vpop.f32.mrf.mxu0  ;;  %v3943_v13 = vadd.f32 %v2876_v46, %v1284_v15 }
 0x120   : > { %v1324_v4 = vadd.f32 %v3044_v51, %v2826_v63  ;;  %v3945_v17 = vpop.f32.mrf.mxu1 }
 0x121   : > { %v2828_v53 = vpop.f32.mrf.mxu0 }
 0x122   : > { %v2829_v10 = vadd.f32 %v2828_v53, %v2827_v11  ;;  %v3949_v16 = vpop.f32.mrf.mxu1 }
 0x123   : > { %v2830_v12 = vpop.f32.mrf.mxu0 }
 0x124   : > { %v3947_v19 = vadd.f32 %v3045_v58, %v2829_v10  ;;  %v3951_v25 = vpop.f32.mrf.mxu1 }
 0x125   : > { %v2831_v54 = vpop.f32.mrf.mxu0 }
 0x126   : > { %4129 = vst [vmem:[#allocation2_spill] sm:$0xff] %v3947_v19  ;;  %v2832_v24 = vadd.f32 %v2831_v54, %v2830_v12  ;;  %v3955_v31 = vpop.f32.mrf.mxu1 }
 0x127   : > { %v2833_v21 = vpop.f32.mrf.mxu0 }
 0x128   : > { %v3953_v18 = vadd.f32 %v2832_v24, %v1331_v22  ;;  %v2884_v15 = vpop.f32.mrf.mxu1 }
 0x129   : > { %v2834_v29 = vpop.f32.mrf.mxu0 }
 0x12a   : > { %4130 = vst [vmem:[#allocation3_spill] sm:$0xff] %v3953_v18  ;;  %v2835_v23 = vadd.f32 %v2834_v29, %v2833_v21  ;;  %v3959_v35 = vpop.f32.mrf.mxu1 }
 0x12b   : > { %v2836_v33 = vpop.f32.mrf.mxu0 }
 0x12c   : > { %v3957_v34 = vadd.f32 %v2835_v23, %v1334_v9  ;;  %v3961_v44 = vpop.f32.mrf.mxu1 }
 0x12d   : > { %v2837_v26 = vpop.f32.mrf.mxu0 }
 0x12e   : > { %4131 = vst [vmem:[#allocation4_spill] sm:$0xff] %v3957_v34  ;;  %v2838_v40 = vadd.f32 %v2837_v26, %v2836_v33  ;;  %v3963_v51 = vpop.f32.mrf.mxu1 }
 0x12f   : > { %v2839_v42 = vpop.f32.mrf.mxu0 }
 0x130   : > { %v1340_v43 = vadd.f32 %v3048_v1, %v2838_v40  ;;  %v3967_v47 = vpop.f32.mrf.mxu1 }
 0x131   : > { %v2840_v49 = vpop.f32.mrf.mxu0 }
 0x132   : > { %v2841_v52 = vadd.f32 %v2840_v49, %v2839_v42  ;;  %v3971_v59 = vpop.f32.mrf.mxu1 }
 0x133   : > { %v3965_v55 = vpop.f32.mrf.mxu0 }
 0x134   : > { %v1343_v57 = vadd.f32 %v3049_v30, %v2841_v52  ;;  %v3975_v62 = vpop.f32.mrf.mxu1 }
 0x135   : > { %v3969_v58 = vpop.f32.mrf.mxu0 }
 0x136   : > { %v3979_v1 = vpop.f32.mrf.mxu1 }
 0x137   : > { %v3973_v61 = vpop.f32.mrf.mxu0 }
 0x138   : > { %v3983_v7 = vpop.f32.mrf.mxu1 }
 0x139   : > { %v3977_v3 = vpop.f32.mrf.mxu0 }
 0x13a   : > { %v3987_v39 = vpop.f32.mrf.mxu1 }
 0x13b   : > { %v3981_v6 = vpop.f32.mrf.mxu0 }
 0x13c   : > { %v3991_v38 = vpop.f32.mrf.mxu1 }
 0x13d   : > { %v3985_v22 = vpop.f32.mrf.mxu0 }
 0x13e   : > { %v3995_v60 = vpop.f32.mrf.mxu1 }
 0x13f   : > { %v3989_v30 = vpop.f32.mrf.mxu0 }
 0x140   : > { %v3997_v14 = vpop.f32.mrf.mxu1 }
 0x141   : > { %v3993_v28 = vpop.f32.mrf.mxu0 }
 0x142   : > { %v2904_v20 = vpop.f32.mrf.mxu1 }
 0x143   : > { %v3076_v9 = vpop.f32.mrf.mxu0 }
 0x144   : > { %v2905_v63 = vpop.f32.mrf.mxu1 }
 0x145   : > { %v3999_v37 = vpop.f32.mrf.mxu0  ;;  %v2906_v11 = vadd.f32 %v2905_v63, %v2904_v20 }
 0x146   : > { %v4005_v46 = vpop.f32.mrf.mxu1 }
 0x147   : > { %v4001_v41 = vpop.f32.mrf.mxu0  ;;  %v1565_v53 = vadd.f32 %v2906_v11, %v1324_v4 }
 0x148   : > { %4132 = vst [vmem:[#allocation5_spill] sm:$0xff] %v4001_v41  ;;  %v4007_v12 = vpop.f32.mrf.mxu1 }
 0x149   : > { %v4003_v5 = vpop.f32.mrf.mxu0  ;;  %4133 = vst [vmem:[#allocation6_spill] sm:$0xff] %v4007_v12  ;;  %v4009_v54 = vadd.f32 %v3076_v9, %v1565_v53 }
 0x14a   : > { %v4013_v21 = vpop.f32.mrf.mxu1 }
 0x14b   : > { %v3080_v10 = vpop.f32.mrf.mxu0  ;;  %4134 = vst [vmem:[#allocation7_spill] sm:$0xff] %v4009_v54  ;;  %4136 = vst [vmem:[#allocation9_spill] sm:$0xff] %v4013_v21 }
 0x14c   : > { %v4015_v23 = vpop.f32.mrf.mxu1 }
 0x14d   : > { %v4011_v24 = vpop.f32.mrf.mxu0  ;;  %4137 = vst [vmem:[#allocation10_spill] sm:$0xff] %v4015_v23 }
 0x14e   : > { %4135 = vst [vmem:[#allocation8_spill] sm:$0xff] %v4011_v24  ;;  %v4019_v26 = vpop.f32.mrf.mxu1  ;;  %v2882_v24 = vadd.f32 %v3951_v25, %v3949_v16 }
 0x14f   : > { %v3081_v29 = vpop.f32.mrf.mxu0  ;;  %4139 = vst [vmem:[#allocation12_spill] sm:$0xff] %v4019_v26 }
 0x150   : > { %v4021_v42 = vpop.f32.mrf.mxu1 }
 0x151   : > { %v4017_v33 = vpop.f32.mrf.mxu0  ;;  %4140 = vst [vmem:[#allocation13_spill] sm:$0xff] %v4021_v42 }
 0x152   : > { %4138 = vst [vmem:[#allocation11_spill] sm:$0xff] %v4017_v33  ;;  %v2916_v49 = vpop.f32.mrf.mxu1  ;;  %v2885_v33 = vadd.f32 %v2884_v15, %v3955_v31 }
 0x153   : > { %v2954_v40 = vpop.f32.mrf.mxu0 }
 0x154   : > { %v2917_v20 = vpop.f32.mrf.mxu1  ;;  %v1536_v16 = vadd.f32 %v2885_v33, %v3927_v36 }
 0x155   : > { %v2955_v4 = vpop.f32.mrf.mxu0  ;;  %v2918_v9 = vadd.f32 %v2917_v20, %v2916_v49  ;;  %v2879_v49 = vadd.f32 %v3945_v17, %v3941_v50  ;;  %v1622_v50 = vadd.f32 %v3969_v58, %v3943_v13 }
 0x156   : > { %v2919_v11 = vpop.f32.mrf.mxu1  ;;  %v2956_v54 = vadd.f32 %v2955_v4, %v2954_v40  ;;  %v1633_v36 = vadd.f32 %v3973_v61, %v1536_v16 }
 0x157   : > { %v2957_v52 = vpop.f32.mrf.mxu0  ;;  %v1581_v53 = vadd.f32 %v2918_v9, %v1340_v43  ;;  %v1533_v43 = vadd.f32 %v2882_v24, %v3925_v32  ;;  %v1528_v32 = vadd.f32 %v2879_v49, %v3923_v27 }
 0x158   : > { %v2920_v18 = vpop.f32.mrf.mxu1 }
 0x159   : > { %v2958_v63 = vpop.f32.mrf.mxu0  ;;  %v4026_v41 = vadd.f32 %v3080_v10, %v1581_v53  ;;  %v2921_v26 = vadd.f32 %v2920_v18, %v2919_v11  ;;  %v2888_v10 = vadd.f32 %v3961_v44, %v3959_v35  ;;  %v1625_v33 = vadd.f32 %v3977_v3, %v1528_v32 }
 0x15a   : > { %v3100_v19 = vpop.f32.mrf.mxu1  ;;  %v2959_v15 = vadd.f32 %v2958_v63, %v2957_v52 }
 0x15b   : > { %v2960_v34 = vpop.f32.mrf.mxu0  ;;  %v1584_v20 = vadd.f32 %v2921_v26, %v1343_v57  ;;  %v1541_v13 = vadd.f32 %v2888_v10, %v3929_v48 }
 0x15c   : > { %v2027_v9 = vpop.f32.mrf.mxu1 }
 0x15d   : > { %v2961_v42 = vpop.f32.mrf.mxu0  ;;  %v4032_v25 = vadd.f32 %v3081_v29, %v1584_v20  ;;  %v2028_v31 = vadd.f32 %v2956_v54, %v2027_v9  ;;  %v1638_v61 = vadd.f32 %v3985_v22, %v1541_v13  ;;  %v2894_v22 = vadd.f32 %v3975_v62, %v3971_v59 }
 0x15e   : > { %v2962_v23 = vadd.f32 %v2961_v42, %v2960_v34  ;;  %v1630_v34 = vadd.f32 %v3965_v55, %v1533_v43  ;;  %v3101_v17 = vpop.f32.mrf.mxu1  ;;  %v2891_v55 = vadd.f32 %v3967_v47, %v3963_v51 }
 0x15f   : > { %v2963_v21 = vpop.f32.mrf.mxu0  ;;  %v2090_v24 = vadd.f32 %v2028_v31, %v1622_v50  ;;  %v1549_v59 = vadd.f32 %v2894_v22, %v3933_v0 }
 0x160   : > { %v2036_v12 = vadd.f32 %v3100_v19, %v2962_v23  ;;  %v2030_v54 = vpop.f32.mrf.mxu1  ;;  %v1544_v11 = vadd.f32 %v2891_v55, %v3931_v56  ;;  %v2897_v56 = vadd.f32 %v3983_v7, %v3979_v1 }
 0x161   : > { %v2964_v18 = vpop.f32.mrf.mxu0  ;;  %v2031_v35 = vadd.f32 %v2959_v15, %v2030_v54  ;;  %v2208_v42 = vmul.f32 %v2090_v24, %v2090_v24 }
 0x162   : > { %v2965_v57 = vadd.f32 %v2964_v18, %v2963_v21  ;;  %v2092_v29 = vadd.f32 %v2036_v12, %v1630_v34  ;;  %v3104_v27 = vpop.f32.mrf.mxu1  ;;  %v1641_v15 = vadd.f32 %v3993_v28, %v1544_v11  ;;  %v2900_v28 = vadd.f32 %v3991_v38, %v3987_v39 }
 0x163   : > { %v2966_v19 = vpop.f32.mrf.mxu0  ;;  %v2091_v26 = vadd.f32 %v2031_v35, %v1625_v33  ;;  %v1552_v0 = vadd.f32 %v2897_v56, %v3935_v8 }
 0x164   : > { %v2039_v23 = vadd.f32 %v3101_v17, %v2965_v57  ;;  %v2210_v3 = vmul.f32 %v2092_v29, %v2092_v29  ;;  %v2043_v47 = vpop.f32.mrf.mxu1 }
 0x165   : > { %v2967_v44 = vpop.f32.mrf.mxu0  ;;  %v2727_v48 = vpack.c.bf16 %v2091_v26, %v2090_v24  ;;  %v2186_v12 = vadd.f32 %v2091_v26, %v2090_v24  ;;  %v2209_v4 = vmul.f32 %v2091_v26, %v2091_v26 }
 0x166   : > { %v2093_v58 = vadd.f32 %v2039_v23, %v1633_v36  ;;  %v2968_v21 = vadd.f32 %v2967_v44, %v2966_v19  ;;  %v3105_v49 = vpop.f32.mrf.mxu1 }
 0x167   : > { %v2969_v40 = vpop.f32.mrf.mxu0  ;;  %2728 = vst [vmem:[%s4051_s20] sm:$0xff] %v2727_v48   ;;  %v2224_v20 = vadd.f32 %v2209_v4, %v2208_v42  ;;  %v2187_v43 = vadd.f32 %v2186_v12, %v2092_v29 }
 0x168   : > { %v2732_v51 = vpack.c.bf16 %v2093_v58, %v2092_v29  ;;  %v2044_v52 = vadd.f32 %v2968_v21, %v2043_v47  ;;  %v2211_v9 = vmul.f32 %v2093_v58, %v2093_v58  ;;  %v2046_v18 = vpop.f32.mrf.mxu1  ;;  %v1646_v29 = vadd.f32 %v3981_v6, %v1549_v59 }
 0x169   : > { %v2970_v63 = vpop.f32.mrf.mxu0  ;;  %v2225_v10 = vadd.f32 %v2224_v20, %v2210_v3  ;;  %v2188_v34 = vadd.f32 %v2187_v43, %v2093_v58  ;;  %v1557_v6 = vadd.f32 %v2900_v28, %v3937_v45  ;;  %v2903_v3 = vadd.f32 %v3997_v14, %v3995_v60 }
 0x16a   : > { %2771 = vst [vmem:[%s4051_s20 + $0x8] sm:$0xff] %v2732_v51   ;;  %v2971_v53 = vadd.f32 %v2970_v63, %v2969_v40  ;;  %v2094_v16 = vadd.f32 %v2044_v52, %v1638_v61  ;;  %v3108_v32 = vpop.f32.mrf.mxu1  ;;  %v1649_v40 = vadd.f32 %v3989_v30, %v1552_v0 }
 0x16b   : > { %v2972_v31 = vpop.f32.mrf.mxu0  ;;  %v2226_v36 = vadd.f32 %v2225_v10, %v2211_v9  ;;  %v1654_v48 = vadd.f32 %v3999_v37, %v1557_v6  ;;  %v1560_v45 = vadd.f32 %v2903_v3, %v3939_v2  ;;  %v4150_v6 = vld [vmem:[#allocation8_spill] sm:$0xff] }
 0x16c   : > { %v2212_v50 = vmul.f32 %v2094_v16, %v2094_v16  ;;  %v2047_v17 = vadd.f32 %v2971_v53, %v2046_v18  ;;  %v2189_v19 = vadd.f32 %v2188_v34, %v2094_v16  ;;  %v2059_v7 = vpop.f32.mrf.mxu1 }
 0x16d   : > { %v2973_v57 = vpop.f32.mrf.mxu0  ;;  %v1657_v60 = vadd.f32 %v4003_v5, %v1560_v45 }
 0x16e   : > { %v2974_v62 = vadd.f32 %v2973_v57, %v2972_v31  ;;  %v2095_v24 = vadd.f32 %v2047_v17, %v1641_v15  ;;  %v2227_v33 = vadd.f32 %v2226_v36, %v2212_v50  ;;  %v3109_v42 = vpop.f32.mrf.mxu1  ;;  %v4141_v31 = vld [vmem:[#allocation6_spill] sm:$0xff] }
 0x16f   : > { %v2975_v54 = vpop.f32.mrf.mxu0  ;;  %v2909_v15 = vadd.f32 %v4141_v31, %v4005_v46 }
 0x170   : > { %v2052_v23 = vadd.f32 %v3104_v27, %v2974_v62  ;;  %v2737_v35 = vpack.c.bf16 %v2095_v24, %v2094_v16  ;;  %v2190_v44 = vadd.f32 %v2189_v19, %v2095_v24  ;;  %v2213_v55 = vmul.f32 %v2095_v24, %v2095_v24  ;;  %v2062_v11 = vpop.f32.mrf.mxu1  ;;  %v4142_v62 = vld [vmem:[#allocation9_spill] sm:$0xff]  ;;  %v4143_v19 = vld [vmem:[#allocation10_spill] sm:$0xff] }
 0x171   : > { %v2976_v1 = vpop.f32.mrf.mxu0  ;;  %v2912_v5 = vadd.f32 %v4143_v19, %v4142_v62  ;;  %v4144_v24 = vld [vmem:[#allocation2_spill] sm:$0xff] }
 0x172   : > { %v2096_v13 = vadd.f32 %v2052_v23, %v1646_v29  ;;  %v2977_v58 = vadd.f32 %v2976_v1, %v2975_v54  ;;  %2772 = vst [vmem:[%s4051_s20 + $0x10] sm:$0xff] %v2737_v35   ;;  %v2228_v21 = vadd.f32 %v2227_v33, %v2213_v55  ;;  %v3112_v2 = vpop.f32.mrf.mxu1  ;;  %v1568_v54 = vadd.f32 %v2909_v15, %v4144_v24  ;;  %v4145_v29 = vld [vmem:[#allocation7_spill] sm:$0xff] }
 0x173   : > { %v2978_v26 = vpop.f32.mrf.mxu0 }
 0x174   : > { %v2191_v61 = vadd.f32 %v2190_v44, %v2096_v13  ;;  %v2214_v39 = vmul.f32 %v2096_v13, %v2096_v13  ;;  %v2055_v38 = vadd.f32 %v3105_v49, %v2977_v58  ;;  %v2075_v35 = vpop.f32.mrf.mxu1  ;;  %v4146_v44 = vld [vmem:[#allocation5_spill] sm:$0xff] }
 0x175   : > { %v2979_v27 = vpop.f32.mrf.mxu0  ;;  %v1665_v55 = vadd.f32 %v4146_v44, %v1568_v54 }
 0x176   : > { %v2229_v51 = vadd.f32 %v2228_v21, %v2214_v39  ;;  %v2097_v8 = vadd.f32 %v2055_v38, %v1649_v40  ;;  %v2980_v47 = vadd.f32 %v2979_v27, %v2978_v26  ;;  %v4148_v21 = vld [vmem:[#allocation12_spill] sm:$0xff]  ;;  %v4149_v26 = vld [vmem:[#allocation13_spill] sm:$0xff] }
 0x177   : > { %v2981_v12 = vpop.f32.mrf.mxu0  ;;  %v2915_v40 = vadd.f32 %v4149_v26, %v4148_v21 }
 0x178   : > { %v2742_v4 = vpack.c.bf16 %v2097_v8, %v2096_v13  ;;  %v2215_v52 = vmul.f32 %v2097_v8, %v2097_v8  ;;  %v2060_v30 = vadd.f32 %v2980_v47, %v2059_v7  ;;  %v2192_v63 = vadd.f32 %v2191_v61, %v2097_v8  ;;  %v4147_v13 = vld [vmem:[#allocation3_spill] sm:$0xff] }
 0x179   : > { %v2982_v22 = vpop.f32.mrf.mxu0 }
 0x17a   : > { %2773 = vst [vmem:[%s4051_s20 + $0x18] sm:$0xff] %v2742_v4   ;;  %v2098_v53 = vadd.f32 %v2060_v30, %v1654_v48  ;;  %v2230_v49 = vadd.f32 %v2229_v51, %v2215_v52  ;;  %v2983_v20 = vadd.f32 %v2982_v22, %v2981_v12  ;;  %v3113_v51 = vpop.f32.mrf.mxu1 }
 0x17b   : > { %v2984_v43 = vpop.f32.mrf.mxu0 }
 0x17c   : > { %v2193_v14 = vadd.f32 %v2192_v63, %v2098_v53  ;;  %v2216_v9 = vmul.f32 %v2098_v53, %v2098_v53  ;;  %v2063_v37 = vadd.f32 %v2983_v20, %v2062_v11  ;;  %v2078_v11 = vpop.f32.mrf.mxu1 }
 0x17d   : > { %v2985_v16 = vpop.f32.mrf.mxu0 }
 0x17e   : > { %v2231_v18 = vadd.f32 %v2230_v49, %v2216_v9  ;;  %v2099_v10 = vadd.f32 %v2063_v37, %v1657_v60  ;;  %v2986_v34 = vadd.f32 %v2985_v16, %v2984_v43 }
 0x17f   : > { %v2987_v50 = vpop.f32.mrf.mxu0 }
 0x180   : > { %v2747_v17 = vpack.c.bf16 %v2099_v10, %v2098_v53  ;;  %v2194_v57 = vadd.f32 %v2193_v14, %v2099_v10  ;;  %v2217_v56 = vmul.f32 %v2099_v10, %v2099_v10  ;;  %v2068_v59 = vadd.f32 %v3108_v32, %v2986_v34  ;;  %v4152_v53 = vld [vmem:[#allocation11_spill] sm:$0xff] }
 0x181   : > { %v2988_v36 = vpop.f32.mrf.mxu0  ;;  %v1573_v32 = vadd.f32 %v2912_v5, %v4147_v13 }
 0x182   : > { %2774 = vst [vmem:[%s4051_s20 + $0x20] sm:$0xff] %v2747_v17   ;;  %v2232_v28 = vadd.f32 %v2231_v18, %v2217_v56  ;;  %v2100_v23 = vadd.f32 %v2068_v59, %v4145_v29  ;;  %v2989_v46 = vadd.f32 %v2988_v36, %v2987_v50 }
 0x183   : > { %v2990_v33 = vpop.f32.mrf.mxu0  ;;  %v1670_v27 = vadd.f32 %v4150_v6, %v1573_v32 }
 0x184   : > { %v2195_v1 = vadd.f32 %v2194_v57, %v2100_v23  ;;  %v2218_v7 = vmul.f32 %v2100_v23, %v2100_v23  ;;  %v2071_v0 = vadd.f32 %v3109_v42, %v2989_v46  ;;  %v4151_v42 = vld [vmem:[#allocation4_spill] sm:$0xff] }
 0x185   : > { %v2991_v58 = vpop.f32.mrf.mxu0  ;;  %v1576_v52 = vadd.f32 %v2915_v40, %v4151_v42 }
 0x186   : > { %v2233_v61 = vadd.f32 %v2232_v28, %v2218_v7  ;;  %v2101_v39 = vadd.f32 %v2071_v0, %v1665_v55  ;;  %v2992_v38 = vadd.f32 %v2991_v58, %v2990_v33 }
 0x187   : > { %v2993_v3 = vpop.f32.mrf.mxu0  ;;  %v1673_v49 = vadd.f32 %v4152_v53, %v1576_v52 }
 0x188   : > { %v2752_v8 = vpack.c.bf16 %v2101_v39, %v2100_v23  ;;  %v2219_v47 = vmul.f32 %v2101_v39, %v2101_v39  ;;  %v2076_v48 = vadd.f32 %v2992_v38, %v2075_v35  ;;  %v2196_v12 = vadd.f32 %v2195_v1, %v2101_v39 }
 0x189   : > { %v2994_v4 = vpop.f32.mrf.mxu0 }
 0x18a   : > { %2775 = vst [vmem:[%s4051_s20 + $0x28] sm:$0xff] %v2752_v8   ;;  %v2102_v30 = vadd.f32 %v2076_v48, %v1670_v27  ;;  %v2234_v63 = vadd.f32 %v2233_v61, %v2219_v47  ;;  %v2995_v22 = vadd.f32 %v2994_v4, %v2993_v3 }
 0x18b   : > { %v2996_v45 = vpop.f32.mrf.mxu0 }
 0x18c   : > { %v2197_v20 = vadd.f32 %v2196_v12, %v2102_v30  ;;  %v2220_v43 = vmul.f32 %v2102_v30, %v2102_v30  ;;  %v2079_v60 = vadd.f32 %v2995_v22, %v2078_v11 }
 0x18d   : > { %v2997_v14 = vpop.f32.mrf.mxu0 }
 0x18e   : > { %v2235_v9 = vadd.f32 %v2234_v63, %v2220_v43  ;;  %v2103_v37 = vadd.f32 %v2079_v60, %v1673_v49  ;;  %v2998_v16 = vadd.f32 %v2997_v14, %v2996_v45 }
 0x18f   : > { %v2999_v31 = vpop.f32.mrf.mxu0 }
 0x190   : > { %v2757_v15 = vpack.c.bf16 %v2103_v37, %v2102_v30  ;;  %v2198_v18 = vadd.f32 %v2197_v20, %v2103_v37  ;;  %v2221_v10 = vmul.f32 %v2103_v37, %v2103_v37  ;;  %v2084_v34 = vadd.f32 %v3112_v2, %v2998_v16 }
 0x191   : > { %v3000_v50 = vpop.f32.mrf.mxu0 }
 0x192   : > { %2776 = vst [vmem:[%s4051_s20 + $0x30] sm:$0xff] %v2757_v15   ;;  %v2236_v17 = vadd.f32 %v2235_v9, %v2221_v10  ;;  %v2104_v57 = vadd.f32 %v2084_v34, %v4026_v41  ;;  %v3001_v56 = vadd.f32 %v3000_v50, %v2999_v31 }
 0x194   : > { %v2199_v59 = vadd.f32 %v2198_v18, %v2104_v57  ;;  %v2222_v62 = vmul.f32 %v2104_v57, %v2104_v57  ;;  %v2087_v19 = vadd.f32 %v3113_v51, %v3001_v56 }
 0x196   : > { %v2237_v5 = vadd.f32 %v2236_v17, %v2222_v62  ;;  %v2105_v36 = vadd.f32 %v2087_v19, %v4032_v25 }
 0x198   : > { %v2762_v24 = vpack.c.bf16 %v2105_v36, %v2104_v57  ;;  %v2200_v54 = vadd.f32 %v2199_v59, %v2105_v36  ;;  %v2223_v28 = vmul.f32 %v2105_v36, %v2105_v36 }
 0x19a   : > { %2777 = vst [vmem:[%s4051_s20 + $0x38] sm:$0xff] %v2762_v24   ;;  %v2201_v2 = vrot.slane %v2200_v54, 4  ;;  %v2238_v29 = vadd.f32 %v2237_v5, %v2223_v28 }
 0x19c   : > { %v2202_v23 = vadd.f32 %v2201_v2, %v2200_v54  ;;  %v2239_v46 = vrot.slane %v2238_v29, 4 }
 0x19e   : > { %v2203_v41 = vrot.slane %v2202_v23, 2  ;;  %v2240_v33 = vadd.f32 %v2239_v46, %v2238_v29 }
 0x1a0   : > { %v2204_v35 = vadd.f32 %v2203_v41, %v2202_v23  ;;  %v2241_v44 = vrot.slane %v2240_v33, 2 }
 0x1a2   : > { %v2205_v55 = vrot.slane %v2204_v35, 1  ;;  %v2242_v1 = vadd.f32 %v2241_v44, %v2240_v33 }
 0x1a4   : > { %v2206_v25 = vadd.f32 %v2205_v55, %v2204_v35  ;;  %v2243_v7 = vrot.slane %v2242_v1, 1 }
 0x1a6   : > { %2207 = vst [vmem:[%s467_s8] sm:$0x1] %v2206_v25  ;;  %v2244_v0 = vadd.f32 %v2243_v7, %v2242_v1 }
 0x1a8   : > { %2245 = vst [vmem:[%s467_s8 + $0x1] sm:$0x1] %v2244_v0 }
 0x1a9 PF: > { %s18_s28 = sadd.s32 1, %s3266_s28   ;;  %s4153_s24 = smov %s3258_s26 }
 0x1aa   : > { %p15_p12 = scmp.ge.s32.totalorder %s18_s28, 6   ;;  %s4154_s25 = smov %s3262_s27 }
 0x1ab   : > { %s4155_s26 = smov %s4158_s29  ;;  %s4156_s27 = smov %s4162_s30 }
 0x1ac   :  { %17 = sbr.rel (!%p15_p12) target bundleno = 3 (0x3), region = 94 }

// kernel: double_conv.3
= control target key start
LH: loop header
LB: loop body
LE: loop exit
PB: predicated region body
PF: predicated region fallthrough
CT: control target
= control target key end

     0   :  { %s2811_s18 = smov 0   ;;  %s2813_s19 = smov 0   ;;  %s3544_s0 = inlined_call_operand.vmem [shape: bf16[2,16,16,4], index: 0, kind: input, shape index: {}, may-alias: {0,1,2}]   ;;  %s3545_s1 = inlined_call_operand.vmem [shape: bf16[2,16,16,4], index: 1, kind: input, shape index: {}, may-alias: {0,1,2}]   ;;  %s3546_s2 = inlined_call_operand.vmem [shape: bf16[2,16,16,4], index: 2, kind: input, shape index: {}, may-alias: {0,1,2}]   ;;  %s3547_s3 = inlined_call_operand.vmem [shape: bf16[9,4,128], index: 3, kind: input, shape index: {}]   ;;  %s3548_s4 = inlined_call_operand.vmem [shape: bf16[2,16,16,128], index: 4, kind: output, shape index: {0}]   ;;  %s3549_s5 = inlined_call_operand.vmem [shape: f32[2,2,2,128], index: 5, kind: output, shape index: {1}]  }
   0x1   :  { %s2815_s20 = smov 0   ;;  %s2817_s21 = smov 0  }
   0x2   :  { %s2819_s22 = smov 0  }
   0x3 LB: > { %s25_s23 = sadd.s32 1, %s2771_s20  ;;  %s28_s24 = sadd.s32 1, %s2775_s21  ;;  %s2779_s22 = sphi %s2819_s22, %s16_s22   ;;  %s2775_s21 = sphi %s2817_s21, %s3608_s21   ;;  %s2771_s20 = sphi %s2815_s20, %s3607_s20   ;;  %s2767_s19 = sphi %s2813_s19, %s3606_s19   ;;  %s2763_s18 = sphi %s2811_s18, %s3605_s18  }
   0x4   : > { %p26_p0 = scmp.ge.s32.totalorder %s25_s23, 2  ;;  %p2231_p1 = scmp.ge.s32.totalorder %s2779_s22, 1 }
   0x5   : > { %p278_p2 = scmp.lt.s32.totalorder %s2779_s22, 5 }
   0x6   : > { %s3610_s23 = smov (%p26_p0, %s25_s23), 0  ;;  %s3612_s24 = smov (!%p26_p0, %s28_s24), %s2775_s21 }
   0x7   : > { %p279_p3 = pnand %p2231_p1, %p278_p2  ;;  %p30_p4 = scmp.ge.s32.totalorder %s3612_s24, 2 }
   0x9   : > { %s3614_s24 = smov (%p30_p4, %s3612_s24), 0  ;;  %282 = sbr.rel (%p279_p3) target bundleno = 408 (0x198), region = 36 }
   0xe   : > { %v2269_v0 = vld [vmem:[%s3547_s3 + $0x2] sm:$0x3]  ;;  %vm735_vm0 = vcmask 1041408   ;;  %s2847_s27 = sshll.u32 %s2763_s18, 3  ;;  %p354_p5 = scmp.lt.s32.totalorder %s2767_s19, 1  ;;  %vm587_vm1 = vcmask 1040384  }
   0xf   : > { %2684 = vmatprep.subr.msk.bf16.mxu1 %vm735_vm0, %v2269_v0  ;;  %v737_v1 = vsel %vm735_vm0, %v2269_v0, 0  ;;  %2683 = vmatprep.subr.msk.bf16.mxu0 %vm735_vm0, %v2269_v0  ;;  %p370_p6 = scmp.lt.s32.totalorder %s2847_s27, 15  ;;  %v610_v2 = vld [vmem:[%s3547_s3] sm:$0x3]  ;;  %v2861_v3 = vld [vmem:[%s3547_s3 + $0x4] sm:$0x3] }
  0x10   : > { %2682 = vmatpush3.bf16.msra.mxu1 %v737_v1  ;;  %s3616_s19 = smov (!%p354_p5, %s2767_s19), 1  ;;  %2520 = vmatpush3.bf16.msra.mxu0 %v737_v1  ;;  %s2233_s9 = sadd.s32 4294967295, %s2847_s27  ;;  %vm588_vm2 = vsmask.f32 256  ;;  %v2883_v4 = vsel %vm735_vm0, %v610_v2, 0  ;;  %vm710_vm5 = vcmask 31744  }
  0x11   : > { %s371_s7 = scalar_select %p370_p6, %s2847_s27, 15  ;;  %2685 = vmatprep.subr.msk.bf16.mxu1 %vm735_vm0, %v610_v2  ;;  %2686 = vmatprep.subr.msk.bf16.mxu0 %vm735_vm0, %v2861_v3  ;;  %vm2892_vm3 = vmand %vm587_vm1, %vm588_vm2  ;;  %vm611_vm4 = vsmask.f32 7424  ;;  %v2973_v1 = vld [vmem:[%s3547_s3 + $0x6] sm:$0x3]  ;;  %vm968_vm7 = vcmask 1046528  }
  0x12   : > { %s2868_s8 = sshll.u32 %s3616_s19, 5  ;;  %p352_p7 = scmp.gt.s32.totalorder %s2233_s9, 0 }
  0x13   : > { %s2243_s10 = sshll.u32 %s371_s7, 1  ;;  %p2234_p8 = scmp.lt.s32.totalorder %s2233_s9, 15 }
  0x14   : > { %s2872_s11 = sadd.s32 %s2243_s10, %s2868_s8  ;;  %p415_p9 = scmp.gt.s32.totalorder %s2763_s18, 0 }
  0x15   : > { %s2245_s12 = sshll.u32 %s2872_s11, 2  ;;  %s3618_s9 = smov (!%p352_p7, %s2233_s9), 0 }
  0x16   : > { %s2880_s15 = scalar_lea.vmem %s3545_s1, %s2245_s12  ;;  %s2374_s16 = sadd.s32 8, %s2847_s27 }
  0x17   : > { %v2733_v5 = vld [vmem:[%s2880_s15 + $0x18] sm:$0xff]   ;;  %v2734_v6 = vld [vmem:[%s2880_s15 + $0x20] sm:$0xff]   ;;  %s3620_s9 = smov (!%p2234_p8, %s3618_s9), 15  ;;  %v2736_v18 = vld [vmem:[%s2880_s15 + $0x28] sm:$0xff]   ;;  %p2916_p10 = scmp.lt.s32.totalorder %s2374_s16, 15 }
  0x18   : > { %v526_v7 = vshrl.u32 %v2733_v5, 16  ;;  %v529_v8 = vshll.u32 %v2733_v5, 16  ;;  %v2735_v9 = vld [vmem:[%s2880_s15] sm:$0xff]   ;;  %v533_v10 = vshrl.u32 %v2734_v6, 16  ;;  %v536_v11 = vshll.u32 %v2734_v6, 16  ;;  %s2239_s25 = sshll.u32 %s3620_s9, 1 }
  0x19   : > { %s418_s17 = scalar_select %p415_p9, 1, 0  ;;  %v505_v14 = vshrl.u32 %v2735_v9, 16  ;;  %v508_v15 = vshll.u32 %v2735_v9, 16  ;;  %v540_v26 = vshrl.u32 %v2736_v18, 16  ;;  %v2737_v48 = vld [vmem:[%s2880_s15 + $0x30] sm:$0xff]  }
  0x1a   : > { %v528_v12 = vrot.slane %v526_v7, 7  ;;  %v535_v16 = vrot.slane %v533_v10, 7  ;;  %s360_s26 = sadd.s32 %s2868_s8, %s2239_s25  ;;  %v2738_v52 = vld [vmem:[%s2880_s15 + $0x8] sm:$0xff]   ;;  %s3622_s16 = smov (!%p2916_p10, %s2374_s16), 15  ;;  %v543_v59 = vshll.u32 %v2736_v18, 16  ;;  %v547_v5 = vshrl.u32 %v2737_v48, 16 }
  0x1b   : > { %v419_v17 = vstv %s418_s17  ;;  %s2241_s28 = sshll.u32 %s360_s26, 2  ;;  %v507_v22 = vrot.slane %v505_v14, 7  ;;  %v542_v51 = vrot.slane %v540_v26, 7  ;;  %p408_p11 = scmp.lt.s32.totalorder %s2763_s18, 1  ;;  %v550_v6 = vshll.u32 %v2737_v48, 16 }
  0x1c   : > { %v531_v19 = vor.u32 %v529_v8, %v528_v12  ;;  %v2900_v20 = vsel %vm2892_vm3, %v528_v12, 0  ;;  %vm2902_vm6 = vcmp.eq.s32.totalorder %v419_v17, 1  ;;  %v538_v24 = vor.u32 %v536_v11, %v535_v16  ;;  %s362_s6 = scalar_lea.vmem %s3544_s0, %s2241_s28  ;;  %s3624_s16 = smov (!%p2916_p10, %s3622_s16), 15 }
  0x1d   : > { %v668_v23 = vshll.u32 %v2900_v20, 16  ;;  %v2909_v25 = vsel %vm2892_vm3, %v535_v16, 0  ;;  %v416_v29 = vld [vmem:[%s362_s6] sm:$0xf]  ;;  %v417_v30 = vld [vmem:[%s362_s6 + $0x4] sm:$0xf]  ;;  %v510_v31 = vor.u32 %v508_v15, %v507_v22  ;;  %v545_v2 = vor.u32 %v543_v59, %v542_v51 }
  0x1e   : > { %v2922_v27 = vsel %vm2892_vm3, 0, %v531_v19  ;;  %v680_v28 = vshll.u32 %v2909_v25, 16  ;;  %v2929_v35 = vsel %vm2892_vm3, 0, %v538_v24  ;;  %v421_v39 = vsel %vm2902_vm6, %v416_v29, 0  ;;  %s409_s10 = scalar_select %p408_p11, %s2763_s18, 1 }
  0x1f   : > { %v661_v32 = vshrl.u32 %v2922_v27, 16  ;;  %v663_v33 = vshll.u32 %v2922_v27, 16  ;;  %v670_v34 = vrot.slane %v668_v23, 1  ;;  %v673_v36 = vshrl.u32 %v2929_v35, 16  ;;  %s2980_s13 = sshll.u32 %s3624_s16, 1  ;;  %s2257_s14 = sshll.u32 %s3616_s19, 1 }
  0x20   : > { %v675_v37 = vshll.u32 %v2929_v35, 16  ;;  %v682_v38 = vrot.slane %v680_v28, 1  ;;  %v422_v41 = vsel %vm2902_vm6, %v417_v30, 0  ;;  %v2939_v42 = vsel %vm2892_vm3, 0, %v510_v31  ;;  %s388_s17 = sadd.s32 %s2980_s13, %s2868_s8  ;;  %s2992_s25 = sadd.s32 %s2257_s14, %s409_s10  ;;  %v2739_v23 = vld [vmem:[%s2880_s15 + $0x10] sm:$0xff]  }
  0x21   : > { %v665_v40 = vrot.slane %v663_v33, 1  ;;  %v2943_v43 = vsel %vm2892_vm3, %v507_v22, 0  ;;  %v2259_v45 = vcombine.low %v421_v39, %v422_v41  ;;  %v625_v46 = vshrl.u32 %v2939_v42, 16  ;;  %s2252_s26 = sshll.u32 %s388_s17, 2  ;;  %s3483_s19 = scalar_lea.vmem %s3548_s4, %s2245_s12 }
  0x22   : > { %v677_v44 = vrot.slane %v675_v37, 1  ;;  %v627_v47 = vshll.u32 %v2939_v42, 16  ;;  %v632_v50 = vshll.u32 %v2943_v43, 16  ;;  %v2960_v60 = vsel %vm2892_vm3, %v542_v51, 0  ;;  %s390_s29 = scalar_lea.vmem %s3546_s2, %s2252_s26  ;;  %s2258_s11 = sshll.u32 %s2992_s25, 1 }
  0x23   : > { %v666_v49 = vor.u32 %v665_v40, %v661_v32  ;;  %v498_v54 = vshrl.u32 %v2259_v45, 16  ;;  %v501_v55 = vshll.u32 %v2259_v45, 16  ;;  %v692_v0 = vshll.u32 %v2960_v60, 16  ;;  %s426_s30 = scalar_select %p408_p11, 1, 0 }
  0x24   : > { %v678_v53 = vor.u32 %v677_v44, %v673_v36  ;;  %v629_v56 = vrot.slane %v627_v47, 1  ;;  %v634_v58 = vrot.slane %v632_v50, 1  ;;  %v512_v7 = vshrl.u32 %v2738_v52, 16  ;;  %s413_s26 = scalar_lea.vmem %s3549_s5, %s2258_s11 }
  0x25   : > { %v2956_v57 = vsel %vm611_vm4, %v666_v49, %v670_v34  ;;  %v500_v62 = vrot.slane %v498_v54, 7  ;;  %v1020_v10 = vsel %vm735_vm0, %v2861_v3, 0  ;;  %v549_v14 = vrot.slane %v547_v5, 7  ;;  %v3045_v54 = vld [vmem:[%s3547_s3 + $0x8] sm:$0x3] }
  0x26   : > { %2529 = vmatprep.mubr.msk.bf16.mxu1 %vm710_vm5, %v2956_v57  ;;  %v2967_v61 = vsel %vm611_vm4, %v678_v53, %v682_v38  ;;  %v630_v63 = vor.u32 %v629_v56, %v625_v46  ;;  %v514_v17 = vrot.slane %v512_v7, 7  ;;  %v694_v21 = vrot.slane %v692_v0, 1  ;;  %v2740_v7 = vld [vmem:[%s2880_s15 + $0x38] sm:$0xff]  }
  0x27   : > { %2530 = vmatmul.mubr.msk.bf16.vlgmr.msra.gmra.mxu1 %vm710_vm5, %v2967_v61  ;;  %v503_v8 = vor.u32 %v501_v55, %v500_v62  ;;  %v2986_v9 = vsel %vm2892_vm3, %v500_v62, 0  ;;  %v552_v22 = vor.u32 %v550_v6, %v549_v14  ;;  %v3015_v26 = vsel %vm2892_vm3, %v549_v14, 0 }
  0x28   : > { %2538 = vmatpush3.bf16.msra.mxu1 %v2883_v4  ;;  %v620_v11 = vshll.u32 %v2986_v9, 16  ;;  %v2996_v12 = vsel %vm611_vm4, %v630_v63, %v634_v58  ;;  %v3000_v4 = vsel %vm2892_vm3, 0, %v545_v2  ;;  %v515_v28 = vshll.u32 %v2738_v52, 16 }
  0x29   : > { %2687 = vmatprep.subr.msk.bf16.mxu1 %vm735_vm0, %v2973_v1  ;;  %v3006_v3 = vsel %vm2892_vm3, 0, %v503_v8  ;;  %v685_v15 = vshrl.u32 %v3000_v4, 16  ;;  %v687_v16 = vshll.u32 %v3000_v4, 16  ;;  %v3019_v29 = vsel %vm2892_vm3, %v514_v17, 0 }
  0x2a   : > { %v613_v18 = vshrl.u32 %v3006_v3, 16  ;;  %v615_v19 = vshll.u32 %v3006_v3, 16  ;;  %v622_v31 = vrot.slane %v620_v11, 1  ;;  %v3023_v32 = vsel %vm2892_vm3, 0, %v552_v22 }
  0x2b   : > { %v689_v24 = vrot.slane %v687_v16, 1  ;;  %v704_v33 = vshll.u32 %v3015_v26, 16  ;;  %v697_v36 = vshrl.u32 %v3023_v32, 16  ;;  %v699_v37 = vshll.u32 %v3023_v32, 16 }
  0x2c   : > { %v617_v30 = vrot.slane %v615_v19, 1  ;;  %v517_v38 = vor.u32 %v515_v28, %v514_v17  ;;  %v644_v41 = vshll.u32 %v3019_v29, 16  ;;  %v519_v44 = vshrl.u32 %v2739_v23, 16  ;;  %v424_v19 = vld [vmem:[%s390_s29] sm:$0xf] }
  0x2d   : > { %v690_v34 = vor.u32 %v689_v24, %v685_v15  ;;  %v706_v40 = vrot.slane %v704_v33, 1  ;;  %v701_v46 = vrot.slane %v699_v37, 1  ;;  %v522_v48 = vshll.u32 %v2739_v23, 16  ;;  %v3094_v24 = vld [vmem:[%s3547_s3 + $0xa] sm:$0x3] }
  0x2e   : > { %v618_v39 = vor.u32 %v617_v30, %v613_v18  ;;  %v3034_v47 = vsel %vm2892_vm3, 0, %v517_v38  ;;  %v521_v52 = vrot.slane %v519_v44, 7  ;;  %v646_v56 = vrot.slane %v644_v41, 1 }
  0x2f   : > { %v3030_v45 = vsel %vm611_vm4, %v690_v34, %v694_v21  ;;  %v637_v50 = vshrl.u32 %v3034_v47, 16  ;;  %v639_v51 = vshll.u32 %v3034_v47, 16  ;;  %v702_v53 = vor.u32 %v701_v46, %v697_v36  ;;  %v425_v21 = vld [vmem:[%s390_s29 + $0x4] sm:$0xf] }
  0x30   : > { %v623_v49 = vsel %vm611_vm4, %v618_v39, %v622_v31  ;;  %2533 = vmatprep.mubr.msk.bf16.mxu1 %vm710_vm5, %v3030_v45  ;;  %v524_v58 = vor.u32 %v522_v48, %v521_v52  ;;  %v3051_v59 = vsel %vm2892_vm3, %v521_v52, 0  ;;  %v970_v8 = vrot.slane %v2986_v9, 1 }
  0x31   : > { %2521 = vmatprep.mubr.msk.bf16.mxu0 %vm710_vm5, %v623_v49  ;;  %v641_v55 = vrot.slane %v639_v51, 1  ;;  %v3057_v62 = vsel %vm611_vm4, %v702_v53, %v706_v40  ;;  %v656_v63 = vshll.u32 %v3051_v59, 16  ;;  %v969_v11 = vrot.slane %v3006_v3, 1 }
  0x32   : > { %2522 = vmatmul.mubr.msk.bf16.vlgmr.msra.gmra.mxu0 %vm710_vm5, %v2996_v12  ;;  %2534 = vmatmul.mubr.msk.bf16.gmra.mxu1 %vm710_vm5, %v3057_v62  ;;  %v3064_v2 = vsel %vm2892_vm3, 0, %v524_v58  ;;  %v554_v17 = vshrl.u32 %v2740_v7, 16  ;;  %v557_v18 = vshll.u32 %v2740_v7, 16  ;;  %v1141_v9 = vsel %vm735_vm0, %v2973_v1, 0 }
  0x33   : > { %2556 = vmatpush3.bf16.msra.mxu0 %v1020_v10  ;;  %v642_v0 = vor.u32 %v641_v55, %v637_v50  ;;  %v649_v5 = vshrl.u32 %v3064_v2, 16  ;;  %v651_v6 = vshll.u32 %v3064_v2, 16  ;;  %2539 = vmatprep.mubr.msk.bf16.mxu1 %vm710_vm5, %v3006_v3  ;;  %v658_v15 = vrot.slane %v656_v63, 1  ;;  %v2322_v63 = vld [vmem:[%s3547_s3 + $0xc] sm:$0x3] }
  0x34   : > { %2688 = vmatprep.subr.msk.bf16.mxu0 %vm735_vm0, %v3045_v54  ;;  %v971_v22 = vsel %vm968_vm7, %v969_v11, %v970_v8  ;;  %v427_v23 = vstv %s426_s30  ;;  %v556_v28 = vrot.slane %v554_v17, 7  ;;  %v973_v30 = vrot.slane %v2943_v43, 1 }
  0x35   : > { %v3078_v10 = vsel %vm611_vm4, %v642_v0, %v646_v56  ;;  %v653_v14 = vrot.slane %v651_v6, 1  ;;  %vm428_vm8 = vcmp.eq.s32.totalorder %v427_v23, 1  ;;  %v972_v33 = vrot.slane %v2939_v42, 1 }
  0x36   : > { %2525 = vmatprep.mubr.msk.bf16.mxu0 %vm710_vm5, %v3078_v10  ;;  %v429_v1 = vsel %vm428_vm8, %v424_v19, 0  ;;  %v430_v31 = vsel %vm428_vm8, %v425_v21, 0  ;;  %v559_v34 = vor.u32 %v557_v18, %v556_v28  ;;  %v608_v36 = vsel %vm2892_vm3, %v556_v28, 0 }
  0x37   : > { %v654_v16 = vor.u32 %v653_v14, %v649_v5  ;;  %v2268_v37 = vcombine.low %v429_v1, %v430_v31  ;;  %v975_v43 = vrot.slane %v3034_v47, 1  ;;  %v976_v38 = vrot.slane %v3019_v29, 1 }
  0x38   : > { %v1263_v39 = vshll.u32 %v608_v36, 16  ;;  %v1391_v40 = vrot.slane %v608_v36, 1  ;;  %v3113_v41 = vsel %vm2892_vm3, 0, %v559_v34  ;;  %v3119_v51 = vsel %vm968_vm7, %v972_v33, %v973_v30 }
  0x39   : > { %v3089_v3 = vsel %vm611_vm4, %v654_v16, %v658_v15  ;;  %v561_v44 = vshrl.u32 %v2268_v37, 16  ;;  %v564_v46 = vshll.u32 %v2268_v37, 16  ;;  %v1256_v48 = vshrl.u32 %v3113_v41, 16 }
  0x3a   : > { %2526 = vmatmul.mubr.msk.bf16.gmra.mxu0 %vm710_vm5, %v3089_v3  ;;  %2540 = vmatmul.mubr.msk.bf16.vlgmr.msra.gmra.mxu1 %vm710_vm5, %v2939_v42  ;;  %v1258_v49 = vshll.u32 %v3113_v41, 16  ;;  %v1390_v50 = vrot.slane %v3113_v41, 1  ;;  %v1273_v29 = vsel %vm735_vm0, %v3045_v54, 0  ;;  %v3124_v53 = vsel %vm968_vm7, %v975_v43, %v976_v38  ;;  %v2331_v38 = vld [vmem:[%s3547_s3 + $0xe] sm:$0x3] }
  0x3b   : > { %2574 = vmatpush3.bf16.msra.mxu1 %v1141_v9  ;;  %2557 = vmatprep.mubr.msk.bf16.mxu0 %vm710_vm5, %v971_v22  ;;  %v563_v52 = vrot.slane %v561_v44, 7  ;;  %v1265_v56 = vrot.slane %v1263_v39, 1  ;;  %v979_v54 = vrot.slane %v3051_v59, 1  ;;  %v978_v11 = vrot.slane %v3064_v2, 1 }
  0x3c   : > { %2543 = vmatprep.mubr.msk.bf16.mxu1 %vm710_vm5, %v3034_v47  ;;  %2689 = vmatprep.subr.msk.bf16.mxu1 %vm735_vm0, %v3094_v24  ;;  %v1260_v55 = vrot.slane %v1258_v49, 1  ;;  %v3127_v58 = vsel %vm968_vm7, %v1390_v50, %v1391_v40  ;;  %v981_v14 = vrot.slane %v2922_v27, 1  ;;  %v982_v15 = vrot.slane %v2900_v20, 1 }
  0x3d   : > { %v566_v0 = vor.u32 %v564_v46, %v563_v52  ;;  %v609_v5 = vsel %vm2892_vm3, %v563_v52, 0  ;;  %v3161_v9 = vsel %vm968_vm7, %v978_v11, %v979_v54  ;;  %v984_v30 = vrot.slane %v2929_v35, 1 }
  0x3e   : > { %v1261_v6 = vor.u32 %v1260_v55, %v1256_v48  ;;  %v1642_v7 = vshll.u32 %v609_v5, 16  ;;  %v1770_v8 = vrot.slane %v609_v5, 1  ;;  %v3164_v22 = vsel %vm968_vm7, %v981_v14, %v982_v15 }
  0x3f   : > { %v3146_v16 = vsel %vm2892_vm3, 0, %v566_v0  ;;  %v985_v1 = vrot.slane %v2909_v25, 1  ;;  %v987_v31 = vrot.slane %v3000_v4, 1  ;;  %v988_v33 = vrot.slane %v2960_v60, 1 }
  0x40   : > { %v3152_v59 = vsel %vm611_vm4, %v1261_v6, %v1265_v56  ;;  %v1635_v17 = vshrl.u32 %v3146_v16, 16  ;;  %v1637_v18 = vshll.u32 %v3146_v16, 16  ;;  %v1769_v19 = vrot.slane %v3146_v16, 1 }
  0x41   : > { %v1644_v20 = vrot.slane %v1642_v7, 1  ;;  %v986_v34 = vsel %vm968_vm7, %v984_v30, %v985_v1  ;;  %v989_v36 = vsel %vm968_vm7, %v987_v31, %v988_v33  ;;  %v990_v25 = vrot.slane %v3023_v32, 1 }
  0x42   : > { %2558 = vmatmul.mubr.msk.bf16.vlgmr.msra.gmra.mxu0 %vm710_vm5, %v3119_v51  ;;  %2544 = vmatmul.mubr.msk.bf16.gmra.mxu1 %vm710_vm5, %v3064_v2  ;;  %v1639_v21 = vrot.slane %v1637_v18, 1  ;;  %v3158_v13 = vsel %vm968_vm7, %v1769_v19, %v1770_v8  ;;  %v991_v37 = vrot.slane %v3015_v26, 1  ;;  %v1399_v43 = vsel %vm735_vm0, %v3094_v24, 0  ;;  %v2340_v26 = vld [vmem:[%s3547_s3 + $0x10] sm:$0x3] }
  0x43   : > { %2592 = vmatpush3.bf16.msra.mxu0 %v1273_v29  ;;  %2561 = vmatprep.mubr.msk.bf16.mxu0 %vm710_vm5, %v3124_v53  ;;  %v1778_v24 = vsel %vm735_vm0, %v2340_v26, 0 }
  0x44   : > { %2547 = vmatprep.mubr.msk.bf16.mxu1 %vm710_vm5, %v2922_v27  ;;  %2690 = vmatprep.subr.msk.bf16.mxu0 %vm735_vm0, %v2322_v63  ;;  %v1640_v23 = vor.u32 %v1639_v21, %v1635_v17  ;;  %v992_v60 = vsel %vm968_vm7, %v990_v25, %v991_v37 }
  0x46   : > { %v3171_v28 = vsel %vm611_vm4, %v1640_v23, %v1644_v20 }
  0x4a   : > { %2562 = vmatmul.mubr.msk.bf16.gmra.mxu0 %vm710_vm5, %v3161_v9  ;;  %2548 = vmatmul.mubr.msk.bf16.gmra.mxu1 %vm710_vm5, %v2929_v35 }
  0x4b   : > { %2565 = vmatprep.mubr.msk.bf16.mxu0 %vm710_vm5, %v3164_v22  ;;  %2551 = vmatprep.mubr.msk.bf16.mxu1 %vm710_vm5, %v3000_v4 }
  0x52   : > { %2566 = vmatmul.mubr.msk.bf16.gmra.mxu0 %vm710_vm5, %v986_v34  ;;  %2552 = vmatmul.mubr.msk.bf16.gmra.mxu1 %vm710_vm5, %v3023_v32 }
  0x53   : > { %2569 = vmatprep.mubr.msk.bf16.mxu0 %vm710_vm5, %v989_v36  ;;  %2575 = vmatprep.mubr.msk.bf16.mxu1 %vm710_vm5, %v2939_v42  ;;  %v1520_v42 = vsel %vm735_vm0, %v2322_v63, 0 }
  0x5a   : > { %2570 = vmatmul.mubr.msk.bf16.gmra.mxu0 %vm710_vm5, %v992_v60  ;;  %2576 = vmatmul.mubr.msk.bf16.vlgmr.msra.gmra.mxu1 %vm710_vm5, %v3034_v47 }
  0x5b   : > { %2610 = vmatpush3.bf16.msra.mxu1 %v1399_v43  ;;  %2593 = vmatprep.mubr.msk.bf16.mxu0 %vm710_vm5, %v2996_v12  ;;  %v1652_v12 = vsel %vm735_vm0, %v2331_v38, 0 }
  0x5c   : > { %2579 = vmatprep.mubr.msk.bf16.mxu1 %vm710_vm5, %v3064_v2  ;;  %2691 = vmatprep.subr.msk.bf16.mxu1 %vm735_vm0, %v2331_v38 }
  0x62   : > { %2594 = vmatmul.mubr.msk.bf16.vlgmr.msra.gmra.mxu0 %vm710_vm5, %v3078_v10  ;;  %2580 = vmatmul.mubr.msk.bf16.gmra.mxu1 %vm710_vm5, %v2922_v27 }
  0x63   : > { %2628 = vmatpush3.bf16.msra.mxu0 %v1520_v42  ;;  %2597 = vmatprep.mubr.msk.bf16.mxu0 %vm710_vm5, %v3089_v3 }
  0x64   : > { %2583 = vmatprep.mubr.msk.bf16.mxu1 %vm710_vm5, %v2929_v35  ;;  %2692 = vmatprep.subr.msk.bf16.mxu0 %vm735_vm0, %v2340_v26 }
  0x6a   : > { %2598 = vmatmul.mubr.msk.bf16.gmra.mxu0 %vm710_vm5, %v2956_v57  ;;  %2584 = vmatmul.mubr.msk.bf16.gmra.mxu1 %vm710_vm5, %v3000_v4 }
  0x6b   : > { %2601 = vmatprep.mubr.msk.bf16.mxu0 %vm710_vm5, %v2967_v61  ;;  %2587 = vmatprep.mubr.msk.bf16.mxu1 %vm710_vm5, %v3023_v32 }
  0x72   : > { %2602 = vmatmul.mubr.msk.bf16.gmra.mxu0 %vm710_vm5, %v3030_v45  ;;  %2588 = vmatmul.mubr.msk.bf16.gmra.mxu1 %vm710_vm5, %v3113_v41 }
  0x73   : > { %2605 = vmatprep.mubr.msk.bf16.mxu0 %vm710_vm5, %v3057_v62  ;;  %2611 = vmatprep.mubr.msk.bf16.mxu1 %vm710_vm5, %v3119_v51 }
  0x7a   : > { %2606 = vmatmul.mubr.msk.bf16.gmra.mxu0 %vm710_vm5, %v3152_v59  ;;  %2612 = vmatmul.mubr.msk.bf16.vlgmr.msra.gmra.mxu1 %vm710_vm5, %v3124_v53 }
  0x7b   : > { %2646 = vmatpush3.bf16.msra.mxu1 %v1652_v12  ;;  %2629 = vmatprep.mubr.msk.bf16.mxu0 %vm710_vm5, %v3034_v47 }
  0x7c   : > { %2615 = vmatprep.mubr.msk.bf16.mxu1 %vm710_vm5, %v3161_v9 }
  0x82   : > { %2630 = vmatmul.mubr.msk.bf16.vlgmr.msra.gmra.mxu0 %vm710_vm5, %v3064_v2  ;;  %2616 = vmatmul.mubr.msk.bf16.gmra.mxu1 %vm710_vm5, %v3164_v22 }
  0x83   : > { %2664 = vmatpush3.bf16.msra.mxu0 %v1778_v24  ;;  %2633 = vmatprep.mubr.msk.bf16.mxu0 %vm710_vm5, %v2922_v27 }
  0x84   : > { %2619 = vmatprep.mubr.msk.bf16.mxu1 %vm710_vm5, %v986_v34 }
  0x8a   : > { %2634 = vmatmul.mubr.msk.bf16.gmra.mxu0 %vm710_vm5, %v2929_v35  ;;  %2620 = vmatmul.mubr.msk.bf16.gmra.mxu1 %vm710_vm5, %v989_v36 }
  0x8b   : > { %2637 = vmatprep.mubr.msk.bf16.mxu0 %vm710_vm5, %v3000_v4  ;;  %2623 = vmatprep.mubr.msk.bf16.mxu1 %vm710_vm5, %v992_v60 }
  0x92   : > { %2638 = vmatmul.mubr.msk.bf16.gmra.mxu0 %vm710_vm5, %v3023_v32  ;;  %2624 = vmatmul.mubr.msk.bf16.gmra.mxu1 %vm710_vm5, %v3127_v58 }
  0x93   : > { %2641 = vmatprep.mubr.msk.bf16.mxu0 %vm710_vm5, %v3113_v41  ;;  %2647 = vmatprep.mubr.msk.bf16.mxu1 %vm710_vm5, %v3078_v10 }
  0x9a   : > { %2642 = vmatmul.mubr.msk.bf16.gmra.mxu0 %vm710_vm5, %v3146_v16  ;;  %2648 = vmatmul.mubr.msk.bf16.vlgmr.msra.gmra.mxu1 %vm710_vm5, %v3089_v3 }
  0x9b   : > { %2665 = vmatprep.mubr.msk.bf16.mxu0 %vm710_vm5, %v3124_v53  ;;  %2651 = vmatprep.mubr.msk.bf16.mxu1 %vm710_vm5, %v2956_v57 }
  0xa2   : > { %2666 = vmatmul.mubr.msk.bf16.vlgmr.msra.gmra.mxu0 %vm710_vm5, %v3161_v9  ;;  %2652 = vmatmul.mubr.msk.bf16.gmra.mxu1 %vm710_vm5, %v2967_v61 }
  0xa3   : > { %2669 = vmatprep.mubr.msk.bf16.mxu0 %vm710_vm5, %v3164_v22  ;;  %2655 = vmatprep.mubr.msk.bf16.mxu1 %vm710_vm5, %v3030_v45 }
  0xaa   : > { %2670 = vmatmul.mubr.msk.bf16.gmra.mxu0 %vm710_vm5, %v986_v34  ;;  %2656 = vmatmul.mubr.msk.bf16.gmra.mxu1 %vm710_vm5, %v3057_v62 }
  0xab   : > { %2673 = vmatprep.mubr.msk.bf16.mxu0 %vm710_vm5, %v989_v36  ;;  %2659 = vmatprep.mubr.msk.bf16.mxu1 %vm710_vm5, %v3152_v59 }
  0xb2   : > { %2674 = vmatmul.mubr.msk.bf16.gmra.mxu0 %vm710_vm5, %v992_v60  ;;  %2660 = vmatmul.mubr.msk.bf16.gmra.mxu1 %vm710_vm5, %v3171_v28 }
  0xb3   : > { %2677 = vmatprep.mubr.msk.bf16.mxu0 %vm710_vm5, %v3127_v58 }
  0xba   : > { %2678 = vmatmul.mubr.msk.bf16.gmra.mxu0 %vm710_vm5, %v3158_v13 }
  0xe7   : > { %v2531_v27 = vpop.f32.mrf.mxu1 }
  0xe9   : > { %v805_v35 = vpop.f32.mrf.mxu1 }
  0xeb   : > { %v2532_v57 = vpop.f32.mrf.mxu1 }
  0xed   : > { %v808_v61 = vpop.f32.mrf.mxu1 }
  0xf2   : > { %v2523_v4 = vpop.f32.mrf.mxu0  ;;  %v2535_v45 = vpop.f32.mrf.mxu1 }
  0xf4   : > { %v773_v32 = vpop.f32.mrf.mxu0  ;;  %v821_v62 = vpop.f32.mrf.mxu1 }
  0xf6   : > { %v2524_v47 = vpop.f32.mrf.mxu0  ;;  %v2536_v10 = vpop.f32.mrf.mxu1 }
  0xf8   : > { %v776_v2 = vpop.f32.mrf.mxu0  ;;  %v824_v3 = vpop.f32.mrf.mxu1 }
  0xfa   : > { %v2527_v39 = vpop.f32.mrf.mxu0  ;;  %v2541_v40 = vpop.f32.mrf.mxu1 }
  0xfb   : > { %v898_v41 = vadd.f32 %v2541_v40, %v2523_v4 }
  0xfc   : > { %v789_v44 = vpop.f32.mrf.mxu0  ;;  %v889_v46 = vpop.f32.mrf.mxu1 }
  0xfd   : > { %v890_v48 = vadd.f32 %v889_v46, %v773_v32 }
  0xfe   : > { %v2528_v49 = vpop.f32.mrf.mxu0  ;;  %v2542_v50 = vpop.f32.mrf.mxu1 }
  0xff   : > { %v901_v51 = vadd.f32 %v2542_v50, %v2524_v47 }
 0x100   : > { %v792_v29 = vpop.f32.mrf.mxu0  ;;  %v892_v52 = vpop.f32.mrf.mxu1 }
 0x101   : > { %v893_v53 = vadd.f32 %v892_v52, %v776_v2 }
 0x102   : > { %v2559_v55 = vpop.f32.mrf.mxu0  ;;  %v2545_v56 = vpop.f32.mrf.mxu1 }
 0x103   : > { %v3294_v58 = vadd.f32 %v2559_v55, %v898_v41  ;;  %v914_v63 = vadd.f32 %v2545_v56, %v2527_v39 }
 0x104   : > { %v1056_v0 = vpop.f32.mrf.mxu0  ;;  %v905_v5 = vpop.f32.mrf.mxu1 }
 0x105   : > { %v3296_v54 = vadd.f32 %v1056_v0, %v890_v48  ;;  %v906_v6 = vadd.f32 %v905_v5, %v789_v44 }
 0x106   : > { %v2560_v7 = vpop.f32.mrf.mxu0  ;;  %v2546_v8 = vpop.f32.mrf.mxu1 }
 0x107   : > { %v3298_v11 = vadd.f32 %v2560_v7, %v901_v51  ;;  %v917_v14 = vadd.f32 %v2546_v8, %v2528_v49 }
 0x108   : > { %v1059_v15 = vpop.f32.mrf.mxu0  ;;  %v908_v16 = vpop.f32.mrf.mxu1 }
 0x109   : > { %v3300_v59 = vadd.f32 %v1059_v15, %v893_v53  ;;  %v909_v17 = vadd.f32 %v908_v16, %v792_v29 }
 0x10a   : > { %v2563_v18 = vpop.f32.mrf.mxu0  ;;  %v2549_v19 = vpop.f32.mrf.mxu1 }
 0x10b   : > { %v3302_v21 = vadd.f32 %v2563_v18, %v914_v63  ;;  %v930_v20 = vadd.f32 %v2549_v19, %v2531_v27 }
 0x10c   : > { %v1072_v13 = vpop.f32.mrf.mxu0  ;;  %v921_v9 = vpop.f32.mrf.mxu1 }
 0x10d   : > { %v3304_v22 = vadd.f32 %v1072_v13, %v906_v6  ;;  %v922_v23 = vadd.f32 %v921_v9, %v805_v35 }
 0x10e   : > { %v2564_v28 = vpop.f32.mrf.mxu0  ;;  %v2550_v30 = vpop.f32.mrf.mxu1 }
 0x10f   : > { %v3306_v1 = vadd.f32 %v2564_v28, %v917_v14  ;;  %v933_v31 = vadd.f32 %v2550_v30, %v2532_v57 }
 0x110   : > { %v1075_v33 = vpop.f32.mrf.mxu0  ;;  %v924_v34 = vpop.f32.mrf.mxu1 }
 0x111   : > { %v3308_v36 = vadd.f32 %v1075_v33, %v909_v17  ;;  %v925_v25 = vadd.f32 %v924_v34, %v808_v61 }
 0x112   : > { %v2567_v37 = vpop.f32.mrf.mxu0  ;;  %v2553_v60 = vpop.f32.mrf.mxu1 }
 0x113   : > { %v3310_v43 = vadd.f32 %v2567_v37, %v930_v20  ;;  %v946_v38 = vadd.f32 %v2553_v60, %v2535_v45 }
 0x114   : > { %v1088_v42 = vpop.f32.mrf.mxu0  ;;  %v937_v26 = vpop.f32.mrf.mxu1 }
 0x115   : > { %v3312_v12 = vadd.f32 %v1088_v42, %v922_v23  ;;  %v938_v24 = vadd.f32 %v937_v26, %v821_v62 }
 0x116   : > { %v2568_v27 = vpop.f32.mrf.mxu0  ;;  %v2554_v35 = vpop.f32.mrf.mxu1 }
 0x117   : > { %v3314_v4 = vadd.f32 %v2568_v27, %v933_v31  ;;  %v949_v57 = vadd.f32 %v2554_v35, %v2536_v10 }
 0x118   : > { %v1091_v32 = vpop.f32.mrf.mxu0  ;;  %v940_v47 = vpop.f32.mrf.mxu1 }
 0x119   : > { %v3316_v2 = vadd.f32 %v1091_v32, %v925_v25  ;;  %v941_v61 = vadd.f32 %v940_v47, %v824_v3 }
 0x11a   : > { %v2571_v39 = vpop.f32.mrf.mxu0  ;;  %v3318_v40 = vpop.f32.mrf.mxu1 }
 0x11b   : > { %v3320_v41 = vadd.f32 %v2571_v39, %v946_v38 }
 0x11c   : > { %v1104_v45 = vpop.f32.mrf.mxu0  ;;  %v3322_v44 = vpop.f32.mrf.mxu1 }
 0x11d   : > { %v3324_v46 = vadd.f32 %v1104_v45, %v938_v24 }
 0x11e   : > { %v2572_v62 = vpop.f32.mrf.mxu0  ;;  %v3326_v48 = vpop.f32.mrf.mxu1 }
 0x11f   : > { %v3328_v49 = vadd.f32 %v2572_v62, %v949_v57 }
 0x120   : > { %v1107_v10 = vpop.f32.mrf.mxu0  ;;  %v3330_v50 = vpop.f32.mrf.mxu1 }
 0x121   : > { %v3332_v51 = vadd.f32 %v1107_v10, %v941_v61 }
 0x122   : > { %v3334_v3 = vpop.f32.mrf.mxu0  ;;  %v3336_v29 = vpop.f32.mrf.mxu1 }
 0x123   : > { %3555 = vst [vmem:[#allocation2_spill] sm:$0xff] %v3332_v51 }
 0x124   : > { %v3338_v52 = vpop.f32.mrf.mxu0  ;;  %v3340_v53 = vpop.f32.mrf.mxu1 }
 0x126   : > { %v3342_v55 = vpop.f32.mrf.mxu0  ;;  %v3344_v56 = vpop.f32.mrf.mxu1 }
 0x128   : > { %v3346_v63 = vpop.f32.mrf.mxu0  ;;  %v3348_v0 = vpop.f32.mrf.mxu1 }
 0x12a   : > { %v3350_v5 = vpop.f32.mrf.mxu0  ;;  %v3352_v6 = vpop.f32.mrf.mxu1 }
 0x12c   : > { %v3354_v7 = vpop.f32.mrf.mxu0  ;;  %v3356_v8 = vpop.f32.mrf.mxu1 }
 0x12e   : > { %v3358_v14 = vpop.f32.mrf.mxu0  ;;  %v3360_v15 = vpop.f32.mrf.mxu1 }
 0x130   : > { %v3362_v16 = vpop.f32.mrf.mxu0  ;;  %v3364_v17 = vpop.f32.mrf.mxu1 }
 0x132   : > { %v3366_v18 = vpop.f32.mrf.mxu0  ;;  %v3368_v19 = vpop.f32.mrf.mxu1 }
 0x134   : > { %v3370_v20 = vpop.f32.mrf.mxu0  ;;  %v3372_v13 = vpop.f32.mrf.mxu1 }
 0x136   : > { %v3374_v9 = vpop.f32.mrf.mxu0  ;;  %v3376_v23 = vpop.f32.mrf.mxu1 }
 0x138   : > { %v3378_v28 = vpop.f32.mrf.mxu0  ;;  %v3380_v30 = vpop.f32.mrf.mxu1 }
 0x139   : > { %3556 = vst [vmem:[#allocation3_spill] sm:$0xff] %v3378_v28  ;;  %3557 = vst [vmem:[#allocation4_spill] sm:$0xff] %v3380_v30 }
 0x13a   : > { %v3382_v31 = vpop.f32.mrf.mxu0  ;;  %v2613_v33 = vpop.f32.mrf.mxu1 }
 0x13b   : > { %3558 = vst [vmem:[#allocation5_spill] sm:$0xff] %v3382_v31 }
 0x13c   : > { %v3384_v34 = vpop.f32.mrf.mxu0  ;;  %v1435_v25 = vpop.f32.mrf.mxu1 }
 0x13d   : > { %3559 = vst [vmem:[#allocation6_spill] sm:$0xff] %v3384_v34 }
 0x13e   : > { %v3386_v37 = vpop.f32.mrf.mxu0  ;;  %v2614_v60 = vpop.f32.mrf.mxu1 }
 0x13f   : > { %3560 = vst [vmem:[#allocation7_spill] sm:$0xff] %v3386_v37 }
 0x140   : > { %v3388_v38 = vpop.f32.mrf.mxu0  ;;  %v1438_v42 = vpop.f32.mrf.mxu1 }
 0x141   : > { %3561 = vst [vmem:[#allocation8_spill] sm:$0xff] %v3388_v38 }
 0x142   : > { %v2631_v26 = vpop.f32.mrf.mxu0  ;;  %v3390_v24 = vpop.f32.mrf.mxu1 }
 0x144   : > { %v1556_v27 = vpop.f32.mrf.mxu0  ;;  %v3392_v35 = vpop.f32.mrf.mxu1 }
 0x146   : > { %v2632_v57 = vpop.f32.mrf.mxu0  ;;  %v3394_v32 = vpop.f32.mrf.mxu1 }
 0x148   : > { %v1559_v47 = vpop.f32.mrf.mxu0  ;;  %v3396_v61 = vpop.f32.mrf.mxu1 }
 0x149   : > { %3562 = vst [vmem:[#allocation9_spill] sm:$0xff] %v3396_v61 }
 0x14a   : > { %v3398_v39 = vpop.f32.mrf.mxu0  ;;  %v3400_v45 = vpop.f32.mrf.mxu1 }
 0x14b   : > { %3563 = vst [vmem:[#allocation10_spill] sm:$0xff] %v3398_v39  ;;  %3564 = vst [vmem:[#allocation11_spill] sm:$0xff] %v3400_v45 }
 0x14c   : > { %v3402_v62 = vpop.f32.mrf.mxu0  ;;  %v3404_v10 = vpop.f32.mrf.mxu1 }
 0x14d   : > { %3565 = vst [vmem:[#allocation12_spill] sm:$0xff] %v3404_v10 }
 0x14e   : > { %v3406_v38 = vpop.f32.mrf.mxu0  ;;  %v3408_v37 = vpop.f32.mrf.mxu1 }
 0x14f   : > { %3566 = vst [vmem:[#allocation13_spill] sm:$0xff] %v3406_v38  ;;  %3567 = vst [vmem:[#allocation14_spill] sm:$0xff] %v3408_v37 }
 0x150   : > { %v3410_v34 = vpop.f32.mrf.mxu0  ;;  %v3412_v30 = vpop.f32.mrf.mxu1 }
 0x151   : > { %3568 = vst [vmem:[#allocation15_spill] sm:$0xff] %v3410_v34  ;;  %3569 = vst [vmem:[#allocation16_spill] sm:$0xff] %v3412_v30 }
 0x152   : > { %v3414_v51 = vpop.f32.mrf.mxu0  ;;  %v3416_v31 = vpop.f32.mrf.mxu1 }
 0x153   : > { %3570 = vst [vmem:[#allocation17_spill] sm:$0xff] %v3414_v51  ;;  %3571 = vst [vmem:[#allocation18_spill] sm:$0xff] %v3416_v31  ;;  %v1242_v31 = vadd.f32 %v3318_v40, %v3294_v58  ;;  %v1246_v58 = vadd.f32 %v3336_v29, %v3302_v21 }
 0x154   : > { %v3418_v61 = vpop.f32.mrf.mxu0  ;;  %v3420_v28 = vpop.f32.mrf.mxu1 }
 0x155   : > { %3572 = vst [vmem:[#allocation19_spill] sm:$0xff] %v3418_v61  ;;  %3573 = vst [vmem:[#allocation20_spill] sm:$0xff] %v3420_v28  ;;  %v1240_v28 = vadd.f32 %v3322_v44, %v3296_v54  ;;  %v1244_v54 = vadd.f32 %v3340_v53, %v3304_v22  ;;  %v1250_v22 = vadd.f32 %v3352_v6, %v3310_v43 }
 0x156   : > { %v3422_v45 = vpop.f32.mrf.mxu0  ;;  %v3424_v39 = vpop.f32.mrf.mxu1 }
 0x157   : > { %3574 = vst [vmem:[#allocation21_spill] sm:$0xff] %v3422_v45  ;;  %3575 = vst [vmem:[#allocation22_spill] sm:$0xff] %v3424_v39  ;;  %v1243_v45 = vadd.f32 %v3326_v48, %v3298_v11  ;;  %v1247_v11 = vadd.f32 %v3344_v56, %v3306_v1  ;;  %v1376_v21 = vadd.f32 %v3354_v7, %v1244_v54 }
 0x158   : > { %v3426_v10 = vpop.f32.mrf.mxu0  ;;  %v3428_v38 = vpop.f32.mrf.mxu1 }
 0x159   : > { %3576 = vst [vmem:[#allocation23_spill] sm:$0xff] %v3426_v10  ;;  %3577 = vst [vmem:[#allocation24_spill] sm:$0xff] %v3428_v38  ;;  %v1374_v38 = vadd.f32 %v3334_v3, %v1242_v31  ;;  %v1375_v61 = vadd.f32 %v3342_v55, %v1243_v45  ;;  %v1245_v55 = vadd.f32 %v3348_v0, %v3308_v36 }
 0x15a   : > { %v3430_v37 = vpop.f32.mrf.mxu0  ;;  %v2649_v34 = vpop.f32.mrf.mxu1  ;;  %v1251_v36 = vadd.f32 %v3360_v15, %v3314_v4 }
 0x15b   : > { %3578 = vst [vmem:[#allocation25_spill] sm:$0xff] %v3430_v37  ;;  %v1241_v37 = vadd.f32 %v3330_v50, %v3300_v59  ;;  %v1500_v3 = vadd.f32 %v2613_v33, %v1374_v38  ;;  %v1501_v50 = vadd.f32 %v2614_v60, %v1375_v61 }
 0x15c   : > { %v3432_v30 = vpop.f32.mrf.mxu0  ;;  %v1688_v51 = vpop.f32.mrf.mxu1 }
 0x15d   : > { %3579 = vst [vmem:[#allocation26_spill] sm:$0xff] %v3432_v30  ;;  %v1372_v30 = vadd.f32 %v3338_v52, %v1240_v28  ;;  %v1373_v48 = vadd.f32 %v3346_v63, %v1241_v37  ;;  %v1378_v52 = vadd.f32 %v3350_v5, %v1246_v58  ;;  %v1621_v53 = vadd.f32 %v2631_v26, %v1500_v3 }
 0x15e   : > { %v3440_v39 = vpop.f32.mrf.mxu0  ;;  %v2650_v10 = vpop.f32.mrf.mxu1  ;;  %v1622_v31 = vadd.f32 %v2632_v57, %v1501_v50  ;;  %v1379_v63 = vadd.f32 %v3358_v14, %v1247_v11  ;;  %v1377_v5 = vadd.f32 %v3362_v16, %v1245_v55  ;;  %v1382_v37 = vadd.f32 %v3366_v18, %v1250_v22  ;;  %v3582_v11 = vld [vmem:[#allocation3_spill] sm:$0xff] }
 0x15f   : > { %v1498_v59 = vadd.f32 %v1435_v25, %v1372_v30  ;;  %v1499_v56 = vadd.f32 %v1438_v42, %v1373_v48  ;;  %v1248_v30 = vadd.f32 %v3356_v8, %v3312_v12  ;;  %v1753_v43 = vadd.f32 %v2649_v34, %v1621_v53  ;;  %v3586_v53 = vld [vmem:[#allocation4_spill] sm:$0xff] }
 0x160   : > { %v3453_v40 = vpop.f32.mrf.mxu0  ;;  %v1691_v44 = vpop.f32.mrf.mxu1  ;;  %v1754_v25 = vadd.f32 %v2650_v10, %v1622_v31  ;;  %v1249_v14 = vadd.f32 %v3364_v17, %v3316_v2  ;;  %v1254_v12 = vadd.f32 %v3368_v19, %v3320_v41  ;;  %v1502_v8 = vadd.f32 %v3392_v35, %v1376_v21  ;;  %v3580_v35 = vld [vmem:[#allocation10_spill] sm:$0xff]  ;;  %v3584_v21 = vld [vmem:[#allocation5_spill] sm:$0xff] }
 0x161   : > { %v1619_v28 = vadd.f32 %v1556_v27, %v1498_v59  ;;  %v1620_v33 = vadd.f32 %v1559_v47, %v1499_v56  ;;  %v1504_v34 = vadd.f32 %v3390_v24, %v1378_v52  ;;  %v1505_v18 = vadd.f32 %v3394_v32, %v1379_v63  ;;  %v3581_v32 = vld [vmem:[#allocation13_spill] sm:$0xff] }
 0x162   : > { %v2667_v29 = vpop.f32.mrf.mxu0  ;;  %v2653_v1 = vpop.f32.mrf.mxu1  ;;  %v1623_v26 = vadd.f32 %v3402_v62, %v1502_v8  ;;  %v1383_v17 = vadd.f32 %v3374_v9, %v1251_v36  ;;  %v1252_v19 = vadd.f32 %v3372_v13, %v3324_v46  ;;  %v1255_v27 = vadd.f32 %v3376_v23, %v3328_v49  ;;  %v3583_v13 = vld [vmem:[#allocation9_spill] sm:$0xff] }
 0x163   : > { %v1751_v6 = vadd.f32 %v1688_v51, %v1619_v28  ;;  %v1879_v4 = vadd.f32 %v2667_v29, %v1753_v43  ;;  %v1752_v15 = vadd.f32 %v1691_v44, %v1620_v33  ;;  %v1380_v51 = vadd.f32 %v3370_v20, %v1248_v30  ;;  %v3585_v29 = vld [vmem:[#allocation2_spill] sm:$0xff]  ;;  %v3587_v28 = vld [vmem:[#allocation15_spill] sm:$0xff] }
 0x164   : > { %v1814_v0 = vpop.f32.mrf.mxu0  ;;  %v1704_v7 = vpop.f32.mrf.mxu1  ;;  %v1625_v57 = vadd.f32 %v3580_v35, %v1504_v34  ;;  %v1626_v47 = vadd.f32 %v3581_v32, %v1505_v18  ;;  %v1381_v46 = vadd.f32 %v3582_v11, %v1249_v14  ;;  %v1503_v44 = vadd.f32 %v3583_v13, %v1377_v5  ;;  %v3588_v33 = vld [vmem:[#allocation11_spill] sm:$0xff]  ;;  %v3590_v14 = vld [vmem:[#allocation14_spill] sm:$0xff]  ;;  %v3597_v11 = vld [vmem:[#allocation8_spill] sm:$0xff] }
 0x165   : > { %v1877_v38 = vadd.f32 %v1814_v0, %v1751_v6  ;;  %v1755_v61 = vadd.f32 %v1704_v7, %v1623_v26  ;;  %v1997_v48 = vmul.f32 %v1879_v4, %v1879_v4  ;;  %v1386_v22 = vadd.f32 %v3584_v21, %v1254_v12  ;;  %v3589_v6 = vld [vmem:[#allocation12_spill] sm:$0xff]  ;;  %v3591_v18 = vld [vmem:[#allocation6_spill] sm:$0xff] }
 0x166   : > { %v2668_v16 = vpop.f32.mrf.mxu0  ;;  %v2654_v60 = vpop.f32.mrf.mxu1  ;;  %v1757_v3 = vadd.f32 %v2653_v1, %v1625_v57  ;;  %v1253_v56 = vadd.f32 %v3586_v53, %v3585_v29  ;;  %v1624_v31 = vadd.f32 %v3587_v28, %v1503_v44  ;;  %v1508_v43 = vadd.f32 %v3588_v33, %v1382_v37  ;;  %v3598_v44 = vld [vmem:[#allocation23_spill] sm:$0xff]  ;;  %v3599_v29 = vld [vmem:[#allocation18_spill] sm:$0xff] }
 0x167   : > { %v1880_v42 = vadd.f32 %v2668_v16, %v1754_v25  ;;  %v1995_v10 = vmul.f32 %v1877_v38, %v1877_v38  ;;  %v1758_v52 = vadd.f32 %v2654_v60, %v1626_v47  ;;  %v1506_v25 = vadd.f32 %v3589_v6, %v1380_v51  ;;  %v3594_v51 = vld [vmem:[#allocation17_spill] sm:$0xff] }
 0x168   : > { %v1817_v2 = vpop.f32.mrf.mxu0  ;;  %v1707_v41 = vpop.f32.mrf.mxu1  ;;  %v1509_v8 = vadd.f32 %v3590_v14, %v1383_v17  ;;  %v1384_v26 = vadd.f32 %v3591_v18, %v1252_v19  ;;  %v1629_v32 = vadd.f32 %v3594_v51, %v1508_v43  ;;  %v3595_v17 = vld [vmem:[#allocation16_spill] sm:$0xff]  ;;  %v3596_v47 = vld [vmem:[#allocation21_spill] sm:$0xff]  ;;  %v1385_v13 = vadd.f32 %v3597_v11, %v1253_v56  ;;  %v3603_v14 = vld [vmem:[#allocation26_spill] sm:$0xff] }
 0x169   : > { %v2399_v20 = vpack.c.bf16 %v1880_v42, %v1879_v4  ;;  %v1878_v24 = vadd.f32 %v1817_v2, %v1752_v15  ;;  %v1998_v63 = vmul.f32 %v1880_v42, %v1880_v42  ;;  %v1756_v16 = vadd.f32 %v1707_v41, %v1624_v31  ;;  %v3592_v2 = vld [vmem:[#allocation7_spill] sm:$0xff]  ;;  %v3600_v31 = vld [vmem:[#allocation20_spill] sm:$0xff] }
 0x16a   : > { %v2671_v45 = vpop.f32.mrf.mxu0  ;;  %v2657_v62 = vpop.f32.mrf.mxu1  ;;  %v1507_v41 = vadd.f32 %v3595_v17, %v1381_v46  ;;  %v1512_v53 = vadd.f32 %v3599_v29, %v1386_v22  ;;  %v3602_v43 = vld [vmem:[#allocation24_spill] sm:$0xff] }
 0x16b   : > { %2431 = vst [vmem:[%s3483_s19 + $0x8] sm:$0xff] %v2399_v20   ;;  %v2394_v58 = vpack.c.bf16 %v1878_v24, %v1877_v38  ;;  %v1973_v9 = vadd.f32 %v1878_v24, %v1877_v38  ;;  %v1996_v54 = vmul.f32 %v1878_v24, %v1878_v24  ;;  %v1883_v0 = vadd.f32 %v2671_v45, %v1757_v3 }
 0x16c   : > { %v1830_v49 = vpop.f32.mrf.mxu0  ;;  %v1720_v23 = vpop.f32.mrf.mxu1  ;;  %v1387_v20 = vadd.f32 %v3592_v2, %v1255_v27  ;;  %v1761_v3 = vadd.f32 %v2657_v62, %v1629_v32 }
 0x16d   : > { %2395 = vst [vmem:[%s3483_s19] sm:$0xff] %v2394_v58   ;;  %v1974_v59 = vadd.f32 %v1973_v9, %v1879_v4  ;;  %v2011_v50 = vadd.f32 %v1996_v54, %v1995_v10  ;;  %v1881_v55 = vadd.f32 %v1830_v49, %v1755_v61  ;;  %v1630_v61 = vadd.f32 %v3596_v47, %v1509_v8 }
 0x16e   : > { %v2672_v30 = vpop.f32.mrf.mxu0  ;;  %v2658_v36 = vpop.f32.mrf.mxu1 }
 0x16f   : > { %v2012_v5 = vadd.f32 %v2011_v50, %v1997_v48  ;;  %v1975_v1 = vadd.f32 %v1974_v59, %v1880_v42  ;;  %v1884_v7 = vadd.f32 %v2672_v30, %v1758_v52  ;;  %v1999_v15 = vmul.f32 %v1881_v55, %v1881_v55  ;;  %v3593_v42 = vld [vmem:[#allocation19_spill] sm:$0xff] }
 0x170   : > { %v1833_v12 = vpop.f32.mrf.mxu0  ;;  %v1723_v60 = vpop.f32.mrf.mxu1  ;;  %v1627_v24 = vadd.f32 %v3593_v42, %v1506_v25  ;;  %v1628_v48 = vadd.f32 %v3598_v44, %v1507_v41  ;;  %v1762_v49 = vadd.f32 %v2658_v36, %v1630_v61  ;;  %v2001_v59 = vmul.f32 %v1883_v0, %v1883_v0  ;;  %v3601_v36 = vld [vmem:[#allocation22_spill] sm:$0xff] }
 0x171   : > { %v1976_v4 = vadd.f32 %v1975_v1, %v1881_v55  ;;  %v2013_v38 = vadd.f32 %v2012_v5, %v1998_v63  ;;  %v2409_v34 = vpack.c.bf16 %v1884_v7, %v1883_v0  ;;  %v1882_v35 = vadd.f32 %v1833_v12, %v1756_v16 }
 0x172   : > { %v2675_v37 = vpop.f32.mrf.mxu0  ;;  %v2661_v57 = vpop.f32.mrf.mxu1  ;;  %v1759_v10 = vadd.f32 %v1720_v23, %v1627_v24  ;;  %v1510_v63 = vadd.f32 %v3600_v31, %v1384_v26  ;;  %v2002_v30 = vmul.f32 %v1884_v7, %v1884_v7  ;;  %v1513_v33 = vadd.f32 %v3601_v36, %v1387_v20 }
 0x173   : > { %v2014_v45 = vadd.f32 %v2013_v38, %v1999_v15  ;;  %2433 = vst [vmem:[%s3483_s19 + $0x18] sm:$0xff] %v2409_v34   ;;  %v2404_v58 = vpack.c.bf16 %v1882_v35, %v1881_v55  ;;  %v1977_v9 = vadd.f32 %v1976_v4, %v1882_v35  ;;  %v2000_v19 = vmul.f32 %v1882_v35, %v1882_v35  ;;  %v3604_v4 = vld [vmem:[#allocation25_spill] sm:$0xff] }
 0x174   : > { %v1846_v54 = vpop.f32.mrf.mxu0  ;;  %v1736_v27 = vpop.f32.mrf.mxu1  ;;  %v1887_v23 = vadd.f32 %v2675_v37, %v1761_v3  ;;  %v1760_v55 = vadd.f32 %v1723_v60, %v1628_v48  ;;  %v1631_v8 = vadd.f32 %v3603_v14, %v1510_v63  ;;  %v1633_v15 = vadd.f32 %v3604_v4, %v1512_v53 }
 0x175   : > { %2432 = vst [vmem:[%s3483_s19 + $0x10] sm:$0xff] %v2404_v58   ;;  %v1978_v50 = vadd.f32 %v1977_v9, %v1883_v0  ;;  %v2015_v46 = vadd.f32 %v2014_v45, %v2000_v19  ;;  %v1885_v52 = vadd.f32 %v1846_v54, %v1759_v10  ;;  %v1511_v0 = vadd.f32 %v3602_v43, %v1385_v13 }
 0x176   : > { %v2676_v21 = vpop.f32.mrf.mxu0  ;;  %v2662_v62 = vpop.f32.mrf.mxu1  ;;  %v1634_v38 = vadd.f32 %v3440_v39, %v1513_v33  ;;  %v1763_v26 = vadd.f32 %v1736_v27, %v1631_v8  ;;  %v1765_v35 = vadd.f32 %v2661_v57, %v1633_v15  ;;  %v2005_v51 = vmul.f32 %v1887_v23, %v1887_v23 }
 0x177   : > { %v1888_v28 = vadd.f32 %v2676_v21, %v1762_v49  ;;  %v2016_v56 = vadd.f32 %v2015_v46, %v2001_v59  ;;  %v1979_v5 = vadd.f32 %v1978_v50, %v1884_v7  ;;  %v2003_v16 = vmul.f32 %v1885_v52, %v1885_v52 }
 0x178   : > { %v1849_v1 = vpop.f32.mrf.mxu0  ;;  %v1739_v20 = vpop.f32.mrf.mxu1  ;;  %v1632_v24 = vadd.f32 %v3453_v40, %v1511_v0  ;;  %v1766_v37 = vadd.f32 %v2662_v62, %v1634_v38 }
 0x179   : > { %v2419_v6 = vpack.c.bf16 %v1888_v28, %v1887_v23  ;;  %v1886_v25 = vadd.f32 %v1849_v1, %v1760_v55  ;;  %v1980_v22 = vadd.f32 %v1979_v5, %v1885_v52  ;;  %v2017_v12 = vadd.f32 %v2016_v56, %v2002_v30 }
 0x17a   : > { %v2679_v60 = vpop.f32.mrf.mxu0  ;;  %v1764_v61 = vadd.f32 %v1739_v20, %v1632_v24  ;;  %v2006_v10 = vmul.f32 %v1888_v28, %v1888_v28 }
 0x17b   : > { %2435 = vst [vmem:[%s3483_s19 + $0x28] sm:$0xff] %v2419_v6   ;;  %v2414_v7 = vpack.c.bf16 %v1886_v25, %v1885_v52  ;;  %v2004_v34 = vmul.f32 %v1886_v25, %v1886_v25  ;;  %v2018_v18 = vadd.f32 %v2017_v12, %v2003_v16  ;;  %v1981_v2 = vadd.f32 %v1980_v22, %v1886_v25 }
 0x17c   : > { %v1862_v42 = vpop.f32.mrf.mxu0  ;;  %v1891_v39 = vadd.f32 %v2679_v60, %v1765_v35 }
 0x17d   : > { %2434 = vst [vmem:[%s3483_s19 + $0x20] sm:$0xff] %v2414_v7   ;;  %v1982_v32 = vadd.f32 %v1981_v2, %v1887_v23  ;;  %v2019_v17 = vadd.f32 %v2018_v18, %v2004_v34  ;;  %v1889_v41 = vadd.f32 %v1862_v42, %v1763_v26 }
 0x17e   : > { %v2680_v47 = vpop.f32.mrf.mxu0  ;;  %v2009_v49 = vmul.f32 %v1891_v39, %v1891_v39 }
 0x17f   : > { %v1892_v45 = vadd.f32 %v2680_v47, %v1766_v37  ;;  %v2020_v58 = vadd.f32 %v2019_v17, %v2005_v51  ;;  %v1983_v9 = vadd.f32 %v1982_v32, %v1888_v28  ;;  %v2007_v57 = vmul.f32 %v1889_v41, %v1889_v41 }
 0x180   : > { %v1865_v19 = vpop.f32.mrf.mxu0 }
 0x181   : > { %v2429_v54 = vpack.c.bf16 %v1892_v45, %v1891_v39  ;;  %v1890_v27 = vadd.f32 %v1865_v19, %v1764_v61  ;;  %v1984_v40 = vadd.f32 %v1983_v9, %v1889_v41  ;;  %v2021_v11 = vadd.f32 %v2020_v58, %v2006_v10 }
 0x182   : > { %v2010_v46 = vmul.f32 %v1892_v45, %v1892_v45 }
 0x183   : > { %2437 = vst [vmem:[%s3483_s19 + $0x38] sm:$0xff] %v2429_v54   ;;  %v2424_v13 = vpack.c.bf16 %v1890_v27, %v1889_v41  ;;  %v2008_v44 = vmul.f32 %v1890_v27, %v1890_v27  ;;  %v2022_v48 = vadd.f32 %v2021_v11, %v2007_v57  ;;  %v1985_v3 = vadd.f32 %v1984_v40, %v1890_v27 }
 0x185   : > { %2436 = vst [vmem:[%s3483_s19 + $0x30] sm:$0xff] %v2424_v13   ;;  %v1986_v59 = vadd.f32 %v1985_v3, %v1891_v39  ;;  %v2023_v50 = vadd.f32 %v2022_v48, %v2008_v44 }
 0x187   : > { %v1987_v52 = vadd.f32 %v1986_v59, %v1892_v45  ;;  %v2024_v21 = vadd.f32 %v2023_v50, %v2009_v49 }
 0x189   : > { %v1988_v29 = vrot.slane %v1987_v52, 4  ;;  %v2025_v53 = vadd.f32 %v2024_v21, %v2010_v46 }
 0x18b   : > { %v1989_v23 = vadd.f32 %v1988_v29, %v1987_v52  ;;  %v2026_v55 = vrot.slane %v2025_v53, 4 }
 0x18d   : > { %v1990_v28 = vrot.slane %v1989_v23, 2  ;;  %v2027_v31 = vadd.f32 %v2026_v55, %v2025_v53 }
 0x18f   : > { %v1991_v63 = vadd.f32 %v1990_v28, %v1989_v23  ;;  %v2028_v30 = vrot.slane %v2027_v31, 2 }
 0x191   : > { %v1992_v56 = vrot.slane %v1991_v63, 1  ;;  %v2029_v5 = vadd.f32 %v2028_v30, %v2027_v31 }
 0x193   : > { %v1993_v1 = vadd.f32 %v1992_v56, %v1991_v63  ;;  %v2030_v62 = vrot.slane %v2029_v5, 1 }
 0x195   : > { %1994 = vst [vmem:[%s413_s26] sm:$0x1] %v1993_v1  ;;  %v2031_v36 = vadd.f32 %v2030_v62, %v2029_v5 }
 0x197   : > { %2032 = vst [vmem:[%s413_s26 + $0x1] sm:$0x1] %v2031_v36 }
 0x198 PF: > { %s16_s22 = sadd.s32 1, %s2779_s22   ;;  %s3605_s18 = smov %s2771_s20 }
 0x199   : > { %p13_p12 = scmp.ge.s32.totalorder %s16_s22, 6   ;;  %s3606_s19 = smov %s2775_s21 }
 0x19a   : > { %s3607_s20 = smov %s3610_s23  ;;  %s3608_s21 = smov %s3614_s24 }
 0x19b   :  { %15 = sbr.rel (!%p13_p12) target bundleno = 3 (0x3), region = 92 }

</bundles_post_ra>
